<compile_context>
chip_gen: v7x
topology: tpu7x:2x2x1
jax: 0.10.0
libtpu: 0.0.40
codegen_flags: <defaults>
</compile_context>

<pallas_src>
import functools

import jax
import jax.numpy as jnp
from jax.experimental import pallas as pl
from jax.experimental.pallas import tpu as pltpu

HIDDEN = 256


def conv_pool_kernel(x_ref, wc_ref, bc_ref,
                     w1_ref, b1_ref, w2_ref, b2_ref, w3_ref, b3_ref,
                     h_ref, p_ref, out_ref, acc_ref, *, inv_t):
    """One (batch b, time-tile t) grid step.

    x_ref   : (C_in, TILE_T)   input tile, time on lanes
    wc_ref  : (256, C_in)      1x1-conv weight (pre-transposed)
    bc_ref  : (256, 1)         conv bias
    w*_ref  : decoder weights, transposed: (512,256), (1024,512), (classes,1024)
    b*_ref  : decoder biases as columns:   (512,1),  (1024,1),   (classes,1)
    h_ref   : (256, TILE_T)    relu(conv) output tile (lane-dense store)
    p_ref   : (256, 1)         pooled (mean over T) output for this batch row
    out_ref : (classes, 1)     decoder logits for this batch row
    acc_ref : (256, 1) f32     running time-sum (scratch, persists across t steps)
    """
    t = pl.program_id(1)

    @pl.when(t == 0)
    def _():
        acc_ref[...] = jnp.zeros_like(acc_ref)

    # 1x1 conv == per-timestep linear: (256, C_in) @ (C_in, TILE_T) -> (256, TILE_T), + bias, ReLU.
    # K = C_in is tiny; the kernel is HBM-bound on the h writeback, so MXU shape does not matter.
    h = jnp.dot(wc_ref[...], x_ref[...], preferred_element_type=jnp.float32)
    h = jnp.maximum(h + bc_ref[...], 0.0)
    h_ref[...] = h.astype(h_ref.dtype)

    # GTP / AVG pooling: accumulate the time-sum on the fly (XLU lane-reduce; no second pass).
    acc_ref[...] += jnp.sum(h, axis=-1, keepdims=True)

    @pl.when(t == pl.num_programs(1) - 1)
    def _():
        pooled = acc_ref[...] * inv_t                                   # (256, 1)
        p_ref[...] = pooled.astype(p_ref.dtype)
        # Fused decoder MLP, column orientation (one batch row at a time).
        z1 = jnp.dot(w1_ref[...], pooled, preferred_element_type=jnp.float32) + b1_ref[...]
        z1 = jnp.maximum(z1, 0.0)
        z2 = jnp.dot(w2_ref[...], z1, preferred_element_type=jnp.float32) + b2_ref[...]
        z2 = jnp.maximum(z2, 0.0)
        out_ref[...] = (jnp.dot(w3_ref[...], z2, preferred_element_type=jnp.float32)
                        + b3_ref[...]).astype(out_ref.dtype)


def _pick_tile_t(T, C_in, hidden, classes, vmem_budget_bytes=24 * 1024 * 1024):
    """Largest lane-aligned time tile whose double-buffered x/h streams fit the VMEM budget."""
    weights_bytes = 4 * (hidden * (C_in + 1) + 512 * (hidden + 1)
                         + 1024 * (512 + 1) + classes * (1024 + 1))
    per_t_bytes = 2 * 4 * (C_in + hidden)         # 2 pipeline buffers x f32 x (x col + h col)
    cap = max(128, (vmem_budget_bytes - weights_bytes) // per_t_bytes)
    for tile in (2048, 1024, 512, 256, 128):
        if tile <= cap and T % tile == 0:
            return tile
    return T  # small / ragged T: one full-extent block (valid when block == array extent)


@functools.partial(jax.jit, static_argnames=("B", "T", "tile_t"))
def conv_pool_forward(x_nct, params, B, T, tile_t=None):
    """ConvPool forward. x_nct: (B, C_in, T) float32 (PyTorch Conv1d layout). Returns (h, out, out_p)."""
    C_in = x_nct.shape[1]
    hidden = params["conv_w_t"].shape[0]            # 256
    classes = params["w3_t"].shape[0]

    if tile_t is None:
        tile_t = _pick_tile_t(T, C_in, hidden, classes)
    assert T % tile_t == 0, "tile_t must divide T"
    grid = (B, T // tile_t)

    full = lambda b, t: (0, 0)                      # grid-invariant weights / biases

    flops = (2 * B * T * C_in * hidden
             + 2 * B * (hidden * 512 + 512 * 1024 + 1024 * classes))
    bytes_accessed = 4 * (B * C_in * T + B * hidden * T + B * hidden + B * classes
                          + hidden * (C_in + 1) + 512 * (hidden + 1)
                          + 1024 * (512 + 1) + classes * (1024 + 1))

    h, pooled, out = pl.pallas_call(
        functools.partial(conv_pool_kernel, inv_t=1.0 / T),
        grid=grid,
        in_specs=[
            pl.BlockSpec((None, C_in, tile_t), lambda b, t: (b, 0, t)),   # x (NCT, T on lanes)
            pl.BlockSpec((hidden, C_in), full),                           # conv weight^T
            pl.BlockSpec((hidden, 1), full),                              # conv bias
            pl.BlockSpec((512, hidden), full),                            # w1^T
            pl.BlockSpec((512, 1), full),                                 # b1
            pl.BlockSpec((1024, 512), full),                              # w2^T
            pl.BlockSpec((1024, 1), full),                                # b2
            pl.BlockSpec((classes, 1024), full),                          # w3^T
            pl.BlockSpec((classes, 1), full),                             # b3
        ],
        out_specs=(
            pl.BlockSpec((None, hidden, tile_t), lambda b, t: (b, 0, t)), # h (lane-dense)
            pl.BlockSpec((None, hidden, 1), lambda b, t: (b, 0, 0)),      # pooled (const over t)
            pl.BlockSpec((None, classes, 1), lambda b, t: (b, 0, 0)),     # logits (const over t)
        ),
        out_shape=(
            jax.ShapeDtypeStruct((B, hidden, T), jnp.float32),
            jax.ShapeDtypeStruct((B, hidden, 1), jnp.float32),
            jax.ShapeDtypeStruct((B, classes, 1), jnp.float32),
        ),
        scratch_shapes=[pltpu.VMEM((hidden, 1), jnp.float32)],
        compiler_params=pltpu.CompilerParams(
            dimension_semantics=("parallel", "arbitrary"),  # batch across TCs; T is the reduction
            vmem_limit_bytes=32 * 1024 * 1024,
        ),
        cost_estimate=pl.CostEstimate(flops=flops, transcendentals=0,
                                      bytes_accessed=bytes_accessed),
    )(x_nct, params["conv_w_t"], params["conv_b"],
      params["w1_t"], params["b1"], params["w2_t"], params["b2"],
      params["w3_t"], params["b3"])

    return h, out.reshape(B, classes), pooled.reshape(B, hidden)


def init_params(key, input_size, classes, hidden=HIDDEN):
    ks = jax.random.split(key, 8)
    s = 0.05
    return {
        # Kernel-friendly orientations: conv weight (out, in), decoder weights transposed,
        # biases as columns.
        "conv_w_t": s * jax.random.normal(ks[0], (hidden, input_size), jnp.float32),
        "conv_b":   s * jax.random.normal(ks[1], (hidden, 1), jnp.float32),
        "w1_t": s * jax.random.normal(ks[2], (512, hidden), jnp.float32),
        "b1":   s * jax.random.normal(ks[3], (512, 1), jnp.float32),
        "w2_t": s * jax.random.normal(ks[4], (1024, 512), jnp.float32),
        "b2":   s * jax.random.normal(ks[5], (1024, 1), jnp.float32),
        "w3_t": s * jax.random.normal(ks[6], (classes, 1024), jnp.float32),
        "b3":   s * jax.random.normal(ks[7], (classes, 1), jnp.float32),
    }


def reference_forward(x_nct, params):
    """Pure-JAX reference mirroring the PyTorch forward (shallow / GTP / AVG)."""
    h = jnp.maximum(jnp.einsum("hc,bct->bht", params["conv_w_t"], x_nct)
                    + params["conv_b"][None, :, :], 0.0)                  # (B, 256, T)
    pooled = jnp.mean(h, axis=2)                                          # (B, 256)
    z1 = jnp.maximum(pooled @ params["w1_t"].T + params["b1"][:, 0], 0.0)
    z2 = jnp.maximum(z1 @ params["w2_t"].T + params["b2"][:, 0], 0.0)
    out = z2 @ params["w3_t"].T + params["b3"][:, 0]
    return h, out, pooled


if __name__ == "__main__":
    key = jax.random.PRNGKey(0)

    configs = [
        # (B, C_in, T, classes, tile_t): small single-tile case + a multi-tile case that
        # exercises the cross-tile pooling accumulation and the pl.when finalize path.
        dict(B=2, C_in=4, T=16, classes=4, tile_t=None),
        dict(B=2, C_in=4, T=256, classes=4, tile_t=128),
    ]

    for i, cfg in enumerate(configs):
        k_x, k_p = jax.random.split(jax.random.fold_in(key, i))
        x = jax.random.normal(k_x, (cfg["B"], cfg["C_in"], cfg["T"]), jnp.float32)  # (N, C, T)
        params = init_params(k_p, cfg["C_in"], cfg["classes"])

        h, out, out_p = conv_pool_forward(x, params, B=cfg["B"], T=cfg["T"], tile_t=cfg["tile_t"])
        jax.block_until_ready((h, out, out_p))

        h_ref, out_ref_, out_p_ref = reference_forward(x, params)
        assert h.shape == (cfg["B"], HIDDEN, cfg["T"])
        assert out.shape == (cfg["B"], cfg["classes"])
        assert out_p.shape == (cfg["B"], HIDDEN)
        assert jnp.allclose(h, h_ref, atol=1e-4, rtol=1e-4)
        assert jnp.allclose(out_p, out_p_ref, atol=1e-4, rtol=1e-4)
        assert jnp.allclose(out, out_ref_, atol=1e-4, rtol=1e-4)

    print("KERNEL_OK")
</pallas_src>

<mosaic_0001>
module attributes {stable_mosaic.version = 11 : i64} {
  func.func @conv_pool_kernel(%arg0: i32, %arg1: i32, %arg2: memref<1x4x16xf32, #tpu.memory_space<vmem>>, %arg3: memref<256x4xf32, #tpu.memory_space<vmem>>, %arg4: memref<256x1xf32, #tpu.memory_space<vmem>>, %arg5: memref<512x256xf32, #tpu.memory_space<vmem>>, %arg6: memref<512x1xf32, #tpu.memory_space<vmem>>, %arg7: memref<1024x512xf32, #tpu.memory_space<vmem>>, %arg8: memref<1024x1xf32, #tpu.memory_space<vmem>>, %arg9: memref<4x1024xf32, #tpu.memory_space<vmem>>, %arg10: memref<4x1xf32, #tpu.memory_space<vmem>>, %arg11: memref<1x256x16xf32, #tpu.memory_space<vmem>>, %arg12: memref<1x256x1xf32, #tpu.memory_space<vmem>>, %arg13: memref<1x4x1xf32, #tpu.memory_space<vmem>>, %arg14: memref<256x1xf32, #tpu.memory_space<vmem>>) attributes {dimension_semantics = [#tpu.dimension_semantics<parallel>, #tpu.dimension_semantics<arbitrary>], iteration_bounds = array<i64: 2, 1>, scalar_prefetch = 0 : i64, scratch_operands = 1 : i64, tpu.core_type = #tpu.core_type<tc>, window_params = [{transform_indices = @transform_0, window_bounds = array<i64: 1, 4, 16>}, {pipeline_mode = #tpu.pipeline_mode<synchronous>, transform_indices = @transform_1, window_bounds = array<i64: 256, 4>}, {pipeline_mode = #tpu.pipeline_mode<synchronous>, transform_indices = @transform_2, window_bounds = array<i64: 256, 1>}, {pipeline_mode = #tpu.pipeline_mode<synchronous>, transform_indices = @transform_3, window_bounds = array<i64: 512, 256>}, {pipeline_mode = #tpu.pipeline_mode<synchronous>, transform_indices = @transform_4, window_bounds = array<i64: 512, 1>}, {pipeline_mode = #tpu.pipeline_mode<synchronous>, transform_indices = @transform_5, window_bounds = array<i64: 1024, 512>}, {pipeline_mode = #tpu.pipeline_mode<synchronous>, transform_indices = @transform_6, window_bounds = array<i64: 1024, 1>}, {pipeline_mode = #tpu.pipeline_mode<synchronous>, transform_indices = @transform_7, window_bounds = array<i64: 4, 1024>}, {pipeline_mode = #tpu.pipeline_mode<synchronous>, transform_indices = @transform_8, window_bounds = array<i64: 4, 1>}, {transform_indices = @transform_9, window_bounds = array<i64: 1, 256, 16>}, {transform_indices = @transform_10, window_bounds = array<i64: 1, 256, 1>}, {transform_indices = @transform_11, window_bounds = array<i64: 1, 4, 1>}]} {
    %c0_i32 = arith.constant 0 : i32
    %0 = arith.cmpi eq, %arg1, %c0_i32 : i32
    %1 = arith.extui %0 : i1 to i32
    %c0_i32_0 = arith.constant 0 : i32
    %2 = arith.cmpi ne, %1, %c0_i32_0 : i32
    scf.if %2 {
      %cst_18 = arith.constant 0.000000e+00 : f32
      %23 = vector.broadcast %cst_18 : f32 to vector<256x1xf32>
      %c0_19 = arith.constant 0 : index
      %c0_20 = arith.constant 0 : index
      %24 = vector.load %arg14[%c0_19, %c0_20] : memref<256x1xf32, #tpu.memory_space<vmem>>, vector<256x1xf32>
      tpu.vector_store %arg14[%c0_19, %c0_20], %23 {strides = array<i32>} : memref<256x1xf32, #tpu.memory_space<vmem>>, vector<256x1xf32>,
    } else {
    }
    %c0 = arith.constant 0 : index
    %c0_1 = arith.constant 0 : index
    %3 = vector.load %arg3[%c0, %c0_1] : memref<256x4xf32, #tpu.memory_space<vmem>>, vector<256x4xf32>
    %c0_2 = arith.constant 0 : index
    %c0_3 = arith.constant 0 : index
    %c0_4 = arith.constant 0 : index
    %4 = vector.load %arg2[%c0_2, %c0_3, %c0_4] : memref<1x4x16xf32, #tpu.memory_space<vmem>>, vector<1x4x16xf32>
    %5 = vector.shape_cast %4 : vector<1x4x16xf32> to vector<4x16xf32>
    %cst = arith.constant dense<0.000000e+00> : vector<256x16xf32>
    %6 = tpu.matmul %3, %5, %cst {dimension_numbers = #tpu.dot_dimension_numbers<[1], [0], [0], [1], [0, 0, 1, 1], [], []>} : vector<256x4xf32>, vector<4x16xf32>, vector<256x16xf32> -> vector<256x16xf32>
    %c0_5 = arith.constant 0 : index
    %c0_6 = arith.constant 0 : index
    %7 = vector.load %arg4[%c0_5, %c0_6] : memref<256x1xf32, #tpu.memory_space<vmem>>, vector<256x1xf32>
    %8 = vector.broadcast %7 : vector<256x1xf32> to vector<256x16xf32>
    %9 = arith.addf %6, %8 : vector<256x16xf32>
    %cst_7 = arith.constant 0.000000e+00 : f32
    %10 = vector.broadcast %cst_7 : f32 to vector<256x16xf32>
    %11 = arith.maximumf %9, %10 : vector<256x16xf32>
    %c0_8 = arith.constant 0 : index
    %c0_9 = arith.constant 0 : index
    %c0_10 = arith.constant 0 : index
    %12 = vector.load %arg11[%c0_8, %c0_9, %c0_10] : memref<1x256x16xf32, #tpu.memory_space<vmem>>, vector<1x256x16xf32>
    %13 = vector.shape_cast %12 : vector<1x256x16xf32> to vector<256x16xf32>
    %14 = vector.shape_cast %11 : vector<256x16xf32> to vector<1x256x16xf32>
    tpu.vector_store %arg11[%c0_8, %c0_9, %c0_10], %14 {strides = array<i32>} : memref<1x256x16xf32, #tpu.memory_space<vmem>>, vector<1x256x16xf32>,
    %c0_11 = arith.constant 0 : index
    %c0_12 = arith.constant 0 : index
    %15 = vector.load %arg14[%c0_11, %c0_12] : memref<256x1xf32, #tpu.memory_space<vmem>>, vector<256x1xf32>
    %cst_13 = arith.constant dense<0.000000e+00> : vector<256xf32>
    %16 = vector.multi_reduction <add>, %11, %cst_13 [1] : vector<256x16xf32> to vector<256xf32>
    %17 = vector.shape_cast %16 : vector<256xf32> to vector<256x1xf32>
    %18 = arith.addf %15, %17 : vector<256x1xf32>
    %c0_14 = arith.constant 0 : index
    %c0_15 = arith.constant 0 : index
    %19 = vector.load %arg14[%c0_14, %c0_15] : memref<256x1xf32, #tpu.memory_space<vmem>>, vector<256x1xf32>
    tpu.vector_store %arg14[%c0_14, %c0_15], %18 {strides = array<i32>} : memref<256x1xf32, #tpu.memory_space<vmem>>, vector<256x1xf32>,
    %c0_i32_16 = arith.constant 0 : i32
    %20 = arith.cmpi eq, %arg1, %c0_i32_16 : i32
    %21 = arith.extui %20 : i1 to i32
    %c0_i32_17 = arith.constant 0 : i32
    %22 = arith.cmpi ne, %21, %c0_i32_17 : i32
    scf.if %22 {
      %c0_18 = arith.constant 0 : index
      %c0_19 = arith.constant 0 : index
      %23 = vector.load %arg14[%c0_18, %c0_19] : memref<256x1xf32, #tpu.memory_space<vmem>>, vector<256x1xf32>
      %cst_20 = arith.constant 6.250000e-02 : f32
      %24 = vector.broadcast %cst_20 : f32 to vector<256x1xf32>
      %25 = arith.mulf %23, %24 : vector<256x1xf32>
      %c0_21 = arith.constant 0 : index
      %c0_22 = arith.constant 0 : index
      %c0_23 = arith.constant 0 : index
      %26 = vector.load %arg12[%c0_21, %c0_22, %c0_23] : memref<1x256x1xf32, #tpu.memory_space<vmem>>, vector<1x256x1xf32>
      %27 = vector.shape_cast %26 : vector<1x256x1xf32> to vector<256x1xf32>
      %28 = vector.shape_cast %25 : vector<256x1xf32> to vector<1x256x1xf32>
      tpu.vector_store %arg12[%c0_21, %c0_22, %c0_23], %28 {strides = array<i32>} : memref<1x256x1xf32, #tpu.memory_space<vmem>>, vector<1x256x1xf32>,
      %c0_24 = arith.constant 0 : index
      %c0_25 = arith.constant 0 : index
      %29 = vector.load %arg5[%c0_24, %c0_25] : memref<512x256xf32, #tpu.memory_space<vmem>>, vector<512x256xf32>
      %cst_26 = arith.constant dense<0.000000e+00> : vector<512x1xf32>
      %30 = tpu.matmul %29, %25, %cst_26 {dimension_numbers = #tpu.dot_dimension_numbers<[1], [0], [0], [1], [0, 0, 1, 1], [], []>} : vector<512x256xf32>, vector<256x1xf32>, vector<512x1xf32> -> vector<512x1xf32>
      %c0_27 = arith.constant 0 : index
      %c0_28 = arith.constant 0 : index
      %31 = vector.load %arg6[%c0_27, %c0_28] : memref<512x1xf32, #tpu.memory_space<vmem>>, vector<512x1xf32>
      %32 = arith.addf %30, %31 : vector<512x1xf32>
      %cst_29 = arith.constant 0.000000e+00 : f32
      %33 = vector.broadcast %cst_29 : f32 to vector<512x1xf32>
      %34 = arith.maximumf %32, %33 : vector<512x1xf32>
      %c0_30 = arith.constant 0 : index
      %c0_31 = arith.constant 0 : index
      %35 = vector.load %arg7[%c0_30, %c0_31] : memref<1024x512xf32, #tpu.memory_space<vmem>>, vector<1024x512xf32>
      %cst_32 = arith.constant dense<0.000000e+00> : vector<1024x1xf32>
      %36 = tpu.matmul %35, %34, %cst_32 {dimension_numbers = #tpu.dot_dimension_numbers<[1], [0], [0], [1], [0, 0, 1, 1], [], []>} : vector<1024x512xf32>, vector<512x1xf32>, vector<1024x1xf32> -> vector<1024x1xf32>
      %c0_33 = arith.constant 0 : index
      %c0_34 = arith.constant 0 : index
      %37 = vector.load %arg8[%c0_33, %c0_34] : memref<1024x1xf32, #tpu.memory_space<vmem>>, vector<1024x1xf32>
      %38 = arith.addf %36, %37 : vector<1024x1xf32>
      %cst_35 = arith.constant 0.000000e+00 : f32
      %39 = vector.broadcast %cst_35 : f32 to vector<1024x1xf32>
      %40 = arith.maximumf %38, %39 : vector<1024x1xf32>
      %c0_36 = arith.constant 0 : index
      %c0_37 = arith.constant 0 : index
      %41 = vector.load %arg9[%c0_36, %c0_37] : memref<4x1024xf32, #tpu.memory_space<vmem>>, vector<4x1024xf32>
      %cst_38 = arith.constant dense<0.000000e+00> : vector<4x1xf32>
      %42 = tpu.matmul %41, %40, %cst_38 {dimension_numbers = #tpu.dot_dimension_numbers<[1], [0], [0], [1], [0, 0, 1, 1], [], []>} : vector<4x1024xf32>, vector<1024x1xf32>, vector<4x1xf32> -> vector<4x1xf32>
      %c0_39 = arith.constant 0 : index
      %c0_40 = arith.constant 0 : index
      %43 = vector.load %arg10[%c0_39, %c0_40] : memref<4x1xf32, #tpu.memory_space<vmem>>, vector<4x1xf32>
      %44 = arith.addf %42, %43 : vector<4x1xf32>
      %c0_41 = arith.constant 0 : index
      %c0_42 = arith.constant 0 : index
      %c0_43 = arith.constant 0 : index
      %45 = vector.load %arg13[%c0_41, %c0_42, %c0_43] : memref<1x4x1xf32, #tpu.memory_space<vmem>>, vector<1x4x1xf32>
      %46 = vector.shape_cast %45 : vector<1x4x1xf32> to vector<4x1xf32>
      %47 = vector.shape_cast %44 : vector<4x1xf32> to vector<1x4x1xf32>
      tpu.vector_store %arg13[%c0_41, %c0_42, %c0_43], %47 {strides = array<i32>} : memref<1x4x1xf32, #tpu.memory_space<vmem>>, vector<1x4x1xf32>,
    } else {
    }
    return
  }
  func.func @transform_0(%arg0: i32, %arg1: i32) -> (i32, i32, i32) {
    %c0_i32 = arith.constant 0 : i32
    %c0_i32_0 = arith.constant 0 : i32
    return %arg0, %c0_i32, %arg1 : i32, i32, i32
  }
  func.func @transform_1(%arg0: i32, %arg1: i32) -> (i32, i32) {
    %c0_i32 = arith.constant 0 : i32
    %c0_i32_0 = arith.constant 0 : i32
    %c0_i32_1 = arith.constant 0 : i32
    return %c0_i32, %c0_i32_0 : i32, i32
  }
  func.func @transform_2(%arg0: i32, %arg1: i32) -> (i32, i32) {
    %c0_i32 = arith.constant 0 : i32
    %c0_i32_0 = arith.constant 0 : i32
    %c0_i32_1 = arith.constant 0 : i32
    return %c0_i32, %c0_i32_0 : i32, i32
  }
  func.func @transform_3(%arg0: i32, %arg1: i32) -> (i32, i32) {
    %c0_i32 = arith.constant 0 : i32
    %c0_i32_0 = arith.constant 0 : i32
    %c0_i32_1 = arith.constant 0 : i32
    return %c0_i32, %c0_i32_0 : i32, i32
  }
  func.func @transform_4(%arg0: i32, %arg1: i32) -> (i32, i32) {
    %c0_i32 = arith.constant 0 : i32
    %c0_i32_0 = arith.constant 0 : i32
    %c0_i32_1 = arith.constant 0 : i32
    return %c0_i32, %c0_i32_0 : i32, i32
  }
  func.func @transform_5(%arg0: i32, %arg1: i32) -> (i32, i32) {
    %c0_i32 = arith.constant 0 : i32
    %c0_i32_0 = arith.constant 0 : i32
    %c0_i32_1 = arith.constant 0 : i32
    return %c0_i32, %c0_i32_0 : i32, i32
  }
  func.func @transform_6(%arg0: i32, %arg1: i32) -> (i32, i32) {
    %c0_i32 = arith.constant 0 : i32
    %c0_i32_0 = arith.constant 0 : i32
    %c0_i32_1 = arith.constant 0 : i32
    return %c0_i32, %c0_i32_0 : i32, i32
  }
  func.func @transform_7(%arg0: i32, %arg1: i32) -> (i32, i32) {
    %c0_i32 = arith.constant 0 : i32
    %c0_i32_0 = arith.constant 0 : i32
    %c0_i32_1 = arith.constant 0 : i32
    return %c0_i32, %c0_i32_0 : i32, i32
  }
  func.func @transform_8(%arg0: i32, %arg1: i32) -> (i32, i32) {
    %c0_i32 = arith.constant 0 : i32
    %c0_i32_0 = arith.constant 0 : i32
    %c0_i32_1 = arith.constant 0 : i32
    return %c0_i32, %c0_i32_0 : i32, i32
  }
  func.func @transform_9(%arg0: i32, %arg1: i32) -> (i32, i32, i32) {
    %c0_i32 = arith.constant 0 : i32
    %c0_i32_0 = arith.constant 0 : i32
    return %arg0, %c0_i32, %arg1 : i32, i32, i32
  }
  func.func @transform_10(%arg0: i32, %arg1: i32) -> (i32, i32, i32) {
    %c0_i32 = arith.constant 0 : i32
    %c0_i32_0 = arith.constant 0 : i32
    %c0_i32_1 = arith.constant 0 : i32
    return %arg0, %c0_i32, %c0_i32_0 : i32, i32, i32
  }
  func.func @transform_11(%arg0: i32, %arg1: i32) -> (i32, i32, i32) {
    %c0_i32 = arith.constant 0 : i32
    %c0_i32_0 = arith.constant 0 : i32
    %c0_i32_1 = arith.constant 0 : i32
    return %arg0, %c0_i32, %c0_i32_0 : i32, i32, i32
  }
}

</mosaic_0001>

<bundles_post_ra>
// kernel: conv_pool_forward.1
= control target key start
LH: loop header
LB: loop body
LE: loop exit
PB: predicated region body
PF: predicated region fallthrough
CT: control target
= control target key end

     0   :  { %s7668_s0 = inlined_call_operand.hbm [shape: f32[2,4,16], index: 0, kind: input, shape index: {}]   ;;  %s7669_s1 = inlined_call_operand.vmem [shape: f32[256,4], index: 1, kind: input, shape index: {}]   ;;  %s7670_s2 = inlined_call_operand.vmem [shape: f32[256,1], index: 2, kind: input, shape index: {}]   ;;  %s7671_s3 = inlined_call_operand.hbm [shape: f32[512,256], index: 3, kind: input, shape index: {}]   ;;  %s7672_s4 = inlined_call_operand.vmem [shape: f32[512,1], index: 4, kind: input, shape index: {}]   ;;  %s7673_s5 = inlined_call_operand.hbm [shape: f32[1024,512], index: 5, kind: input, shape index: {}]   ;;  %s7674_s6 = inlined_call_operand.vmem [shape: f32[1024,1], index: 6, kind: input, shape index: {}]   ;;  %s7675_s7 = inlined_call_operand.hbm [shape: f32[4,1024], index: 7, kind: input, shape index: {}]   ;;  %s7676_s8 = inlined_call_operand.vmem [shape: f32[4,1], index: 8, kind: input, shape index: {}]   ;;  %s7677_s9 = inlined_call_operand.vmem [shape: f32[2,256,16], index: 9, kind: output, shape index: {0}]   ;;  %s7678_s10 = inlined_call_operand.vmem [shape: f32[2,256,1], index: 10, kind: output, shape index: {1}]   ;;  %s7679_s11 = inlined_call_operand.vmem [shape: f32[2,4,1], index: 11, kind: output, shape index: {2}]  }
   0x1   :  { %7686 = sst [smem:[#allocation13_spill]] %s7671_s3 }
   0x2   :  { %7687 = sst [smem:[#allocation14_spill]] %s7672_s4 }
   0x3   :  { %7688 = sst [smem:[#allocation15_spill]] %s7674_s6 }
   0x4   :  { %7689 = sst [smem:[#allocation16_spill]] %s7676_s8 }
   0x5   :  { %7690 = sst [smem:[#allocation17_spill]] %s7679_s11 }
   0x6   :  { %17 = vsyncpa [#allocation4], 0 }
   0x7   :  { %19 = vsyncpa [#allocation4 + $0x1], 0 }
   0x8   :  { %20 = vsyncpa [#allocation6], 0 }
   0x9   :  { %21 = vsyncpa [#allocation9], 0  ;;  %s5966_s17 = smov 0   ;;  %s5968_s18 = smov 0  }
   0xa   :  { %s5970_s19 = smov 0   ;;  %s5972_s20 = smov 0  }
   0xb   :  { %s5974_s21 = smov 0   ;;  %s5976_s22 = smov 0  }
   0xc LB: > { %s4738_s23 = sadd.s32 4294967295, %s5893_s22   ;;  %p61_p0 = scmp.ne.s32.totalorder %s5877_s18, %s5873_s17  ;;  %s5893_s22 = sphi %s5976_s22, %s27_s22   ;;  %s5889_s21 = sphi %s5974_s21, %s7710_s21   ;;  %s5885_s20 = sphi %s5972_s20, %s7709_s20   ;;  %s5881_s19 = sphi %s5970_s19, %s7708_s19   ;;  %s5877_s18 = sphi %s5968_s18, %s7707_s18   ;;  %s5873_s17 = sphi %s5966_s17, %s7706_s17  }
   0xd   : > { %p5996_p1 = scmp.eq.s32.totalorder %s4738_s23, 0  ;;  %p4740_p2 = scmp.ge.s32.totalorder %s5893_s22, 1 }
   0xe   : > { %p320_p3 = scmp.lt.s32.totalorder %s5893_s22, 3  ;;  %s5895_s27 = smov [#allocation5]  }
   0xf   : > { %s7691_s24 = scalar_select %p5996_p1, 1, 0 }
  0x10   : > { %p6004_p4 = por %p5996_p1, %p61_p0  ;;  %p6008_p5 = pnand %p4740_p2, %p320_p3 }
  0x11   : > { %s338_s28 = sshll.u32 %s5895_s27, 4  ;;  %s5896_s30 = smov [#allocation7]   ;;  %s339_s28 = int_to_ptr.vmem [resolvable:$true] %s338_s28 }
  0x12   : > { %s7692_s25 = scalar_select %p6004_p4, 1, 0 }
  0x13   : > { %s7693_s26 = scalar_select %p6008_p5, 1, 0 }
  0x14   : > { %p5636_p6 = pneg %p6008_p5  ;;  %s354_s12 = sshll.u32 %s5896_s30, 4  ;;  %s6020_s12 = int_to_ptr.vmem [resolvable:$true] %s354_s12 }
  0x15   : > { %s7695_s3 = sld [smem:[#allocation13_spill]] }
  0x16   : > { %p6016_p7 = pnand %p5636_p6, %p5996_p1 }
  0x18   : > { %p6030_p9 = pneg %p6016_p7 }
  0x1b   : > { %s5721_s15 = scalar_lea.hbm %s7695_s3, 16384 }
  0x1c   : > { %p5722_p8 = scmp.ne.s32.totalorder %s7695_s3, %s5721_s15  ;;  %p5728_p12 = scmp.lt.u32.totalorder %s5721_s15, %s7695_s3 }
  0x1e   : > { %p5724_p10 = pnand %p6030_p9, %p5722_p8 }
  0x20   : > { %p5725_p11 = pneg %p5724_p10 }
  0x22   : > { %p5730_p13 = pnand %p5728_p12, %p5725_p11 }
  0x24   : > { %5733 = shalt.err (!%p5730_p13)
}
  0x25   : > { %s5734_s13 = scalar_lea.vmem %s339_s28, 16384  ;;  %p5742_p6 = scmp.lt.s32.totalorder %s339_s28, %s339_s28 }
  0x26   : > { %p5735_p0 = scmp.ne.s32.totalorder %s339_s28, %s5734_s13  ;;  %p5743_p1 = scmp.lt.s32.totalorder %s5734_s13, %s5734_s13 }
  0x28   : > { %p5737_p2 = pnand %p5735_p0, %p6030_p9  ;;  %p5744_p4 = por %p5743_p1, %p5742_p6 }
  0x2a   : > { %p5738_p3 = pneg %p5737_p2 }
  0x2c   : > { %p5745_p5 = pnand %p5744_p4, %p5738_p3 }
  0x2e   : > { %5748 = shalt.err (!%p5745_p5)
}
  0x2f   : > { %s5897_s14 = smov 256   ;;  %s5898_s16 = smov 16  }
  0x30   : > { %5639 = dma.hbm_to_vmem [thread:$0]  (!%p6016_p7), %s7695_s3, 16384, %s339_s28, [#allocation6], %s5897_s14, %s5897_s14, %s5898_s16  }
  0x31   : > { %s5749_s11 = scalar_lea.hbm %s7673_s5, 65536 }
  0x32   : > { %p5750_p8 = scmp.ne.s32.totalorder %s7673_s5, %s5749_s11  ;;  %p5756_p5 = scmp.lt.u32.totalorder %s5749_s11, %s7673_s5 }
  0x34   : > { %p5752_p1 = pnand %p5750_p8, %p6030_p9 }
  0x36   : > { %p5753_p4 = pneg %p5752_p1 }
  0x38   : > { %p5758_p10 = pnand %p5756_p5, %p5753_p4 }
  0x3a   : > { %5761 = shalt.err (!%p5758_p10)
}
  0x3b   : > { %s5762_s28 = scalar_lea.vmem %s6020_s12, 65536  ;;  %p5770_p0 = scmp.lt.s32.totalorder %s6020_s12, %s6020_s12 }
  0x3c   : > { %p5763_p11 = scmp.ne.s32.totalorder %s6020_s12, %s5762_s28  ;;  %p5771_p2 = scmp.lt.s32.totalorder %s5762_s28, %s5762_s28 }
  0x3e   : > { %p5765_p12 = pnand %p5763_p11, %p6030_p9  ;;  %p5772_p3 = por %p5771_p2, %p5770_p0 }
  0x40   : > { %p5766_p13 = pneg %p5765_p12 }
  0x42   : > { %p5773_p6 = pnand %p5772_p3, %p5766_p13 }
  0x44   : > { %5776 = shalt.err (!%p5773_p6)
}
  0x45   : > { %s5899_s6 = smov 512   ;;  %s5900_s4 = smov 32  }
  0x46   : > { %5642 = dma.hbm_to_vmem [thread:$0]  (!%p6016_p7), %s7673_s5, 65536, %s6020_s12, [#allocation6], %s5899_s6, %s5899_s6, %s5900_s4  }
  0x47   : > { %s5901_s14 = smov [#allocation8]   ;;  %s5777_s27 = scalar_lea.hbm %s7675_s7, 512 }
  0x48   : > { %s371_s16 = sshll.u32 %s5901_s14, 4  ;;  %p5778_p8 = scmp.ne.s32.totalorder %s7675_s7, %s5777_s27  ;;  %s372_s16 = int_to_ptr.vmem [resolvable:$true] %s371_s16 }
  0x49   : > { %p5784_p5 = scmp.lt.u32.totalorder %s5777_s27, %s7675_s7 }
  0x4a   : > { %p5780_p1 = pnand %p5778_p8, %p6030_p9 }
  0x4c   : > { %p5781_p4 = pneg %p5780_p1 }
  0x4e   : > { %p5786_p10 = pnand %p5784_p5, %p5781_p4 }
  0x50   : > { %5789 = shalt.err (!%p5786_p10)
}
  0x51   : > { %s5790_s12 = scalar_lea.vmem %s372_s16, 512  ;;  %p5798_p0 = scmp.lt.s32.totalorder %s372_s16, %s372_s16 }
  0x52   : > { %p5791_p11 = scmp.ne.s32.totalorder %s372_s16, %s5790_s12  ;;  %p5799_p2 = scmp.lt.s32.totalorder %s5790_s12, %s5790_s12 }
  0x54   : > { %p5793_p12 = pnand %p5791_p11, %p6030_p9  ;;  %p5800_p3 = por %p5799_p2, %p5798_p0 }
  0x56   : > { %p5794_p13 = pneg %p5793_p12 }
  0x58   : > { %p5801_p6 = pnand %p5800_p3, %p5794_p13 }
  0x5a   : > { %5804 = shalt.err (!%p5801_p6)
}
  0x5b   : > { %5645 = dma.hbm_to_vmem [thread:$0]  (!%p6016_p7), %s7675_s7, 512, %s372_s16, [#allocation9]  }
  0x5c   : > { %s39_s3 = sadd.s32 1, %s5889_s21  ;;  %s48_s23 = sadd.s32 1, %s5881_s19 }
  0x5d   : > { %p41_p9 = scmp.ge.s32.totalorder %s39_s3, 2  ;;  %p55_p8 = scmp.ne.s32.totalorder %s5881_s19, %s5877_s18 }
  0x5e   : > { %p56_p1 = scmp.eq.s32.totalorder %s5893_s22, 0  ;;  %p5653_p5 = scmp.lt.s32.totalorder %s5893_s22, 2 }
  0x5f   : > { %s7712_s3 = smov (%p41_p9, %s39_s3), 0  ;;  %s385_s8 = sand.u32 1, %s5881_s19  }
  0x60   : > { %p57_p4 = por %p56_p1, %p55_p8  ;;  %s43_s29 = ssub.s32 %s5889_s21, %s7712_s3 }
  0x61   : > { %p46_p10 = scmp.eq.s32.totalorder %s43_s29, 0  ;;  %s4745_s11 = sshll.u32 %s385_s8, 2 }
  0x62   : > { %s4746_s14 = sshll.u32 %s5889_s21, 6  ;;  %s389_s30 = scalar_lea.vmem [#allocation3], %s4745_s11 }
  0x63   : > { %s6100_s17 = scalar_select %p46_p10, %s5881_s19, %s48_s23  }
  0x64   : > { %s6105_s16 = scalar_lea.hbm %s7668_s0, %s4746_s14  ;;  %s397_s13 = sshll.u32 %s389_s30, 4  ;;  %s6111_s13 = int_to_ptr.vmem [resolvable:$true] %s397_s13 }
  0x65   : > { %p6107_p7 = pnand %p5653_p5, %p57_p4  ;;  %s386_s12 = scalar_lea.sflag [#allocation4], %s385_s8 }
  0x66   : > { %s5805_s6 = scalar_lea.hbm %s6105_s16, 64  ;;  %s5810_s29 = scalar_lea.hbm %s7668_s0, 128 }
  0x67   : > { %p5806_p11 = scmp.ne.s32.totalorder %s6105_s16, %s5805_s6  ;;  %p5807_p12 = pneg %p6107_p7 }
  0x68   : > { %p5811_p2 = scmp.lt.u32.totalorder %s6105_s16, %s7668_s0  ;;  %p5812_p3 = scmp.lt.u32.totalorder %s5810_s29, %s5805_s6 }
  0x69   : > { %p5808_p13 = pnand %p5807_p12, %p5806_p11  ;;  %p5814_p9 = scmp.lt.u32.totalorder %s5805_s6, %s6105_s16 }
  0x6a   : > { %p5813_p6 = por %p5812_p3, %p5811_p2 }
  0x6b   : > { %p5809_p0 = pneg %p5808_p13 }
  0x6c   : > { %p5815_p8 = por %p5814_p9, %p5813_p6 }
  0x6e   : > { %p5816_p1 = pnand %p5815_p8, %p5809_p0 }
  0x70   : > { %5819 = shalt.err (!%p5816_p1)
}
  0x71   : > { %s5820_s8 = scalar_lea.vmem %s6111_s13, 64  ;;  %s5902_s15 = smov [#allocation3]  }
  0x72   : > { %p5821_p4 = scmp.ne.s32.totalorder %s6111_s13, %s5820_s8  ;;  %s5825_s27 = sshll.u32 %s5902_s15, 4  ;;  %s5826_s27 = int_to_ptr.vmem [resolvable:$false] %s5825_s27 }
  0x73   : > { %s5827_s30 = scalar_lea.vmem %s5826_s27, 128  ;;  %p5828_p11 = scmp.lt.s32.totalorder %s6111_s13, %s5826_s27 }
  0x74   : > { %p5823_p5 = pnand %p5821_p4, %p5807_p12  ;;  %p5829_p13 = scmp.lt.s32.totalorder %s5827_s30, %s5820_s8 }
  0x76   : > { %p5824_p10 = pneg %p5823_p5  ;;  %p5830_p2 = por %p5829_p13, %p5828_p11 }
  0x78   : > { %p5831_p3 = pnand %p5830_p2, %p5824_p10 }
  0x7a   : > { %5834 = shalt.err (!%p5831_p3)
}
  0x7b   : > { %5649 = dma.hbm_to_vmem [thread:$0]  (!%p6107_p7), %s6105_s16, 64, %s6111_s13, %s386_s12  }
  0x7c   : > { %p7698_p0 = scmp.ne.s32.totalorder %s7693_s26, 0 }
  0x7d   : > { %s408_s6 = sand.u32 (!%p7698_p0), 1, %s5877_s18   ;;  %p7699_p12 = scmp.ne.s32.totalorder (!%p7698_p0), %s7692_s25, 0 }
  0x7e   : > { %406 = sbr.rel (%p7698_p0) target bundleno = 2057 (0x809), region = 56  ;;  %s4748_s4 = sshll.u32 (!%p7698_p0), %s408_s6, 2 }
  0x7f   : > { %s409_s23 = scalar_lea.sflag (!%p7698_p0), [#allocation4], %s408_s6  ;;  %s412_s29 = scalar_lea.vmem (!%p7698_p0), [#allocation3], %s4748_s4 }
  0x85   : > { %5860 = dma.done.wait (%p7699_p12), %s409_s23, 64  }
  0x86   : > { %5862 = vsyncadd (%p7699_p12), %s409_s23, 4294967232  ;;  %p7700_p6 = scmp.ne.s32.totalorder %s7691_s24, 0 }
  0x88   : > { %5864 = dma.done.wait (%p7700_p6), [#allocation6], 81920  }
  0x89   : > { %5866 = vsyncadd (%p7700_p6), [#allocation6], 4294885376 }
  0x8a   : > { %5868 = dma.done.wait (%p7700_p6), [#allocation9], 512  }
  0x8b   : > { %5870 = vsyncadd (%p7700_p6), [#allocation9], 4294966784  ;;  %v5903_v0 = vmov 0   ;;  %vm851_vm0 = vcmask 1043456   ;;  %vm754_vm1 = vcmask 31744   ;;  %v529_v2 = vld [vmem:[%s7669_s1] sm:$0xff] }
  0x8c   : > { %5716 = vset.pattern.permute.xlu1 %v5903_v0  ;;  %5715 = vset.pattern.permute.xlu0 %v5903_v0  ;;  %v561_v1 = vld [vmem:[%s412_s29] sm:$0xf]  ;;  %v530_v3 = vld [vmem:[%s7669_s1 + $0x8] sm:$0xff]  ;;  %v531_v4 = vld [vmem:[%s7669_s1 + $0x10] sm:$0xff]  ;;  %vm496_vm2 = vcmask 7168   ;;  %p475_p7 = scmp.lt.s32.totalorder %s5885_s20, 1 }
  0x8d   : > { %4967 = vmatprep.subr.msk.mxu1 %vm851_vm0, %v561_v1  ;;  %4969 = vmatprep.mubr.msk.f32.mxu1 %vm754_vm1, %v529_v2  ;;  %v532_v5 = vld [vmem:[%s7669_s1 + $0x18] sm:$0xff]  ;;  %v533_v6 = vld [vmem:[%s7669_s1 + $0x20] sm:$0xff]  ;;  %v564_v7 = vld [vmem:[%s7670_s2 + $0x10] sm:$0xff]  ;;  %v5904_v2 = vmov 0.0   ;;  %vm1112_vm3 = vcmask 130048   ;;  %s7701_s26 = sld [smem:[#allocation14_spill]] }
  0x8e   : > { %4968 = vmatpush3.msk.msra.mxu1 %vm851_vm0, %v561_v1  ;;  %v562_v8 = vld [vmem:[%s7670_s2] sm:$0xff]  ;;  %606 = vperm.xlu1 %5716, %v564_v7   ;;  %v565_v9 = vld [vmem:[%s7670_s2 + $0x18] sm:$0xff]  ;;  %v563_v10 = vld [vmem:[%s7670_s2 + $0x8] sm:$0xff]  ;;  %498 = vst.msk [vmem:[#allocation2 + $0x8] sm:$0xff] %vm496_vm2, %v5904_v2  ;;  %s7714_s20 = smov (!%p475_p7, %s5885_s20), 1  ;;  %s7702_s16 = sld [smem:[#allocation15_spill]] }
  0x8f   : > { %4970 = vmatmul.mubr.msk.f32.vlgmr.msra.gmra.mrb[0].mxu1 %vm754_vm1, %v530_v3  ;;  %596 = vperm.xlu0 %5715, %v562_v8   ;;  %v534_v11 = vld [vmem:[%s7669_s1 + $0x28] sm:$0xff]  ;;  %v535_v12 = vld [vmem:[%s7669_s1 + $0x30] sm:$0xff]  ;;  %v566_v14 = vld [vmem:[%s7670_s2 + $0x20] sm:$0xff]  ;;  %497 = vst.msk [vmem:[#allocation2] sm:$0xff] %vm496_vm2, %v5904_v2  ;;  %s4792_s8 = sshll.u32 %s7714_s20, 8  ;;  %s7703_s13 = sld [smem:[#allocation16_spill]] }
  0x90   : > { %4972 = vmatprep.mubr.msk.f32.mxu1 %vm754_vm1, %v531_v4  ;;  %v567_v13 = vld [vmem:[%s7670_s2 + $0x28] sm:$0xff]  ;;  %v536_v15 = vld [vmem:[%s7669_s1 + $0x38] sm:$0xff]  ;;  %v537_v16 = vld [vmem:[%s7669_s1 + $0x40] sm:$0xff]  ;;  %499 = vst.msk [vmem:[#allocation2 + $0x10] sm:$0xff] %vm496_vm2, %v5904_v2  ;;  %s6423_s30 = scalar_lea.vmem %s7677_s9, %s4792_s8  ;;  %s6539_s23 = scalar_lea.vmem %s7678_s10, %s4792_s8  ;;  %vm4553_vm4 = vcmask 3072  }
  0x91   : > { %v569_v17 = vld [vmem:[%s7670_s2 + $0x38] sm:$0xff]  ;;  %v568_v18 = vld [vmem:[%s7670_s2 + $0x30] sm:$0xff]  ;;  %v538_v19 = vld [vmem:[%s7669_s1 + $0x48] sm:$0xff]  ;;  %500 = vst.msk [vmem:[#allocation2 + $0x18] sm:$0xff] %vm496_vm2, %v5904_v2  ;;  %s4756_s24 = sshll.u32 %s7714_s20, 2  ;;  %s7704_s14 = sld [smem:[#allocation17_spill]] }
  0x92   : > { %611 = vperm.xlu1 %5716, %v565_v9   ;;  %v539_v20 = vld [vmem:[%s7669_s1 + $0x50] sm:$0xff]  ;;  %v571_v21 = vld [vmem:[%s7670_s2 + $0x48] sm:$0xff]  ;;  %v570_v22 = vld [vmem:[%s7670_s2 + $0x40] sm:$0xff]  ;;  %501 = vst.msk [vmem:[#allocation2 + $0x20] sm:$0xff] %vm496_vm2, %v5904_v2 }
  0x93   : > { %4973 = vmatmul.mubr.msk.f32.gmra.mrb[2].mxu1 %vm754_vm1, %v532_v5  ;;  %601 = vperm.xlu0 %5715, %v563_v10   ;;  %v540_v23 = vld [vmem:[%s7669_s1 + $0x58] sm:$0xff]  ;;  %v541_v24 = vld [vmem:[%s7669_s1 + $0x60] sm:$0xff]  ;;  %v572_v26 = vld [vmem:[%s7670_s2 + $0x50] sm:$0xff]  ;;  %502 = vst.msk [vmem:[#allocation2 + $0x28] sm:$0xff] %vm496_vm2, %v5904_v2 }
  0x94   : > { %4975 = vmatprep.mubr.msk.f32.mxu1 %vm754_vm1, %v533_v6  ;;  %v573_v25 = vld [vmem:[%s7670_s2 + $0x58] sm:$0xff]  ;;  %v542_v27 = vld [vmem:[%s7669_s1 + $0x68] sm:$0xff]  ;;  %v543_v28 = vld [vmem:[%s7669_s1 + $0x70] sm:$0xff]  ;;  %503 = vst.msk [vmem:[#allocation2 + $0x30] sm:$0xff] %vm496_vm2, %v5904_v2 }
  0x95   : > { %v575_v29 = vld [vmem:[%s7670_s2 + $0x68] sm:$0xff]  ;;  %v574_v30 = vld [vmem:[%s7670_s2 + $0x60] sm:$0xff]  ;;  %v544_v31 = vld [vmem:[%s7669_s1 + $0x78] sm:$0xff]  ;;  %504 = vst.msk [vmem:[#allocation2 + $0x38] sm:$0xff] %vm496_vm2, %v5904_v2 }
  0x96   : > { %621 = vperm.xlu1 %5716, %v567_v13   ;;  %v545_v32 = vld [vmem:[%s7669_s1 + $0x80] sm:$0xff]  ;;  %v577_v33 = vld [vmem:[%s7670_s2 + $0x78] sm:$0xff]  ;;  %v576_v34 = vld [vmem:[%s7670_s2 + $0x70] sm:$0xff]  ;;  %505 = vst.msk [vmem:[#allocation2 + $0x40] sm:$0xff] %vm496_vm2, %v5904_v2 }
  0x97   : > { %4976 = vmatmul.mubr.msk.f32.gmra.mrb[4].mxu1 %vm754_vm1, %v534_v11  ;;  %616 = vperm.xlu0 %5715, %v566_v14   ;;  %v546_v35 = vld [vmem:[%s7669_s1 + $0x88] sm:$0xff]  ;;  %v547_v36 = vld [vmem:[%s7669_s1 + $0x90] sm:$0xff]  ;;  %v578_v38 = vld [vmem:[%s7670_s2 + $0x80] sm:$0xff]  ;;  %506 = vst.msk [vmem:[#allocation2 + $0x48] sm:$0xff] %vm496_vm2, %v5904_v2  ;;  %s491_s8 = scalar_lea.vmem %s7704_s14, %s4756_s24 }
  0x98   : > { %4978 = vmatprep.mubr.msk.f32.mxu1 %vm754_vm1, %v535_v12  ;;  %v579_v37 = vld [vmem:[%s7670_s2 + $0x88] sm:$0xff]  ;;  %v548_v39 = vld [vmem:[%s7669_s1 + $0x98] sm:$0xff]  ;;  %v549_v40 = vld [vmem:[%s7669_s1 + $0xa0] sm:$0xff]  ;;  %507 = vst.msk [vmem:[#allocation2 + $0x50] sm:$0xff] %vm496_vm2, %v5904_v2 }
  0x99   : > { %v581_v41 = vld [vmem:[%s7670_s2 + $0x98] sm:$0xff]  ;;  %v580_v42 = vld [vmem:[%s7670_s2 + $0x90] sm:$0xff]  ;;  %v550_v43 = vld [vmem:[%s7669_s1 + $0xa8] sm:$0xff]  ;;  %508 = vst.msk [vmem:[#allocation2 + $0x58] sm:$0xff] %vm496_vm2, %v5904_v2 }
  0x9a   : > { %631 = vperm.xlu1 %5716, %v569_v17   ;;  %v551_v44 = vld [vmem:[%s7669_s1 + $0xb0] sm:$0xff]  ;;  %v583_v45 = vld [vmem:[%s7670_s2 + $0xa8] sm:$0xff]  ;;  %v582_v46 = vld [vmem:[%s7670_s2 + $0xa0] sm:$0xff]  ;;  %509 = vst.msk [vmem:[#allocation2 + $0x60] sm:$0xff] %vm496_vm2, %v5904_v2 }
  0x9b   : > { %4979 = vmatmul.mubr.msk.f32.gmra.mrb[6].mxu1 %vm754_vm1, %v536_v15  ;;  %626 = vperm.xlu0 %5715, %v568_v18   ;;  %v552_v47 = vld [vmem:[%s7669_s1 + $0xb8] sm:$0xff]  ;;  %v553_v48 = vld [vmem:[%s7669_s1 + $0xc0] sm:$0xff]  ;;  %v584_v50 = vld [vmem:[%s7670_s2 + $0xb0] sm:$0xff]  ;;  %510 = vst.msk [vmem:[#allocation2 + $0x68] sm:$0xff] %vm496_vm2, %v5904_v2 }
  0x9c   : > { %4981 = vmatprep.mubr.msk.f32.mxu1 %vm754_vm1, %v537_v16  ;;  %v585_v49 = vld [vmem:[%s7670_s2 + $0xb8] sm:$0xff]  ;;  %v554_v51 = vld [vmem:[%s7669_s1 + $0xc8] sm:$0xff]  ;;  %v555_v52 = vld [vmem:[%s7669_s1 + $0xd0] sm:$0xff]  ;;  %511 = vst.msk [vmem:[#allocation2 + $0x70] sm:$0xff] %vm496_vm2, %v5904_v2 }
  0x9d   : > { %v587_v53 = vld [vmem:[%s7670_s2 + $0xc8] sm:$0xff]  ;;  %v586_v54 = vld [vmem:[%s7670_s2 + $0xc0] sm:$0xff]  ;;  %v556_v55 = vld [vmem:[%s7669_s1 + $0xd8] sm:$0xff]  ;;  %512 = vst.msk [vmem:[#allocation2 + $0x78] sm:$0xff] %vm496_vm2, %v5904_v2 }
  0x9e   : > { %641 = vperm.xlu1 %5716, %v571_v21   ;;  %v557_v56 = vld [vmem:[%s7669_s1 + $0xe0] sm:$0xff]  ;;  %v589_v57 = vld [vmem:[%s7670_s2 + $0xd8] sm:$0xff]  ;;  %v588_v58 = vld [vmem:[%s7670_s2 + $0xd0] sm:$0xff]  ;;  %513 = vst.msk [vmem:[#allocation2 + $0x80] sm:$0xff] %vm496_vm2, %v5904_v2 }
  0x9f   : > { %4982 = vmatmul.mubr.msk.f32.gmra.mrb[8].mxu1 %vm754_vm1, %v538_v19  ;;  %636 = vperm.xlu0 %5715, %v570_v22   ;;  %v558_v59 = vld [vmem:[%s7669_s1 + $0xe8] sm:$0xff]  ;;  %v559_v60 = vld [vmem:[%s7669_s1 + $0xf0] sm:$0xff]  ;;  %v590_v62 = vld [vmem:[%s7670_s2 + $0xe0] sm:$0xff]  ;;  %514 = vst.msk [vmem:[#allocation2 + $0x88] sm:$0xff] %vm496_vm2, %v5904_v2 }
  0xa0   : > { %4984 = vmatprep.mubr.msk.f32.mxu1 %vm754_vm1, %v539_v20  ;;  %v591_v61 = vld [vmem:[%s7670_s2 + $0xe8] sm:$0xff]  ;;  %v560_v63 = vld [vmem:[%s7669_s1 + $0xf8] sm:$0xff]  ;;  %v592_v1 = vld [vmem:[%s7670_s2 + $0xf0] sm:$0xff]  ;;  %515 = vst.msk [vmem:[#allocation2 + $0x90] sm:$0xff] %vm496_vm2, %v5904_v2 }
  0xa1   : > { %v593_v0 = vld [vmem:[%s7670_s2 + $0xf8] sm:$0xff]  ;;  %516 = vst.msk [vmem:[#allocation2 + $0x98] sm:$0xff] %vm496_vm2, %v5904_v2  ;;  %517 = vst.msk [vmem:[#allocation2 + $0xa0] sm:$0xff] %vm496_vm2, %v5904_v2 }
  0xa2   : > { %651 = vperm.xlu1 %5716, %v573_v25   ;;  %518 = vst.msk [vmem:[#allocation2 + $0xa8] sm:$0xff] %vm496_vm2, %v5904_v2  ;;  %519 = vst.msk [vmem:[#allocation2 + $0xb0] sm:$0xff] %vm496_vm2, %v5904_v2 }
  0xa3   : > { %4985 = vmatmul.mubr.msk.f32.gmra.mrb[10].mxu1 %vm754_vm1, %v540_v23  ;;  %646 = vperm.xlu0 %5715, %v572_v26   ;;  %520 = vst.msk [vmem:[#allocation2 + $0xb8] sm:$0xff] %vm496_vm2, %v5904_v2  ;;  %521 = vst.msk [vmem:[#allocation2 + $0xc0] sm:$0xff] %vm496_vm2, %v5904_v2 }
  0xa4   : > { %4987 = vmatprep.mubr.msk.f32.mxu1 %vm754_vm1, %v541_v24  ;;  %522 = vst.msk [vmem:[#allocation2 + $0xc8] sm:$0xff] %vm496_vm2, %v5904_v2  ;;  %523 = vst.msk [vmem:[#allocation2 + $0xd0] sm:$0xff] %vm496_vm2, %v5904_v2 }
  0xa5   : > { %524 = vst.msk [vmem:[#allocation2 + $0xd8] sm:$0xff] %vm496_vm2, %v5904_v2  ;;  %525 = vst.msk [vmem:[#allocation2 + $0xe0] sm:$0xff] %vm496_vm2, %v5904_v2 }
  0xa6   : > { %661 = vperm.xlu1 %5716, %v575_v29   ;;  %526 = vst.msk [vmem:[#allocation2 + $0xe8] sm:$0xff] %vm496_vm2, %v5904_v2  ;;  %527 = vst.msk [vmem:[#allocation2 + $0xf0] sm:$0xff] %vm496_vm2, %v5904_v2 }
  0xa7   : > { %4988 = vmatmul.mubr.msk.f32.gmra.mrb[12].mxu1 %vm754_vm1, %v542_v27  ;;  %656 = vperm.xlu0 %5715, %v574_v30   ;;  %528 = vst.msk [vmem:[#allocation2 + $0xf8] sm:$0xff] %vm496_vm2, %v5904_v2 }
  0xa8   : > { %4990 = vmatprep.mubr.msk.f32.mxu1 %vm754_vm1, %v543_v28 }
  0xaa   : > { %671 = vperm.xlu1 %5716, %v577_v33  }
  0xab   : > { %4991 = vmatmul.mubr.msk.f32.gmra.mrb[14].mxu1 %vm754_vm1, %v544_v31  ;;  %666 = vperm.xlu0 %5715, %v576_v34  }
  0xac   : > { %4993 = vmatprep.mubr.msk.f32.mxu1 %vm754_vm1, %v545_v32 }
  0xae   : > { %681 = vperm.xlu1 %5716, %v579_v37  }
  0xaf   : > { %4994 = vmatmul.mubr.msk.f32.gmra.mrb[16].mxu1 %vm754_vm1, %v546_v35  ;;  %676 = vperm.xlu0 %5715, %v578_v38  }
  0xb0   : > { %4996 = vmatprep.mubr.msk.f32.mxu1 %vm754_vm1, %v547_v36 }
  0xb2   : > { %691 = vperm.xlu1 %5716, %v581_v41  }
  0xb3   : > { %4997 = vmatmul.mubr.msk.f32.gmra.mrb[18].mxu1 %vm754_vm1, %v548_v39  ;;  %686 = vperm.xlu0 %5715, %v580_v42  }
  0xb4   : > { %4999 = vmatprep.mubr.msk.f32.mxu1 %vm754_vm1, %v549_v40 }
  0xb6   : > { %701 = vperm.xlu1 %5716, %v583_v45  }
  0xb7   : > { %5000 = vmatmul.mubr.msk.f32.gmra.mrb[20].mxu1 %vm754_vm1, %v550_v43  ;;  %696 = vperm.xlu0 %5715, %v582_v46  }
  0xb8   : > { %5002 = vmatprep.mubr.msk.f32.mxu1 %vm754_vm1, %v551_v44 }
  0xba   : > { %711 = vperm.xlu1 %5716, %v585_v49  }
  0xbb   : > { %5003 = vmatmul.mubr.msk.f32.gmra.mrb[22].mxu1 %vm754_vm1, %v552_v47  ;;  %706 = vperm.xlu0 %5715, %v584_v50  }
  0xbc   : > { %5005 = vmatprep.mubr.msk.f32.mxu1 %vm754_vm1, %v553_v48 }
  0xbe   : > { %721 = vperm.xlu1 %5716, %v587_v53  }
  0xbf   : > { %5006 = vmatmul.mubr.msk.f32.gmra.mrb[24].mxu1 %vm754_vm1, %v554_v51  ;;  %716 = vperm.xlu0 %5715, %v586_v54  }
  0xc0   : > { %5008 = vmatprep.mubr.msk.f32.mxu1 %vm754_vm1, %v555_v52 }
  0xc2   : > { %731 = vperm.xlu1 %5716, %v589_v57  }
  0xc3   : > { %5009 = vmatmul.mubr.msk.f32.gmra.mrb[26].mxu1 %vm754_vm1, %v556_v55  ;;  %726 = vperm.xlu0 %5715, %v588_v58  }
  0xc4   : > { %5011 = vmatprep.mubr.msk.f32.mxu1 %vm754_vm1, %v557_v56 }
  0xc6   : > { %741 = vperm.xlu1 %5716, %v591_v61  }
  0xc7   : > { %5012 = vmatmul.mubr.msk.f32.gmra.mrb[28].mxu1 %vm754_vm1, %v558_v59  ;;  %736 = vperm.xlu0 %5715, %v590_v62  }
  0xc8   : > { %5014 = vmatprep.mubr.msk.f32.mxu1 %vm754_vm1, %v559_v60 }
  0xca   : > { %751 = vperm.xlu1 %5716, %v593_v0  }
  0xcb   : > { %5015 = vmatmul.mubr.msk.f32.gmra.mrb[30].mxu1 %vm754_vm1, %v560_v63  ;;  %746 = vperm.xlu0 %5715, %v592_v1  }
 0x10d   : > { %v607_v3 = vpop.permute.xlu1 %606 }
 0x10e   : > { %v597_v4 = vpop.permute.xlu0 %596 }
 0x111   : > { %v612_v5 = vpop.permute.xlu1 %611 }
 0x112   : > { %v602_v6 = vpop.permute.xlu0 %601 }
 0x115   : > { %v622_v7 = vpop.permute.xlu1 %621 }
 0x116   : > { %v617_v8 = vpop.permute.xlu0 %616 }
 0x119   : > { %v632_v9 = vpop.permute.xlu1 %631 }
 0x11a   : > { %v627_v10 = vpop.permute.xlu0 %626 }
 0x11d   : > { %v642_v11 = vpop.permute.xlu1 %641 }
 0x11e   : > { %v637_v12 = vpop.permute.xlu0 %636 }
 0x121   : > { %v6414_v13 = vpop.permute.xlu1 %651 }
 0x122   : > { %v6416_v15 = vpop.permute.xlu0 %646 }
 0x125   : > { %v6428_v25 = vpop.permute.xlu1 %661 }
 0x126   : > { %v6433_v28 = vpop.permute.xlu0 %656 }
 0x129   : > { %v672_v37 = vpop.permute.xlu1 %671 }
 0x12a   : > { %v667_v40 = vpop.permute.xlu0 %666 }
 0x12d   : > { %v682_v51 = vpop.permute.xlu1 %681 }
 0x12e   : > { %v677_v55 = vpop.permute.xlu0 %676 }
 0x131   : > { %v692_v1 = vpop.permute.xlu1 %691 }
 0x162   : > { %v4971_v14 = vpop.f32.mrb[0].mxu1 }
 0x163   : > { %v921_v16 = vpop.f32.mrb[1].mxu1  ;;  %v927_v17 = vadd.f32 %v4971_v14, %v602_v6 }
 0x164   : > { %v922_v18 = vadd.f32 %v921_v16, %v597_v4  ;;  %v687_v4 = vpop.permute.xlu0 %686 }
 0x165   : > { %v1081_v19 = vmax.f32 %v927_v17, 0.0 }
 0x166   : > { %v4974_v20 = vpop.f32.mrb[2].mxu1  ;;  %v1080_v21 = vmax.f32 %v922_v18, 0.0 }
 0x167   : > { %v931_v22 = vpop.f32.mrb[3].mxu1  ;;  %v1180_v23 = vsel %vm1112_vm3, %v1081_v19, 0.0  ;;  %1114 = vst.msk [vmem:[%s6423_s30 + $0x8] sm:$0xff] %vm1112_vm3, %v1081_v19  ;;  %v937_v24 = vadd.f32 %v4974_v20, %v612_v5 }
 0x168   : > { %1181 = vadd.xlane.f32.xlu1 %v1180_v23  ;;  %v1177_v26 = vsel %vm1112_vm3, %v1080_v21, 0.0  ;;  %1113 = vst.msk [vmem:[%s6423_s30] sm:$0xff] %vm1112_vm3, %v1080_v21  ;;  %v932_v27 = vadd.f32 %v931_v22, %v607_v3  ;;  %v697_v19 = vpop.permute.xlu0 %696 }
 0x169   : > { %1178 = vadd.xlane.f32.xlu0 %v1177_v26  ;;  %v1083_v29 = vmax.f32 %v937_v24, 0.0 }
 0x16a   : > { %v4977_v30 = vpop.f32.mrb[4].mxu1  ;;  %v1082_v31 = vmax.f32 %v932_v27, 0.0 }
 0x16b   : > { %v941_v32 = vpop.f32.mrb[5].mxu1  ;;  %1116 = vst.msk [vmem:[%s6423_s30 + $0x18] sm:$0xff] %vm1112_vm3, %v1083_v29  ;;  %v1186_v33 = vsel %vm1112_vm3, %v1083_v29, 0.0  ;;  %v947_v34 = vadd.f32 %v4977_v30, %v622_v7 }
 0x16c   : > { %v942_v35 = vadd.f32 %v941_v32, %v617_v8  ;;  %1115 = vst.msk [vmem:[%s6423_s30 + $0x10] sm:$0xff] %vm1112_vm3, %v1082_v31  ;;  %v1183_v44 = vsel %vm1112_vm3, %v1082_v31, 0.0 }
 0x16d   : > { %1187 = vadd.xlane.f32.xlu0 %v1186_v33  ;;  %v1085_v36 = vmax.f32 %v947_v34, 0.0  ;;  %v707_v33 = vpop.permute.xlu0 %706 }
 0x16e   : > { %v4980_v38 = vpop.f32.mrb[6].mxu1  ;;  %v1084_v39 = vmax.f32 %v942_v35, 0.0 }
 0x16f   : > { %v951_v41 = vpop.f32.mrb[7].mxu1  ;;  %1118 = vst.msk [vmem:[%s6423_s30 + $0x28] sm:$0xff] %vm1112_vm3, %v1085_v36  ;;  %v957_v42 = vadd.f32 %v4980_v38, %v632_v9  ;;  %v1192_v53 = vsel %vm1112_vm3, %v1085_v36, 0.0 }
 0x170   : > { %v1189_v43 = vsel %vm1112_vm3, %v1084_v39, 0.0  ;;  %1117 = vst.msk [vmem:[%s6423_s30 + $0x20] sm:$0xff] %vm1112_vm3, %v1084_v39  ;;  %v952_v45 = vadd.f32 %v951_v41, %v627_v10 }
 0x171   : > { %1190 = vadd.xlane.f32.xlu1 %v1189_v43  ;;  %1184 = vadd.xlane.f32.xlu0 %v1183_v44  ;;  %v1087_v46 = vmax.f32 %v957_v42, 0.0 }
 0x172   : > { %v4983_v47 = vpop.f32.mrb[8].mxu1  ;;  %v1086_v48 = vmax.f32 %v952_v45, 0.0 }
 0x173   : > { %v961_v49 = vpop.f32.mrb[9].mxu1  ;;  %1120 = vst.msk [vmem:[%s6423_s30 + $0x38] sm:$0xff] %vm1112_vm3, %v1087_v46  ;;  %v967_v50 = vadd.f32 %v4983_v47, %v642_v11  ;;  %v1198_v62 = vsel %vm1112_vm3, %v1087_v46, 0.0 }
 0x174   : > { %1119 = vst.msk [vmem:[%s6423_s30 + $0x30] sm:$0xff] %vm1112_vm3, %v1086_v48  ;;  %v1195_v52 = vsel %vm1112_vm3, %v1086_v48, 0.0  ;;  %v962_v54 = vadd.f32 %v961_v49, %v637_v12  ;;  %v717_v48 = vpop.permute.xlu0 %716 }
 0x175   : > { %1196 = vadd.xlane.f32.xlu1 %v1195_v52  ;;  %1193 = vadd.xlane.f32.xlu0 %v1192_v53  ;;  %v1089_v56 = vmax.f32 %v967_v50, 0.0 }
 0x176   : > { %v4986_v57 = vpop.f32.mrb[10].mxu1  ;;  %v1088_v58 = vmax.f32 %v962_v54, 0.0 }
 0x177   : > { %v971_v59 = vpop.f32.mrb[11].mxu1  ;;  %1122 = vst.msk [vmem:[%s6423_s30 + $0x48] sm:$0xff] %vm1112_vm3, %v1089_v56  ;;  %v977_v60 = vadd.f32 %v4986_v57, %v6414_v13  ;;  %v1204_v8 = vsel %vm1112_vm3, %v1089_v56, 0.0 }
 0x178   : > { %1121 = vst.msk [vmem:[%s6423_s30 + $0x40] sm:$0xff] %vm1112_vm3, %v1088_v58  ;;  %v1201_v61 = vsel %vm1112_vm3, %v1088_v58, 0.0  ;;  %v972_v63 = vadd.f32 %v971_v59, %v6416_v15  ;;  %v702_v15 = vpop.permute.xlu1 %701 }
 0x179   : > { %1202 = vadd.xlane.f32.xlu1 %v1201_v61  ;;  %1199 = vadd.xlane.f32.xlu0 %v1198_v62  ;;  %v1091_v0 = vmax.f32 %v977_v60, 0.0  ;;  %v727_v61 = vpop.permute.xlu0 %726 }
 0x17a   : > { %v4989_v2 = vpop.f32.mrb[12].mxu1  ;;  %v1090_v3 = vmax.f32 %v972_v63, 0.0 }
 0x17b   : > { %v981_v5 = vpop.f32.mrb[13].mxu1  ;;  %1124 = vst.msk [vmem:[%s6423_s30 + $0x58] sm:$0xff] %vm1112_vm3, %v1091_v0  ;;  %v987_v6 = vadd.f32 %v4989_v2, %v6428_v25  ;;  %v1210_v17 = vsel %vm1112_vm3, %v1091_v0, 0.0 }
 0x17c   : > { %1123 = vst.msk [vmem:[%s6423_s30 + $0x50] sm:$0xff] %vm1112_vm3, %v1090_v3  ;;  %v1207_v7 = vsel %vm1112_vm3, %v1090_v3, 0.0  ;;  %v982_v9 = vadd.f32 %v981_v5, %v6433_v28  ;;  %v5905_v28 = vmov 0.0|0.0   ;;  %v712_v30 = vpop.permute.xlu1 %711 }
 0x17d   : > { %1208 = vadd.xlane.f32.xlu1 %v1207_v7  ;;  %1205 = vadd.xlane.f32.xlu0 %v1204_v8  ;;  %v1093_v10 = vmax.f32 %v987_v6, 0.0 }
 0x17e   : > { %v4992_v11 = vpop.f32.mrb[14].mxu1  ;;  %v1092_v12 = vmax.f32 %v982_v9, 0.0  ;;  %5017 = vmatprep.subr.bf16.mxu1 %v5905_v28  ;;  %5065 = vmatprep.subr.bf16.mxu0 %v5905_v28 }
 0x17f   : > { %v991_v13 = vpop.f32.mrb[15].mxu1  ;;  %1126 = vst.msk [vmem:[%s6423_s30 + $0x68] sm:$0xff] %vm1112_vm3, %v1093_v10  ;;  %v997_v14 = vadd.f32 %v4992_v11, %v672_v37  ;;  %v1216_v26 = vsel %vm1112_vm3, %v1093_v10, 0.0 }
 0x180   : > { %1125 = vst.msk [vmem:[%s6423_s30 + $0x60] sm:$0xff] %vm1112_vm3, %v1092_v12  ;;  %v1213_v16 = vsel %vm1112_vm3, %v1092_v12, 0.0  ;;  %v992_v18 = vadd.f32 %v991_v13, %v667_v40  ;;  %v722_v44 = vpop.permute.xlu1 %721  ;;  %v737_v12 = vpop.permute.xlu0 %736 }
 0x181   : > { %1214 = vadd.xlane.f32.xlu1 %v1213_v16  ;;  %1211 = vadd.xlane.f32.xlu0 %v1210_v17  ;;  %v1095_v20 = vmax.f32 %v997_v14, 0.0 }
 0x182   : > { %v4995_v21 = vpop.f32.mrb[16].mxu1  ;;  %v1094_v22 = vmax.f32 %v992_v18, 0.0 }
 0x183   : > { %v1001_v23 = vpop.f32.mrb[17].mxu1  ;;  %1128 = vst.msk [vmem:[%s6423_s30 + $0x78] sm:$0xff] %vm1112_vm3, %v1095_v20  ;;  %v1007_v24 = vadd.f32 %v4995_v21, %v682_v51  ;;  %v1222_v37 = vsel %vm1112_vm3, %v1095_v20, 0.0 }
 0x184   : > { %1127 = vst.msk [vmem:[%s6423_s30 + $0x70] sm:$0xff] %vm1112_vm3, %v1094_v22  ;;  %v1219_v25 = vsel %vm1112_vm3, %v1094_v22, 0.0  ;;  %v1002_v27 = vadd.f32 %v1001_v23, %v677_v55  ;;  %v732_v58 = vpop.permute.xlu1 %731 }
 0x185   : > { %1220 = vadd.xlane.f32.xlu1 %v1219_v25  ;;  %1217 = vadd.xlane.f32.xlu0 %v1216_v26  ;;  %v1097_v29 = vmax.f32 %v1007_v24, 0.0  ;;  %v747_v25 = vpop.permute.xlu0 %746 }
 0x186   : > { %v4998_v31 = vpop.f32.mrb[18].mxu1  ;;  %v1096_v32 = vmax.f32 %v1002_v27, 0.0 }
 0x187   : > { %v1011_v34 = vpop.f32.mrb[19].mxu1  ;;  %1130 = vst.msk [vmem:[%s6423_s30 + $0x88] sm:$0xff] %vm1112_vm3, %v1097_v29  ;;  %v1017_v35 = vadd.f32 %v4998_v31, %v692_v1  ;;  %v1228_v46 = vsel %vm1112_vm3, %v1097_v29, 0.0 }
 0x188   : > { %1129 = vst.msk [vmem:[%s6423_s30 + $0x80] sm:$0xff] %vm1112_vm3, %v1096_v32  ;;  %v1225_v36 = vsel %vm1112_vm3, %v1096_v32, 0.0  ;;  %v1012_v38 = vadd.f32 %v1011_v34, %v687_v4  ;;  %v742_v8 = vpop.permute.xlu1 %741 }
 0x189   : > { %1226 = vadd.xlane.f32.xlu1 %v1225_v36  ;;  %1223 = vadd.xlane.f32.xlu0 %v1222_v37  ;;  %v1099_v39 = vmax.f32 %v1017_v35, 0.0  ;;  %v1438_v37 = vld [vmem:[#allocation5 + $0x8] sm:$0xff] }
 0x18a   : > { %v5001_v40 = vpop.f32.mrb[20].mxu1  ;;  %v1098_v41 = vmax.f32 %v1012_v38, 0.0  ;;  %1693 = vmatprep.mubr.f32.mxu1 %v1438_v37  ;;  %v1146_v38 = vld [vmem:[#allocation2 + $0x8] sm:$0xff] }
 0x18b   : > { %v1021_v42 = vpop.f32.mrb[21].mxu1  ;;  %1132 = vst.msk [vmem:[%s6423_s30 + $0x98] sm:$0xff] %vm1112_vm3, %v1099_v39  ;;  %v1027_v43 = vadd.f32 %v5001_v40, %v702_v15  ;;  %v1234_v55 = vsel %vm1112_vm3, %v1099_v39, 0.0  ;;  %v1145_v39 = vld [vmem:[#allocation2] sm:$0xff] }
 0x18c   : > { %1131 = vst.msk [vmem:[%s6423_s30 + $0x90] sm:$0xff] %vm1112_vm3, %v1098_v41  ;;  %v1231_v45 = vsel %vm1112_vm3, %v1098_v41, 0.0  ;;  %v1022_v47 = vadd.f32 %v1021_v42, %v697_v19  ;;  %v752_v22 = vpop.permute.xlu1 %751 }
 0x18d   : > { %1232 = vadd.xlane.f32.xlu1 %v1231_v45  ;;  %1229 = vadd.xlane.f32.xlu0 %v1228_v46  ;;  %v1101_v49 = vmax.f32 %v1027_v43, 0.0 }
 0x18e   : > { %v5004_v50 = vpop.f32.mrb[22].mxu1  ;;  %v1100_v51 = vmax.f32 %v1022_v47, 0.0  ;;  %v1149_v47 = vld [vmem:[#allocation2 + $0x20] sm:$0xff] }
 0x18f   : > { %v1031_v52 = vpop.f32.mrb[23].mxu1  ;;  %1134 = vst.msk [vmem:[%s6423_s30 + $0xa8] sm:$0xff] %vm1112_vm3, %v1101_v49  ;;  %v1037_v53 = vadd.f32 %v5004_v50, %v712_v30  ;;  %v1240_v1 = vsel %vm1112_vm3, %v1101_v49, 0.0 }
 0x190   : > { %1133 = vst.msk [vmem:[%s6423_s30 + $0xa0] sm:$0xff] %vm1112_vm3, %v1100_v51  ;;  %v1237_v54 = vsel %vm1112_vm3, %v1100_v51, 0.0  ;;  %v1032_v56 = vadd.f32 %v1031_v52, %v707_v33 }
 0x191   : > { %1238 = vadd.xlane.f32.xlu1 %v1237_v54  ;;  %1235 = vadd.xlane.f32.xlu0 %v1234_v55  ;;  %v1103_v57 = vmax.f32 %v1037_v53, 0.0  ;;  %v1151_v54 = vld [vmem:[#allocation2 + $0x30] sm:$0xff]  ;;  %v1150_v55 = vld [vmem:[#allocation2 + $0x28] sm:$0xff] }
 0x192   : > { %v5007_v59 = vpop.f32.mrb[24].mxu1  ;;  %v1102_v60 = vmax.f32 %v1032_v56, 0.0 }
 0x193   : > { %v1041_v62 = vpop.f32.mrb[25].mxu1  ;;  %1136 = vst.msk [vmem:[%s6423_s30 + $0xb8] sm:$0xff] %vm1112_vm3, %v1103_v57  ;;  %v1047_v63 = vadd.f32 %v5007_v59, %v722_v44  ;;  %v1246_v10 = vsel %vm1112_vm3, %v1103_v57, 0.0  ;;  %v1148_v44 = vld [vmem:[#allocation2 + $0x18] sm:$0xff] }
 0x194   : > { %1135 = vst.msk [vmem:[%s6423_s30 + $0xb0] sm:$0xff] %vm1112_vm3, %v1102_v60  ;;  %v1243_v0 = vsel %vm1112_vm3, %v1102_v60, 0.0  ;;  %v1042_v2 = vadd.f32 %v1041_v62, %v717_v48  ;;  %v1147_v48 = vld [vmem:[#allocation2 + $0x10] sm:$0xff] }
 0x195   : > { %1244 = vadd.xlane.f32.xlu1 %v1243_v0  ;;  %1241 = vadd.xlane.f32.xlu0 %v1240_v1  ;;  %v1105_v3 = vmax.f32 %v1047_v63, 0.0  ;;  %v1153_v0 = vld [vmem:[#allocation2 + $0x40] sm:$0xff]  ;;  %v1152_v1 = vld [vmem:[#allocation2 + $0x38] sm:$0xff] }
 0x196   : > { %v5010_v4 = vpop.f32.mrb[26].mxu1  ;;  %v1104_v5 = vmax.f32 %v1042_v2, 0.0 }
 0x197   : > { %v1051_v6 = vpop.f32.mrb[27].mxu1  ;;  %1138 = vst.msk [vmem:[%s6423_s30 + $0xc8] sm:$0xff] %vm1112_vm3, %v1105_v3  ;;  %v1057_v7 = vadd.f32 %v5010_v4, %v732_v58  ;;  %v1252_v19 = vsel %vm1112_vm3, %v1105_v3, 0.0 }
 0x198   : > { %1137 = vst.msk [vmem:[%s6423_s30 + $0xc0] sm:$0xff] %vm1112_vm3, %v1104_v5  ;;  %v1249_v9 = vsel %vm1112_vm3, %v1104_v5, 0.0  ;;  %v1052_v11 = vadd.f32 %v1051_v6, %v727_v61 }
 0x199   : > { %1250 = vadd.xlane.f32.xlu1 %v1249_v9  ;;  %1247 = vadd.xlane.f32.xlu0 %v1246_v10  ;;  %v1107_v13 = vmax.f32 %v1057_v7, 0.0  ;;  %v1154_v9 = vld [vmem:[#allocation2 + $0x48] sm:$0xff] }
 0x19a   : > { %v5013_v14 = vpop.f32.mrb[28].mxu1  ;;  %v1106_v15 = vmax.f32 %v1052_v11, 0.0 }
 0x19b   : > { %v1061_v16 = vpop.f32.mrb[29].mxu1  ;;  %1140 = vst.msk [vmem:[%s6423_s30 + $0xd8] sm:$0xff] %vm1112_vm3, %v1107_v13  ;;  %v1067_v17 = vadd.f32 %v5013_v14, %v742_v8  ;;  %v1258_v30 = vsel %vm1112_vm3, %v1107_v13, 0.0  ;;  %v1155_v8 = vld [vmem:[#allocation2 + $0x50] sm:$0xff] }
 0x19c   : > { %1139 = vst.msk [vmem:[%s6423_s30 + $0xd0] sm:$0xff] %vm1112_vm3, %v1106_v15  ;;  %v1255_v18 = vsel %vm1112_vm3, %v1106_v15, 0.0  ;;  %v1062_v20 = vadd.f32 %v1061_v16, %v737_v12 }
 0x19d   : > { %1256 = vadd.xlane.f32.xlu1 %v1255_v18  ;;  %1253 = vadd.xlane.f32.xlu0 %v1252_v19  ;;  %v1109_v21 = vmax.f32 %v1067_v17, 0.0  ;;  %v1157_v19 = vld [vmem:[#allocation2 + $0x60] sm:$0xff] }
 0x19e   : > { %v5016_v23 = vpop.f32.mrb[30].mxu1  ;;  %v1108_v24 = vmax.f32 %v1062_v20, 0.0  ;;  %v1156_v20 = vld [vmem:[#allocation2 + $0x58] sm:$0xff] }
 0x19f   : > { %v1071_v26 = vpop.f32.mrb[31].mxu1  ;;  %1142 = vst.msk [vmem:[%s6423_s30 + $0xe8] sm:$0xff] %vm1112_vm3, %v1109_v21  ;;  %v1077_v27 = vadd.f32 %v5016_v23, %v752_v22  ;;  %v1264_v36 = vsel %vm1112_vm3, %v1109_v21, 0.0 }
 0x1a0   : > { %1141 = vst.msk [vmem:[%s6423_s30 + $0xe0] sm:$0xff] %vm1112_vm3, %v1108_v24  ;;  %v1261_v29 = vsel %vm1112_vm3, %v1108_v24, 0.0  ;;  %v1072_v31 = vadd.f32 %v1071_v26, %v747_v25 }
 0x1a1   : > { %1262 = vadd.xlane.f32.xlu1 %v1261_v29  ;;  %1259 = vadd.xlane.f32.xlu0 %v1258_v30  ;;  %v1111_v32 = vmax.f32 %v1077_v27, 0.0 }
 0x1a2   : > { %v1110_v33 = vmax.f32 %v1072_v31, 0.0  ;;  %v1159_v31 = vld [vmem:[#allocation2 + $0x70] sm:$0xff] }
 0x1a3   : > { %1144 = vst.msk [vmem:[%s6423_s30 + $0xf8] sm:$0xff] %vm1112_vm3, %v1111_v32  ;;  %v1270_v34 = vsel %vm1112_vm3, %v1111_v32, 0.0  ;;  %v1158_v32 = vld [vmem:[#allocation2 + $0x68] sm:$0xff] }
 0x1a4   : > { %1143 = vst.msk [vmem:[%s6423_s30 + $0xf0] sm:$0xff] %vm1112_vm3, %v1110_v33  ;;  %v1267_v35 = vsel %vm1112_vm3, %v1110_v33, 0.0 }
 0x1a5   : > { %1268 = vadd.xlane.f32.xlu1 %v1267_v35  ;;  %1265 = vadd.xlane.f32.xlu0 %v1264_v36 }
 0x1a9   : > { %1271 = vadd.xlane.f32.xlu0 %v1270_v34 }
 0x1f5   : > { %v1182_v40 = vpop.xlane.xlu1 %1181 }
 0x1f6   : > { %v1274_v41 = vadd.f32 %v1182_v40, %v1146_v38  ;;  %v1179_v42 = vpop.xlane.xlu0 %1178 }
 0x1f7   : > { %v1273_v43 = vadd.f32 %v1179_v42, %v1145_v39  ;;  %v1161_v42 = vld [vmem:[#allocation2 + $0x80] sm:$0xff] }
 0x1f8   : > { %1307 = vst.msk [vmem:[#allocation2 + $0x8] sm:$0xff] %vm496_vm2, %v1274_v41 }
 0x1f9   : > { %1306 = vst.msk [vmem:[#allocation2] sm:$0xff] %vm496_vm2, %v1273_v43  ;;  %v1160_v43 = vld [vmem:[#allocation2 + $0x78] sm:$0xff] }
 0x1fa   : > { %v1188_v45 = vpop.xlane.xlu0 %1187 }
 0x1fb   : > { %v1276_v46 = vadd.f32 %v1188_v45, %v1148_v44 }
 0x1fd   : > { %1309 = vst.msk [vmem:[#allocation2 + $0x18] sm:$0xff] %vm496_vm2, %v1276_v46 }
 0x1fe   : > { %v1191_v49 = vpop.xlane.xlu1 %1190  ;;  %v1185_v50 = vpop.xlane.xlu0 %1184 }
 0x1ff   : > { %v1277_v51 = vadd.f32 %v1191_v49, %v1149_v47  ;;  %v1275_v52 = vadd.f32 %v1185_v50, %v1147_v48  ;;  %v1342_v53 = vld [vmem:[#allocation2 + $0x8] sm:$0xff] }
 0x200   : > { %v1341_v56 = vld [vmem:[#allocation2] sm:$0xff]  ;;  %v1374_v57 = vmul.f32 0.0625, %v1342_v53  ;;  %v1163_v53 = vld [vmem:[#allocation2 + $0x90] sm:$0xff] }
 0x201   : > { %1310 = vst.msk [vmem:[#allocation2 + $0x20] sm:$0xff] %vm496_vm2, %v1277_v51  ;;  %1308 = vst.msk [vmem:[#allocation2 + $0x10] sm:$0xff] %vm496_vm2, %v1275_v52  ;;  %v1373_v58 = vmul.f32 0.0625, %v1341_v56 }
 0x202   : > { %v1197_v59 = vpop.xlane.xlu1 %1196  ;;  %v1194_v60 = vpop.xlane.xlu0 %1193  ;;  %1406 = vst.msk [vmem:[%s6539_s23 + $0x8] sm:$0xff] %vm496_vm2, %v1374_v57 }
 0x203   : > { %v1279_v61 = vadd.f32 %v1197_v59, %v1151_v54  ;;  %v1278_v62 = vadd.f32 %v1194_v60, %v1150_v55  ;;  %1405 = vst.msk [vmem:[%s6539_s23] sm:$0xff] %vm496_vm2, %v1373_v58  ;;  %v5018_v63 = vpack.c.bf16 %v1374_v57, %v1373_v58  ;;  %v1162_v54 = vld [vmem:[#allocation2 + $0x88] sm:$0xff] }
 0x204   : > { %v1344_v2 = vld [vmem:[#allocation2 + $0x18] sm:$0xff] }
 0x205   : > { %1312 = vst.msk [vmem:[#allocation2 + $0x30] sm:$0xff] %vm496_vm2, %v1279_v61  ;;  %1311 = vst.msk [vmem:[#allocation2 + $0x28] sm:$0xff] %vm496_vm2, %v1278_v62  ;;  %5019 = vmatpush1.bf16.msra.mxu1 %v5018_v63  ;;  %v1376_v3 = vmul.f32 0.0625, %v1344_v2 }
 0x206   : > { %v1203_v4 = vpop.xlane.xlu1 %1202  ;;  %v1200_v5 = vpop.xlane.xlu0 %1199  ;;  %5020 = vmatprep.subr.bf16.mxu1 %v5905_v28 }
 0x207   : > { %v1281_v6 = vadd.f32 %v1203_v4, %v1153_v0  ;;  %v1280_v7 = vadd.f32 %v1200_v5, %v1152_v1  ;;  %1408 = vst.msk [vmem:[%s6539_s23 + $0x18] sm:$0xff] %vm496_vm2, %v1376_v3  ;;  %v1165_v0 = vld [vmem:[#allocation2 + $0xa0] sm:$0xff]  ;;  %v1164_v1 = vld [vmem:[#allocation2 + $0x98] sm:$0xff] }
 0x208   : > { %v1343_v10 = vld [vmem:[#allocation2 + $0x10] sm:$0xff]  ;;  %v1345_v11 = vld [vmem:[#allocation2 + $0x20] sm:$0xff] }
 0x209   : > { %1314 = vst.msk [vmem:[#allocation2 + $0x40] sm:$0xff] %vm496_vm2, %v1281_v6  ;;  %1313 = vst.msk [vmem:[#allocation2 + $0x38] sm:$0xff] %vm496_vm2, %v1280_v7  ;;  %v1375_v12 = vmul.f32 0.0625, %v1343_v10  ;;  %v1377_v13 = vmul.f32 0.0625, %v1345_v11  ;;  %v1167_v11 = vld [vmem:[#allocation2 + $0xb0] sm:$0xff] }
 0x20a   : > { %v1209_v14 = vpop.xlane.xlu1 %1208  ;;  %v1206_v15 = vpop.xlane.xlu0 %1205 }
 0x20b   : > { %v1283_v16 = vadd.f32 %v1209_v14, %v1155_v8  ;;  %v1282_v17 = vadd.f32 %v1206_v15, %v1154_v9  ;;  %1407 = vst.msk [vmem:[%s6539_s23 + $0x10] sm:$0xff] %vm496_vm2, %v1375_v12  ;;  %v5021_v18 = vpack.c.bf16 %v1376_v3, %v1375_v12  ;;  %1409 = vst.msk [vmem:[%s6539_s23 + $0x20] sm:$0xff] %vm496_vm2, %v1377_v13  ;;  %v1166_v12 = vld [vmem:[#allocation2 + $0xa8] sm:$0xff] }
 0x20c   : > { %v1346_v21 = vld [vmem:[#allocation2 + $0x28] sm:$0xff]  ;;  %v1347_v22 = vld [vmem:[#allocation2 + $0x30] sm:$0xff] }
 0x20d   : > { %1316 = vst.msk [vmem:[#allocation2 + $0x50] sm:$0xff] %vm496_vm2, %v1283_v16  ;;  %1315 = vst.msk [vmem:[#allocation2 + $0x48] sm:$0xff] %vm496_vm2, %v1282_v17  ;;  %5022 = vmatpush1.bf16.msra.mxu1 %v5021_v18  ;;  %v1378_v23 = vmul.f32 0.0625, %v1346_v21  ;;  %v1379_v24 = vmul.f32 0.0625, %v1347_v22  ;;  %v1169_v22 = vld [vmem:[#allocation2 + $0xc0] sm:$0xff] }
 0x20e   : > { %v1215_v25 = vpop.xlane.xlu1 %1214  ;;  %v1212_v26 = vpop.xlane.xlu0 %1211  ;;  %5023 = vmatprep.subr.bf16.mxu1 %v5905_v28 }
 0x20f   : > { %v1285_v27 = vadd.f32 %v1215_v25, %v1157_v19  ;;  %v1284_v29 = vadd.f32 %v1212_v26, %v1156_v20  ;;  %1410 = vst.msk [vmem:[%s6539_s23 + $0x28] sm:$0xff] %vm496_vm2, %v1378_v23  ;;  %v5024_v30 = vpack.c.bf16 %v1378_v23, %v1377_v13  ;;  %1411 = vst.msk [vmem:[%s6539_s23 + $0x30] sm:$0xff] %vm496_vm2, %v1379_v24  ;;  %v1168_v23 = vld [vmem:[#allocation2 + $0xb8] sm:$0xff] }
 0x210   : > { %v1348_v33 = vld [vmem:[#allocation2 + $0x38] sm:$0xff]  ;;  %v1349_v34 = vld [vmem:[#allocation2 + $0x40] sm:$0xff] }
 0x211   : > { %1318 = vst.msk [vmem:[#allocation2 + $0x60] sm:$0xff] %vm496_vm2, %v1285_v27  ;;  %1317 = vst.msk [vmem:[#allocation2 + $0x58] sm:$0xff] %vm496_vm2, %v1284_v29  ;;  %5025 = vmatpush1.bf16.msra.mxu1 %v5024_v30  ;;  %v1380_v35 = vmul.f32 0.0625, %v1348_v33  ;;  %v1381_v36 = vmul.f32 0.0625, %v1349_v34  ;;  %v1171_v34 = vld [vmem:[#allocation2 + $0xd0] sm:$0xff] }
 0x212   : > { %v1221_v37 = vpop.xlane.xlu1 %1220  ;;  %v1218_v38 = vpop.xlane.xlu0 %1217  ;;  %5026 = vmatprep.subr.bf16.mxu1 %v5905_v28 }
 0x213   : > { %v1287_v39 = vadd.f32 %v1221_v37, %v1159_v31  ;;  %v1286_v40 = vadd.f32 %v1218_v38, %v1158_v32  ;;  %1412 = vst.msk [vmem:[%s6539_s23 + $0x38] sm:$0xff] %vm496_vm2, %v1380_v35  ;;  %v5027_v41 = vpack.c.bf16 %v1380_v35, %v1379_v24  ;;  %1413 = vst.msk [vmem:[%s6539_s23 + $0x40] sm:$0xff] %vm496_vm2, %v1381_v36  ;;  %v1170_v35 = vld [vmem:[#allocation2 + $0xc8] sm:$0xff] }
 0x214   : > { %v1350_v44 = vld [vmem:[#allocation2 + $0x48] sm:$0xff]  ;;  %v1351_v45 = vld [vmem:[#allocation2 + $0x50] sm:$0xff] }
 0x215   : > { %1320 = vst.msk [vmem:[#allocation2 + $0x70] sm:$0xff] %vm496_vm2, %v1287_v39  ;;  %1319 = vst.msk [vmem:[#allocation2 + $0x68] sm:$0xff] %vm496_vm2, %v1286_v40  ;;  %5028 = vmatpush1.bf16.msra.mxu1 %v5027_v41  ;;  %v1382_v46 = vmul.f32 0.0625, %v1350_v44  ;;  %v1383_v47 = vmul.f32 0.0625, %v1351_v45  ;;  %v1173_v45 = vld [vmem:[#allocation2 + $0xe0] sm:$0xff] }
 0x216   : > { %v1227_v48 = vpop.xlane.xlu1 %1226  ;;  %v1224_v49 = vpop.xlane.xlu0 %1223  ;;  %5029 = vmatprep.subr.bf16.mxu1 %v5905_v28 }
 0x217   : > { %v1289_v50 = vadd.f32 %v1227_v48, %v1161_v42  ;;  %v1288_v51 = vadd.f32 %v1224_v49, %v1160_v43  ;;  %1414 = vst.msk [vmem:[%s6539_s23 + $0x48] sm:$0xff] %vm496_vm2, %v1382_v46  ;;  %v5030_v52 = vpack.c.bf16 %v1382_v46, %v1381_v36  ;;  %1415 = vst.msk [vmem:[%s6539_s23 + $0x50] sm:$0xff] %vm496_vm2, %v1383_v47  ;;  %v1172_v46 = vld [vmem:[#allocation2 + $0xd8] sm:$0xff] }
 0x218   : > { %v1352_v55 = vld [vmem:[#allocation2 + $0x58] sm:$0xff]  ;;  %v1353_v56 = vld [vmem:[#allocation2 + $0x60] sm:$0xff] }
 0x219   : > { %1322 = vst.msk [vmem:[#allocation2 + $0x80] sm:$0xff] %vm496_vm2, %v1289_v50  ;;  %1321 = vst.msk [vmem:[#allocation2 + $0x78] sm:$0xff] %vm496_vm2, %v1288_v51  ;;  %5031 = vmatpush1.bf16.msra.mxu1 %v5030_v52  ;;  %v1384_v57 = vmul.f32 0.0625, %v1352_v55  ;;  %v1385_v58 = vmul.f32 0.0625, %v1353_v56  ;;  %v1175_v56 = vld [vmem:[#allocation2 + $0xf0] sm:$0xff] }
 0x21a   : > { %v1233_v59 = vpop.xlane.xlu1 %1232  ;;  %v1230_v60 = vpop.xlane.xlu0 %1229  ;;  %5032 = vmatprep.subr.bf16.mxu1 %v5905_v28 }
 0x21b   : > { %v1291_v61 = vadd.f32 %v1233_v59, %v1163_v53  ;;  %v1290_v62 = vadd.f32 %v1230_v60, %v1162_v54  ;;  %1416 = vst.msk [vmem:[%s6539_s23 + $0x58] sm:$0xff] %vm496_vm2, %v1384_v57  ;;  %v5033_v63 = vpack.c.bf16 %v1384_v57, %v1383_v47  ;;  %1417 = vst.msk [vmem:[%s6539_s23 + $0x60] sm:$0xff] %vm496_vm2, %v1385_v58  ;;  %v1174_v57 = vld [vmem:[#allocation2 + $0xe8] sm:$0xff] }
 0x21c   : > { %v1354_v2 = vld [vmem:[#allocation2 + $0x68] sm:$0xff]  ;;  %v1355_v3 = vld [vmem:[#allocation2 + $0x70] sm:$0xff] }
 0x21d   : > { %1324 = vst.msk [vmem:[#allocation2 + $0x90] sm:$0xff] %vm496_vm2, %v1291_v61  ;;  %1323 = vst.msk [vmem:[#allocation2 + $0x88] sm:$0xff] %vm496_vm2, %v1290_v62  ;;  %5034 = vmatpush1.bf16.msra.mxu1 %v5033_v63  ;;  %v1386_v4 = vmul.f32 0.0625, %v1354_v2  ;;  %v1387_v5 = vmul.f32 0.0625, %v1355_v3  ;;  %v1176_v3 = vld [vmem:[#allocation2 + $0xf8] sm:$0xff] }
 0x21e   : > { %v1239_v6 = vpop.xlane.xlu1 %1238  ;;  %v1236_v7 = vpop.xlane.xlu0 %1235  ;;  %5035 = vmatprep.subr.bf16.mxu1 %v5905_v28 }
 0x21f   : > { %v1293_v8 = vadd.f32 %v1239_v6, %v1165_v0  ;;  %v1292_v9 = vadd.f32 %v1236_v7, %v1164_v1  ;;  %1418 = vst.msk [vmem:[%s6539_s23 + $0x68] sm:$0xff] %vm496_vm2, %v1386_v4  ;;  %v5036_v10 = vpack.c.bf16 %v1386_v4, %v1385_v58  ;;  %1419 = vst.msk [vmem:[%s6539_s23 + $0x70] sm:$0xff] %vm496_vm2, %v1387_v5 }
 0x220   : > { %v1356_v13 = vld [vmem:[#allocation2 + $0x78] sm:$0xff]  ;;  %v1357_v14 = vld [vmem:[#allocation2 + $0x80] sm:$0xff] }
 0x221   : > { %1326 = vst.msk [vmem:[#allocation2 + $0xa0] sm:$0xff] %vm496_vm2, %v1293_v8  ;;  %1325 = vst.msk [vmem:[#allocation2 + $0x98] sm:$0xff] %vm496_vm2, %v1292_v9  ;;  %5037 = vmatpush1.bf16.msra.mxu1 %v5036_v10  ;;  %v1388_v15 = vmul.f32 0.0625, %v1356_v13  ;;  %v1389_v16 = vmul.f32 0.0625, %v1357_v14 }
 0x222   : > { %v1245_v17 = vpop.xlane.xlu1 %1244  ;;  %v1242_v18 = vpop.xlane.xlu0 %1241  ;;  %5038 = vmatprep.subr.bf16.mxu1 %v5905_v28 }
 0x223   : > { %v1295_v19 = vadd.f32 %v1245_v17, %v1167_v11  ;;  %v1294_v20 = vadd.f32 %v1242_v18, %v1166_v12  ;;  %1420 = vst.msk [vmem:[%s6539_s23 + $0x78] sm:$0xff] %vm496_vm2, %v1388_v15  ;;  %v5039_v21 = vpack.c.bf16 %v1388_v15, %v1387_v5  ;;  %1421 = vst.msk [vmem:[%s6539_s23 + $0x80] sm:$0xff] %vm496_vm2, %v1389_v16 }
 0x224   : > { %v1358_v24 = vld [vmem:[#allocation2 + $0x88] sm:$0xff]  ;;  %v1359_v25 = vld [vmem:[#allocation2 + $0x90] sm:$0xff] }
 0x225   : > { %1328 = vst.msk [vmem:[#allocation2 + $0xb0] sm:$0xff] %vm496_vm2, %v1295_v19  ;;  %1327 = vst.msk [vmem:[#allocation2 + $0xa8] sm:$0xff] %vm496_vm2, %v1294_v20  ;;  %5040 = vmatpush1.bf16.msra.mxu1 %v5039_v21  ;;  %v1390_v26 = vmul.f32 0.0625, %v1358_v24  ;;  %v1391_v27 = vmul.f32 0.0625, %v1359_v25  ;;  %v1437_v24 = vld [vmem:[#allocation5] sm:$0xff]  ;;  %v1440_v25 = vld [vmem:[#allocation5 + $0x18] sm:$0xff] }
 0x226   : > { %v1251_v29 = vpop.xlane.xlu1 %1250  ;;  %v1248_v30 = vpop.xlane.xlu0 %1247  ;;  %5041 = vmatprep.subr.bf16.mxu1 %v5905_v28 }
 0x227   : > { %v1297_v31 = vadd.f32 %v1251_v29, %v1169_v22  ;;  %v1296_v32 = vadd.f32 %v1248_v30, %v1168_v23  ;;  %1422 = vst.msk [vmem:[%s6539_s23 + $0x88] sm:$0xff] %vm496_vm2, %v1390_v26  ;;  %v5042_v33 = vpack.c.bf16 %v1390_v26, %v1389_v16  ;;  %1423 = vst.msk [vmem:[%s6539_s23 + $0x90] sm:$0xff] %vm496_vm2, %v1391_v27  ;;  %v1439_v26 = vld [vmem:[#allocation5 + $0x10] sm:$0xff]  ;;  %v1441_v29 = vld [vmem:[#allocation5 + $0x20] sm:$0xff] }
 0x228   : > { %v1360_v36 = vld [vmem:[#allocation2 + $0x98] sm:$0xff]  ;;  %v1361_v37 = vld [vmem:[#allocation2 + $0xa0] sm:$0xff] }
 0x229   : > { %1330 = vst.msk [vmem:[#allocation2 + $0xc0] sm:$0xff] %vm496_vm2, %v1297_v31  ;;  %1329 = vst.msk [vmem:[#allocation2 + $0xb8] sm:$0xff] %vm496_vm2, %v1296_v32  ;;  %5043 = vmatpush1.bf16.msra.mxu1 %v5042_v33  ;;  %v1392_v38 = vmul.f32 0.0625, %v1360_v36  ;;  %v1393_v39 = vmul.f32 0.0625, %v1361_v37  ;;  %v1444_v30 = vld [vmem:[#allocation5 + $0x38] sm:$0xff]  ;;  %v1443_v31 = vld [vmem:[#allocation5 + $0x30] sm:$0xff] }
 0x22a   : > { %v1257_v40 = vpop.xlane.xlu1 %1256  ;;  %v1254_v41 = vpop.xlane.xlu0 %1253  ;;  %5044 = vmatprep.subr.bf16.mxu1 %v5905_v28  ;;  %v1446_v32 = vld [vmem:[#allocation5 + $0x48] sm:$0xff]  ;;  %v1445_v33 = vld [vmem:[#allocation5 + $0x40] sm:$0xff] }
 0x22b   : > { %v1299_v42 = vadd.f32 %v1257_v40, %v1171_v34  ;;  %v1298_v43 = vadd.f32 %v1254_v41, %v1170_v35  ;;  %1424 = vst.msk [vmem:[%s6539_s23 + $0x98] sm:$0xff] %vm496_vm2, %v1392_v38  ;;  %v5045_v44 = vpack.c.bf16 %v1392_v38, %v1391_v27  ;;  %1425 = vst.msk [vmem:[%s6539_s23 + $0xa0] sm:$0xff] %vm496_vm2, %v1393_v39  ;;  %v1442_v27 = vld [vmem:[#allocation5 + $0x28] sm:$0xff]  ;;  %v1448_v34 = vld [vmem:[#allocation5 + $0x58] sm:$0xff] }
 0x22c   : > { %v1362_v47 = vld [vmem:[#allocation2 + $0xa8] sm:$0xff]  ;;  %v1363_v48 = vld [vmem:[#allocation2 + $0xb0] sm:$0xff]  ;;  %v1447_v35 = vld [vmem:[#allocation5 + $0x50] sm:$0xff] }
 0x22d   : > { %1332 = vst.msk [vmem:[#allocation2 + $0xd0] sm:$0xff] %vm496_vm2, %v1299_v42  ;;  %1331 = vst.msk [vmem:[#allocation2 + $0xc8] sm:$0xff] %vm496_vm2, %v1298_v43  ;;  %5046 = vmatpush1.bf16.msra.mxu1 %v5045_v44  ;;  %v1394_v49 = vmul.f32 0.0625, %v1362_v47  ;;  %v1395_v50 = vmul.f32 0.0625, %v1363_v48  ;;  %v1450_v36 = vld [vmem:[#allocation5 + $0x68] sm:$0xff]  ;;  %v1449_v37 = vld [vmem:[#allocation5 + $0x60] sm:$0xff] }
 0x22e   : > { %v1263_v51 = vpop.xlane.xlu1 %1262  ;;  %v1260_v52 = vpop.xlane.xlu0 %1259  ;;  %5047 = vmatprep.subr.bf16.mxu1 %v5905_v28  ;;  %v1452_v38 = vld [vmem:[#allocation5 + $0x78] sm:$0xff]  ;;  %v1454_v40 = vld [vmem:[#allocation5 + $0x88] sm:$0xff]  ;;  %v1453_v41 = vld [vmem:[#allocation5 + $0x80] sm:$0xff] }
 0x22f   : > { %v1301_v53 = vadd.f32 %v1263_v51, %v1173_v45  ;;  %v1300_v54 = vadd.f32 %v1260_v52, %v1172_v46  ;;  %1426 = vst.msk [vmem:[%s6539_s23 + $0xa8] sm:$0xff] %vm496_vm2, %v1394_v49  ;;  %v5048_v55 = vpack.c.bf16 %v1394_v49, %v1393_v39  ;;  %1427 = vst.msk [vmem:[%s6539_s23 + $0xb0] sm:$0xff] %vm496_vm2, %v1395_v50  ;;  %v1451_v39 = vld [vmem:[#allocation5 + $0x70] sm:$0xff]  ;;  %v1456_v42 = vld [vmem:[#allocation5 + $0x98] sm:$0xff] }
 0x230   : > { %v1364_v58 = vld [vmem:[#allocation2 + $0xb8] sm:$0xff]  ;;  %v1365_v59 = vld [vmem:[#allocation2 + $0xc0] sm:$0xff]  ;;  %v1458_v44 = vld [vmem:[#allocation5 + $0xa8] sm:$0xff] }
 0x231   : > { %1334 = vst.msk [vmem:[#allocation2 + $0xe0] sm:$0xff] %vm496_vm2, %v1301_v53  ;;  %1333 = vst.msk [vmem:[#allocation2 + $0xd8] sm:$0xff] %vm496_vm2, %v1300_v54  ;;  %5049 = vmatpush1.bf16.msra.mxu1 %v5048_v55  ;;  %v1396_v60 = vmul.f32 0.0625, %v1364_v58  ;;  %v1397_v61 = vmul.f32 0.0625, %v1365_v59  ;;  %v1455_v43 = vld [vmem:[#allocation5 + $0x90] sm:$0xff]  ;;  %v1457_v45 = vld [vmem:[#allocation5 + $0xa0] sm:$0xff] }
 0x232   : > { %v1269_v62 = vpop.xlane.xlu1 %1268  ;;  %v1266_v63 = vpop.xlane.xlu0 %1265  ;;  %5050 = vmatprep.subr.bf16.mxu1 %v5905_v28  ;;  %v1460_v46 = vld [vmem:[#allocation5 + $0xb8] sm:$0xff]  ;;  %v1459_v47 = vld [vmem:[#allocation5 + $0xb0] sm:$0xff]  ;;  %v1462_v48 = vld [vmem:[#allocation5 + $0xc8] sm:$0xff] }
 0x233   : > { %v1303_v0 = vadd.f32 %v1269_v62, %v1175_v56  ;;  %v1302_v1 = vadd.f32 %v1266_v63, %v1174_v57  ;;  %1428 = vst.msk [vmem:[%s6539_s23 + $0xb8] sm:$0xff] %vm496_vm2, %v1396_v60  ;;  %v5051_v2 = vpack.c.bf16 %v1396_v60, %v1395_v50  ;;  %1429 = vst.msk [vmem:[%s6539_s23 + $0xc0] sm:$0xff] %vm496_vm2, %v1397_v61  ;;  %v1461_v49 = vld [vmem:[#allocation5 + $0xc0] sm:$0xff]  ;;  %v1464_v50 = vld [vmem:[#allocation5 + $0xd8] sm:$0xff] }
 0x234   : > { %v1366_v4 = vld [vmem:[#allocation2 + $0xc8] sm:$0xff]  ;;  %v1367_v5 = vld [vmem:[#allocation2 + $0xd0] sm:$0xff]  ;;  %v1463_v51 = vld [vmem:[#allocation5 + $0xd0] sm:$0xff] }
 0x235   : > { %1336 = vst.msk [vmem:[#allocation2 + $0xf0] sm:$0xff] %vm496_vm2, %v1303_v0  ;;  %1335 = vst.msk [vmem:[#allocation2 + $0xe8] sm:$0xff] %vm496_vm2, %v1302_v1  ;;  %5052 = vmatpush1.bf16.msra.mxu1 %v5051_v2  ;;  %v1398_v6 = vmul.f32 0.0625, %v1366_v4  ;;  %v1399_v7 = vmul.f32 0.0625, %v1367_v5  ;;  %v1466_v52 = vld [vmem:[#allocation5 + $0xe8] sm:$0xff]  ;;  %v1465_v53 = vld [vmem:[#allocation5 + $0xe0] sm:$0xff] }
 0x236   : > { %v1272_v8 = vpop.xlane.xlu0 %1271  ;;  %5053 = vmatprep.subr.bf16.mxu1 %v5905_v28  ;;  %v1468_v54 = vld [vmem:[#allocation5 + $0xf8] sm:$0xff]  ;;  %v1467_v55 = vld [vmem:[#allocation5 + $0xf0] sm:$0xff]  ;;  %v1470_v56 = vld [vmem:[#allocation5 + $0x108] sm:$0xff] }
 0x237   : > { %v1304_v9 = vadd.f32 %v1272_v8, %v1176_v3  ;;  %1430 = vst.msk [vmem:[%s6539_s23 + $0xc8] sm:$0xff] %vm496_vm2, %v1398_v6  ;;  %v5054_v10 = vpack.c.bf16 %v1398_v6, %v1397_v61  ;;  %1431 = vst.msk [vmem:[%s6539_s23 + $0xd0] sm:$0xff] %vm496_vm2, %v1399_v7  ;;  %v1469_v57 = vld [vmem:[#allocation5 + $0x100] sm:$0xff]  ;;  %v1472_v58 = vld [vmem:[#allocation5 + $0x118] sm:$0xff] }
 0x238   : > { %v1368_v11 = vld [vmem:[#allocation2 + $0xd8] sm:$0xff]  ;;  %v1369_v12 = vld [vmem:[#allocation2 + $0xe0] sm:$0xff]  ;;  %v1474_v60 = vld [vmem:[#allocation5 + $0x128] sm:$0xff] }
 0x239   : > { %1337 = vst.msk [vmem:[#allocation2 + $0xf8] sm:$0xff] %vm496_vm2, %v1304_v9  ;;  %5055 = vmatpush1.bf16.msra.mxu1 %v5054_v10  ;;  %v1400_v13 = vmul.f32 0.0625, %v1368_v11  ;;  %v1401_v14 = vmul.f32 0.0625, %v1369_v12  ;;  %v1471_v59 = vld [vmem:[#allocation5 + $0x110] sm:$0xff]  ;;  %v1473_v61 = vld [vmem:[#allocation5 + $0x120] sm:$0xff]  ;;  %v1476_v62 = vld [vmem:[#allocation5 + $0x138] sm:$0xff] }
 0x23a   : > { %5056 = vmatprep.subr.bf16.mxu1 %v5905_v28  ;;  %v1475_v63 = vld [vmem:[#allocation5 + $0x130] sm:$0xff]  ;;  %v1478_v0 = vld [vmem:[#allocation5 + $0x148] sm:$0xff]  ;;  %v1477_v1 = vld [vmem:[#allocation5 + $0x140] sm:$0xff] }
 0x23b   : > { %1432 = vst.msk [vmem:[%s6539_s23 + $0xd8] sm:$0xff] %vm496_vm2, %v1400_v13  ;;  %v5057_v15 = vpack.c.bf16 %v1400_v13, %v1399_v7  ;;  %1433 = vst.msk [vmem:[%s6539_s23 + $0xe0] sm:$0xff] %vm496_vm2, %v1401_v14  ;;  %v1480_v2 = vld [vmem:[#allocation5 + $0x158] sm:$0xff]  ;;  %v1479_v3 = vld [vmem:[#allocation5 + $0x150] sm:$0xff] }
 0x23c   : > { %v1370_v16 = vld [vmem:[#allocation2 + $0xe8] sm:$0xff]  ;;  %v1371_v17 = vld [vmem:[#allocation2 + $0xf0] sm:$0xff]  ;;  %v1484_v6 = vld [vmem:[#allocation5 + $0x178] sm:$0xff] }
 0x23d   : > { %5058 = vmatpush1.bf16.msra.mxu1 %v5057_v15  ;;  %v1402_v18 = vmul.f32 0.0625, %v1370_v16  ;;  %v1403_v19 = vmul.f32 0.0625, %v1371_v17  ;;  %v1482_v4 = vld [vmem:[#allocation5 + $0x168] sm:$0xff]  ;;  %v1481_v5 = vld [vmem:[#allocation5 + $0x160] sm:$0xff]  ;;  %v1483_v7 = vld [vmem:[#allocation5 + $0x170] sm:$0xff] }
 0x23e   : > { %5059 = vmatprep.subr.bf16.mxu1 %v5905_v28  ;;  %v1486_v8 = vld [vmem:[#allocation5 + $0x188] sm:$0xff]  ;;  %v1485_v9 = vld [vmem:[#allocation5 + $0x180] sm:$0xff]  ;;  %v1488_v10 = vld [vmem:[#allocation5 + $0x198] sm:$0xff] }
 0x23f   : > { %1434 = vst.msk [vmem:[%s6539_s23 + $0xe8] sm:$0xff] %vm496_vm2, %v1402_v18  ;;  %v5060_v20 = vpack.c.bf16 %v1402_v18, %v1401_v14  ;;  %1435 = vst.msk [vmem:[%s6539_s23 + $0xf0] sm:$0xff] %vm496_vm2, %v1403_v19  ;;  %v1487_v11 = vld [vmem:[#allocation5 + $0x190] sm:$0xff]  ;;  %v1490_v12 = vld [vmem:[#allocation5 + $0x1a8] sm:$0xff] }
 0x240   : > { %v1372_v21 = vld [vmem:[#allocation2 + $0xf8] sm:$0xff]  ;;  %v1489_v13 = vld [vmem:[#allocation5 + $0x1a0] sm:$0xff]  ;;  %v1492_v14 = vld [vmem:[#allocation5 + $0x1b8] sm:$0xff] }
 0x241   : > { %5061 = vmatpush1.bf16.msra.mxu1 %v5060_v20  ;;  %v1404_v22 = vmul.f32 0.0625, %v1372_v21  ;;  %v1491_v15 = vld [vmem:[#allocation5 + $0x1b0] sm:$0xff]  ;;  %v1494_v16 = vld [vmem:[#allocation5 + $0x1c8] sm:$0xff]  ;;  %v1493_v17 = vld [vmem:[#allocation5 + $0x1c0] sm:$0xff] }
 0x242   : > { %5062 = vmatprep.subr.bf16.mxu1 %v5905_v28  ;;  %v1496_v18 = vld [vmem:[#allocation5 + $0x1d8] sm:$0xff]  ;;  %v1498_v20 = vld [vmem:[#allocation5 + $0x1e8] sm:$0xff]  ;;  %v1497_v21 = vld [vmem:[#allocation5 + $0x1e0] sm:$0xff] }
 0x243   : > { %1436 = vst.msk [vmem:[%s6539_s23 + $0xf8] sm:$0xff] %vm496_vm2, %v1404_v22  ;;  %v5063_v23 = vpack.c.bf16 %v1404_v22, %v1403_v19  ;;  %v1495_v19 = vld [vmem:[#allocation5 + $0x1d0] sm:$0xff]  ;;  %v1500_v22 = vld [vmem:[#allocation5 + $0x1f8] sm:$0xff] }
 0x245   : > { %5064 = vmatpush1.bf16.msra.mxu1 %v5063_v23  ;;  %v1499_v23 = vld [vmem:[#allocation5 + $0x1f0] sm:$0xff] }
 0x246   : > { %5289 = vmatprep.subr.bf16.mxu1 %v5905_v28 }
 0x248   : > { %1694 = vmatmul.mubr.f32.vlgmr.msra.gmra.mrb[32].mxu1 %v1437_v24  ;;  %v1502_v24 = vld [vmem:[#allocation5 + $0x208] sm:$0xff] }
 0x249   : > { %1698 = vmatprep.mubr.f32.mxu1 %v1440_v25  ;;  %v1501_v25 = vld [vmem:[#allocation5 + $0x200] sm:$0xff] }
 0x24c   : > { %1699 = vmatmul.mubr.f32.gmra.mrb[34].mxu1 %v1439_v26  ;;  %v1504_v26 = vld [vmem:[#allocation5 + $0x218] sm:$0xff] }
 0x24d   : > { %1703 = vmatprep.mubr.f32.mxu1 %v1442_v27  ;;  %v1503_v27 = vld [vmem:[#allocation5 + $0x210] sm:$0xff] }
 0x250   : > { %1704 = vmatmul.mubr.f32.gmra.mrb[36].mxu1 %v1441_v29  ;;  %v1506_v29 = vld [vmem:[#allocation5 + $0x228] sm:$0xff] }
 0x251   : > { %1708 = vmatprep.mubr.f32.mxu1 %v1444_v30  ;;  %v1505_v30 = vld [vmem:[#allocation5 + $0x220] sm:$0xff] }
 0x254   : > { %1709 = vmatmul.mubr.f32.gmra.mrb[38].mxu1 %v1443_v31  ;;  %v1508_v31 = vld [vmem:[#allocation5 + $0x238] sm:$0xff] }
 0x255   : > { %1713 = vmatprep.mubr.f32.mxu1 %v1446_v32  ;;  %v1507_v32 = vld [vmem:[#allocation5 + $0x230] sm:$0xff] }
 0x258   : > { %1714 = vmatmul.mubr.f32.gmra.mrb[40].mxu1 %v1445_v33  ;;  %v1510_v33 = vld [vmem:[#allocation5 + $0x248] sm:$0xff] }
 0x259   : > { %1718 = vmatprep.mubr.f32.mxu1 %v1448_v34  ;;  %v1509_v34 = vld [vmem:[#allocation5 + $0x240] sm:$0xff] }
 0x25c   : > { %1719 = vmatmul.mubr.f32.gmra.mrb[42].mxu1 %v1447_v35  ;;  %v1512_v35 = vld [vmem:[#allocation5 + $0x258] sm:$0xff] }
 0x25d   : > { %1723 = vmatprep.mubr.f32.mxu1 %v1450_v36  ;;  %v1511_v36 = vld [vmem:[#allocation5 + $0x250] sm:$0xff] }
 0x260   : > { %1724 = vmatmul.mubr.f32.gmra.mrb[44].mxu1 %v1449_v37  ;;  %v1514_v37 = vld [vmem:[#allocation5 + $0x268] sm:$0xff] }
 0x261   : > { %1728 = vmatprep.mubr.f32.mxu1 %v1452_v38  ;;  %v1513_v38 = vld [vmem:[#allocation5 + $0x260] sm:$0xff] }
 0x264   : > { %1729 = vmatmul.mubr.f32.gmra.mrb[46].mxu1 %v1451_v39  ;;  %v1516_v39 = vld [vmem:[#allocation5 + $0x278] sm:$0xff] }
 0x265   : > { %1733 = vmatprep.mubr.f32.mxu1 %v1454_v40  ;;  %v1515_v40 = vld [vmem:[#allocation5 + $0x270] sm:$0xff] }
 0x268   : > { %1734 = vmatmul.mubr.f32.gmra.mrb[48].mxu1 %v1453_v41  ;;  %v1518_v41 = vld [vmem:[#allocation5 + $0x288] sm:$0xff] }
 0x269   : > { %1738 = vmatprep.mubr.f32.mxu1 %v1456_v42  ;;  %v1517_v42 = vld [vmem:[#allocation5 + $0x280] sm:$0xff] }
 0x26c   : > { %1739 = vmatmul.mubr.f32.gmra.mrb[50].mxu1 %v1455_v43  ;;  %v1520_v43 = vld [vmem:[#allocation5 + $0x298] sm:$0xff] }
 0x26d   : > { %1743 = vmatprep.mubr.f32.mxu1 %v1458_v44  ;;  %v1519_v44 = vld [vmem:[#allocation5 + $0x290] sm:$0xff] }
 0x270   : > { %1744 = vmatmul.mubr.f32.gmra.mrb[52].mxu1 %v1457_v45  ;;  %v1522_v45 = vld [vmem:[#allocation5 + $0x2a8] sm:$0xff] }
 0x271   : > { %1748 = vmatprep.mubr.f32.mxu1 %v1460_v46  ;;  %v1521_v46 = vld [vmem:[#allocation5 + $0x2a0] sm:$0xff] }
 0x274   : > { %1749 = vmatmul.mubr.f32.gmra.mrb[54].mxu1 %v1459_v47  ;;  %v1524_v47 = vld [vmem:[#allocation5 + $0x2b8] sm:$0xff] }
 0x275   : > { %1753 = vmatprep.mubr.f32.mxu1 %v1462_v48  ;;  %v1523_v48 = vld [vmem:[#allocation5 + $0x2b0] sm:$0xff] }
 0x278   : > { %1754 = vmatmul.mubr.f32.gmra.mrb[56].mxu1 %v1461_v49  ;;  %v1526_v49 = vld [vmem:[#allocation5 + $0x2c8] sm:$0xff] }
 0x279   : > { %1758 = vmatprep.mubr.f32.mxu1 %v1464_v50  ;;  %v1525_v50 = vld [vmem:[#allocation5 + $0x2c0] sm:$0xff] }
 0x27c   : > { %1759 = vmatmul.mubr.f32.gmra.mrb[58].mxu1 %v1463_v51  ;;  %v1528_v51 = vld [vmem:[#allocation5 + $0x2d8] sm:$0xff] }
 0x27d   : > { %1763 = vmatprep.mubr.f32.mxu1 %v1466_v52  ;;  %v1527_v52 = vld [vmem:[#allocation5 + $0x2d0] sm:$0xff] }
 0x280   : > { %1764 = vmatmul.mubr.f32.gmra.mrb[60].mxu1 %v1465_v53  ;;  %v1530_v53 = vld [vmem:[#allocation5 + $0x2e8] sm:$0xff] }
 0x281   : > { %1768 = vmatprep.mubr.f32.mxu1 %v1468_v54  ;;  %v1529_v54 = vld [vmem:[#allocation5 + $0x2e0] sm:$0xff] }
 0x284   : > { %1769 = vmatmul.mubr.f32.gmra.mrb[62].mxu1 %v1467_v55  ;;  %v1532_v55 = vld [vmem:[#allocation5 + $0x2f8] sm:$0xff] }
 0x285   : > { %1773 = vmatprep.mubr.f32.mxu1 %v1470_v56  ;;  %v1531_v56 = vld [vmem:[#allocation5 + $0x2f0] sm:$0xff] }
 0x288   : > { %1774 = vmatmul.mubr.f32.gmra.mrb[64].mxu1 %v1469_v57  ;;  %v1534_v57 = vld [vmem:[#allocation5 + $0x308] sm:$0xff] }
 0x289   : > { %1778 = vmatprep.mubr.f32.mxu1 %v1472_v58  ;;  %v1533_v58 = vld [vmem:[#allocation5 + $0x300] sm:$0xff] }
 0x28c   : > { %1779 = vmatmul.mubr.f32.gmra.mrb[66].mxu1 %v1471_v59  ;;  %v1536_v59 = vld [vmem:[#allocation5 + $0x318] sm:$0xff] }
 0x28d   : > { %1783 = vmatprep.mubr.f32.mxu1 %v1474_v60  ;;  %v1535_v60 = vld [vmem:[#allocation5 + $0x310] sm:$0xff] }
 0x290   : > { %1784 = vmatmul.mubr.f32.gmra.mrb[68].mxu1 %v1473_v61  ;;  %v1538_v61 = vld [vmem:[#allocation5 + $0x328] sm:$0xff] }
 0x291   : > { %1788 = vmatprep.mubr.f32.mxu1 %v1476_v62  ;;  %v1537_v62 = vld [vmem:[#allocation5 + $0x320] sm:$0xff] }
 0x294   : > { %1789 = vmatmul.mubr.f32.gmra.mrb[70].mxu1 %v1475_v63  ;;  %v1540_v63 = vld [vmem:[#allocation5 + $0x338] sm:$0xff] }
 0x295   : > { %1793 = vmatprep.mubr.f32.mxu1 %v1478_v0  ;;  %v1539_v0 = vld [vmem:[#allocation5 + $0x330] sm:$0xff] }
 0x298   : > { %1794 = vmatmul.mubr.f32.gmra.mrb[72].mxu1 %v1477_v1  ;;  %v1542_v1 = vld [vmem:[#allocation5 + $0x348] sm:$0xff] }
 0x299   : > { %1798 = vmatprep.mubr.f32.mxu1 %v1480_v2  ;;  %v1541_v2 = vld [vmem:[#allocation5 + $0x340] sm:$0xff] }
 0x29c   : > { %1799 = vmatmul.mubr.f32.gmra.mrb[74].mxu1 %v1479_v3  ;;  %v1544_v3 = vld [vmem:[#allocation5 + $0x358] sm:$0xff] }
 0x29d   : > { %1803 = vmatprep.mubr.f32.mxu1 %v1482_v4  ;;  %v1543_v4 = vld [vmem:[#allocation5 + $0x350] sm:$0xff] }
 0x2a0   : > { %1804 = vmatmul.mubr.f32.gmra.mrb[76].mxu1 %v1481_v5  ;;  %v1546_v5 = vld [vmem:[#allocation5 + $0x368] sm:$0xff] }
 0x2a1   : > { %1808 = vmatprep.mubr.f32.mxu1 %v1484_v6  ;;  %v1565_v6 = vld [vmem:[%s7701_s26] sm:$0xff] }
 0x2a4   : > { %1809 = vmatmul.mubr.f32.gmra.mrb[78].mxu1 %v1483_v7 }
 0x2a5   : > { %1813 = vmatprep.mubr.f32.mxu1 %v1486_v8 }
 0x2a8   : > { %1814 = vmatmul.mubr.f32.gmra.mrb[80].mxu1 %v1485_v9  ;;  %v1566_v9 = vld [vmem:[%s7701_s26 + $0x8] sm:$0xff] }
 0x2a9   : > { %1818 = vmatprep.mubr.f32.mxu1 %v1488_v10  ;;  %v1545_v10 = vld [vmem:[#allocation5 + $0x360] sm:$0xff] }
 0x2ac   : > { %1819 = vmatmul.mubr.f32.gmra.mrb[82].mxu1 %v1487_v11 }
 0x2ad   : > { %1823 = vmatprep.mubr.f32.mxu1 %v1490_v12  ;;  %v1548_v12 = vld [vmem:[#allocation5 + $0x378] sm:$0xff] }
 0x2b0   : > { %1824 = vmatmul.mubr.f32.gmra.mrb[84].mxu1 %v1489_v13 }
 0x2b1   : > { %1828 = vmatprep.mubr.f32.mxu1 %v1492_v14  ;;  %v2079_v14 = vld [vmem:[#allocation7 + $0x8] sm:$0xff] }
 0x2b2   : > { %2782 = vmatprep.mubr.f32.mxu0 %v2079_v14  ;;  %v1563_v14 = vld [vmem:[#allocation5 + $0x3f0] sm:$0xff] }
 0x2b4   : > { %1829 = vmatmul.mubr.f32.gmra.mrb[86].mxu1 %v1491_v15 }
 0x2b5   : > { %1833 = vmatprep.mubr.f32.mxu1 %v1494_v16 }
 0x2b8   : > { %1834 = vmatmul.mubr.f32.gmra.mrb[88].mxu1 %v1493_v17  ;;  %v1547_v17 = vld [vmem:[#allocation5 + $0x370] sm:$0xff] }
 0x2b9   : > { %1838 = vmatprep.mubr.f32.mxu1 %v1496_v18 }
 0x2bc   : > { %1839 = vmatmul.mubr.f32.gmra.mrb[90].mxu1 %v1495_v19 }
 0x2bd   : > { %1843 = vmatprep.mubr.f32.mxu1 %v1498_v20  ;;  %v1550_v20 = vld [vmem:[#allocation5 + $0x388] sm:$0xff] }
 0x2c0   : > { %1844 = vmatmul.mubr.f32.gmra.mrb[92].mxu1 %v1497_v21  ;;  %v1567_v21 = vld [vmem:[%s7701_s26 + $0x10] sm:$0xff] }
 0x2c1   : > { %1848 = vmatprep.mubr.f32.mxu1 %v1500_v22 }
 0x2c4   : > { %1849 = vmatmul.mubr.f32.gmra.mrb[94].mxu1 %v1499_v23 }
 0x2c5   : > { %1853 = vmatprep.mubr.f32.mxu1 %v1502_v24 }
 0x2c8   : > { %1854 = vmatmul.mubr.f32.gmra.mrb[96].mxu1 %v1501_v25  ;;  %v1568_v25 = vld [vmem:[%s7701_s26 + $0x18] sm:$0xff] }
 0x2c9   : > { %1858 = vmatprep.mubr.f32.mxu1 %v1504_v26  ;;  %v1549_v26 = vld [vmem:[#allocation5 + $0x380] sm:$0xff] }
 0x2cc   : > { %1859 = vmatmul.mubr.f32.gmra.mrb[98].mxu1 %v1503_v27 }
 0x2cd   : > { %1863 = vmatprep.mubr.f32.mxu1 %v1506_v29  ;;  %v1552_v29 = vld [vmem:[#allocation5 + $0x398] sm:$0xff] }
 0x2d0   : > { %1864 = vmatmul.mubr.f32.gmra.mrb[100].mxu1 %v1505_v30 }
 0x2d1   : > { %1868 = vmatprep.mubr.f32.mxu1 %v1508_v31 }
 0x2d4   : > { %1869 = vmatmul.mubr.f32.gmra.mrb[102].mxu1 %v1507_v32 }
 0x2d5   : > { %1873 = vmatprep.mubr.f32.mxu1 %v1510_v33  ;;  %v1551_v33 = vld [vmem:[#allocation5 + $0x390] sm:$0xff] }
 0x2d8   : > { %1874 = vmatmul.mubr.f32.gmra.mrb[104].mxu1 %v1509_v34 }
 0x2d9   : > { %1878 = vmatprep.mubr.f32.mxu1 %v1512_v35 }
 0x2dc   : > { %1879 = vmatmul.mubr.f32.gmra.mrb[106].mxu1 %v1511_v36  ;;  %v1554_v36 = vld [vmem:[#allocation5 + $0x3a8] sm:$0xff] }
 0x2dd   : > { %1883 = vmatprep.mubr.f32.mxu1 %v1514_v37  ;;  %v1569_v37 = vld [vmem:[%s7701_s26 + $0x20] sm:$0xff] }
 0x2e0   : > { %1884 = vmatmul.mubr.f32.gmra.mrb[108].mxu1 %v1513_v38 }
 0x2e1   : > { %1888 = vmatprep.mubr.f32.mxu1 %v1516_v39 }
 0x2e4   : > { %1889 = vmatmul.mubr.f32.gmra.mrb[110].mxu1 %v1515_v40 }
 0x2e5   : > { %1893 = vmatprep.mubr.f32.mxu1 %v1518_v41  ;;  %v1570_v41 = vld [vmem:[%s7701_s26 + $0x28] sm:$0xff] }
 0x2e8   : > { %1894 = vmatmul.mubr.f32.gmra.mrb[112].mxu1 %v1517_v42  ;;  %v1553_v42 = vld [vmem:[#allocation5 + $0x3a0] sm:$0xff] }
 0x2e9   : > { %1898 = vmatprep.mubr.f32.mxu1 %v1520_v43 }
 0x2ec   : > { %1899 = vmatmul.mubr.f32.gmra.mrb[114].mxu1 %v1519_v44  ;;  %v1556_v44 = vld [vmem:[#allocation5 + $0x3b8] sm:$0xff] }
 0x2ed   : > { %1903 = vmatprep.mubr.f32.mxu1 %v1522_v45 }
 0x2f0   : > { %1904 = vmatmul.mubr.f32.gmra.mrb[116].mxu1 %v1521_v46 }
 0x2f1   : > { %1908 = vmatprep.mubr.f32.mxu1 %v1524_v47 }
 0x2f4   : > { %1909 = vmatmul.mubr.f32.gmra.mrb[118].mxu1 %v1523_v48  ;;  %v1555_v48 = vld [vmem:[#allocation5 + $0x3b0] sm:$0xff] }
 0x2f5   : > { %1913 = vmatprep.mubr.f32.mxu1 %v1526_v49 }
 0x2f8   : > { %1914 = vmatmul.mubr.f32.gmra.mrb[120].mxu1 %v1525_v50 }
 0x2f9   : > { %1918 = vmatprep.mubr.f32.mxu1 %v1528_v51  ;;  %v1558_v51 = vld [vmem:[#allocation5 + $0x3c8] sm:$0xff] }
 0x2fc   : > { %1919 = vmatmul.mubr.f32.gmra.mrb[122].mxu1 %v1527_v52  ;;  %v1571_v52 = vld [vmem:[%s7701_s26 + $0x30] sm:$0xff] }
 0x2fd   : > { %1923 = vmatprep.mubr.f32.mxu1 %v1530_v53 }
 0x300   : > { %1924 = vmatmul.mubr.f32.gmra.mrb[124].mxu1 %v1529_v54 }
 0x301   : > { %1928 = vmatprep.mubr.f32.mxu1 %v1532_v55 }
 0x304   : > { %1929 = vmatmul.mubr.f32.gmra.mrb[126].mxu1 %v1531_v56  ;;  %v1572_v56 = vld [vmem:[%s7701_s26 + $0x38] sm:$0xff] }
 0x305   : > { %1933 = vmatprep.mubr.f32.mxu1 %v1534_v57  ;;  %v1557_v57 = vld [vmem:[#allocation5 + $0x3c0] sm:$0xff] }
 0x308   : > { %1934 = vmatmul.mubr.f32.gmra.mrb[128].mxu1 %v1533_v58 }
 0x309   : > { %1938 = vmatprep.mubr.f32.mxu1 %v1536_v59  ;;  %v1560_v59 = vld [vmem:[#allocation5 + $0x3d8] sm:$0xff] }
 0x30c   : > { %1939 = vmatmul.mubr.f32.gmra.mrb[130].mxu1 %v1535_v60 }
 0x30d   : > { %1943 = vmatprep.mubr.f32.mxu1 %v1538_v61 }
 0x310   : > { %1944 = vmatmul.mubr.f32.gmra.mrb[132].mxu1 %v1537_v62 }
 0x311   : > { %1948 = vmatprep.mubr.f32.mxu1 %v1540_v63  ;;  %v1559_v63 = vld [vmem:[#allocation5 + $0x3d0] sm:$0xff] }
 0x314   : > { %1949 = vmatmul.mubr.f32.gmra.mrb[134].mxu1 %v1539_v0 }
 0x315   : > { %1953 = vmatprep.mubr.f32.mxu1 %v1542_v1 }
 0x318   : > { %1954 = vmatmul.mubr.f32.gmra.mrb[136].mxu1 %v1541_v2  ;;  %v1562_v2 = vld [vmem:[#allocation5 + $0x3e8] sm:$0xff] }
 0x319   : > { %1958 = vmatprep.mubr.f32.mxu1 %v1544_v3  ;;  %v1573_v3 = vld [vmem:[%s7701_s26 + $0x40] sm:$0xff] }
 0x31b   : > { %v1695_v7 = vpop.f32.mrb[32].mxu1 }
 0x31c   : > { %v1697_v8 = vpop.f32.mrb[33].mxu1  ;;  %1959 = vmatmul.mubr.f32.gmra.mrb[138].mxu1 %v1543_v4  ;;  %v1696_v11 = vadd.f32 %v1695_v7, %v1565_v6  ;;  %v1574_v7 = vld [vmem:[%s7701_s26 + $0x48] sm:$0xff] }
 0x31d   : > { %1963 = vmatprep.mubr.f32.mxu1 %v1546_v5  ;;  %v1561_v8 = vld [vmem:[#allocation5 + $0x3e0] sm:$0xff] }
 0x31e   : > { %v2014_v18 = vmax.f32 %v1696_v11, 0.0 }
 0x31f   : > { %v1700_v13 = vpop.f32.mrb[34].mxu1 }
 0x320   : > { %v1701_v15 = vadd.f32 %v1700_v13, %v1566_v9  ;;  %v1702_v16 = vpop.f32.mrb[35].mxu1  ;;  %1964 = vmatmul.mubr.f32.gmra.mrb[140].mxu1 %v1545_v10  ;;  %v1564_v10 = vld [vmem:[#allocation5 + $0x3f8] sm:$0xff] }
 0x321   : > { %1968 = vmatprep.mubr.f32.mxu1 %v1548_v12 }
 0x322   : > { %v2015_v19 = vmax.f32 %v1701_v15, 0.0 }
 0x323   : > { %v1705_v22 = vpop.f32.mrb[36].mxu1 }
 0x324   : > { %v1707_v23 = vpop.f32.mrb[37].mxu1  ;;  %v5066_v24 = vpack.c.bf16 %v2015_v19, %v2014_v18  ;;  %1969 = vmatmul.mubr.f32.gmra.mrb[142].mxu1 %v1547_v17  ;;  %v1706_v27 = vadd.f32 %v1705_v22, %v1567_v21  ;;  %v1575_v17 = vld [vmem:[%s7701_s26 + $0x50] sm:$0xff]  ;;  %v1576_v21 = vld [vmem:[%s7701_s26 + $0x58] sm:$0xff] }
 0x325   : > { %1973 = vmatprep.mubr.f32.mxu1 %v1550_v20 }
 0x326   : > { %5067 = vmatpush1.bf16.msra.mxu0 %v5066_v24  ;;  %5305 = vmatpush1.bf16.msra.mxu1 %v5066_v24  ;;  %v2016_v34 = vmax.f32 %v1706_v27, 0.0 }
 0x327   : > { %v1710_v30 = vpop.f32.mrb[38].mxu1  ;;  %5068 = vmatprep.subr.bf16.mxu0 %v5905_v28  ;;  %5290 = vmatprep.subr.bf16.mxu1 %v5905_v28 }
 0x328   : > { %v1711_v31 = vadd.f32 %v1710_v30, %v1568_v25  ;;  %v1712_v32 = vpop.f32.mrb[39].mxu1  ;;  %1974 = vmatmul.mubr.f32.gmra.mrb[144].mxu1 %v1549_v26 }
 0x329   : > { %1978 = vmatprep.mubr.f32.mxu1 %v1552_v29  ;;  %v1577_v29 = vld [vmem:[%s7701_s26 + $0x60] sm:$0xff] }
 0x32a   : > { %v2017_v35 = vmax.f32 %v1711_v31, 0.0 }
 0x32b   : > { %v1715_v38 = vpop.f32.mrb[40].mxu1 }
 0x32c   : > { %v1717_v39 = vpop.f32.mrb[41].mxu1  ;;  %v5069_v40 = vpack.c.bf16 %v2017_v35, %v2016_v34  ;;  %1979 = vmatmul.mubr.f32.gmra.mrb[146].mxu1 %v1551_v33  ;;  %v1716_v43 = vadd.f32 %v1715_v38, %v1569_v37  ;;  %v1578_v33 = vld [vmem:[%s7701_s26 + $0x68] sm:$0xff] }
 0x32d   : > { %1983 = vmatprep.mubr.f32.mxu1 %v1554_v36 }
 0x32e   : > { %5070 = vmatpush1.bf16.msra.mxu0 %v5069_v40  ;;  %5306 = vmatpush1.bf16.msra.mxu1 %v5069_v40  ;;  %v2018_v49 = vmax.f32 %v1716_v43, 0.0  ;;  %v1579_v40 = vld [vmem:[%s7701_s26 + $0x70] sm:$0xff] }
 0x32f   : > { %v1720_v45 = vpop.f32.mrb[42].mxu1  ;;  %5071 = vmatprep.subr.bf16.mxu0 %v5905_v28  ;;  %5291 = vmatprep.subr.bf16.mxu1 %v5905_v28 }
 0x330   : > { %v1721_v46 = vadd.f32 %v1720_v45, %v1570_v41  ;;  %v1722_v47 = vpop.f32.mrb[43].mxu1  ;;  %1984 = vmatmul.mubr.f32.gmra.mrb[148].mxu1 %v1553_v42 }
 0x331   : > { %1988 = vmatprep.mubr.f32.mxu1 %v1556_v44  ;;  %v1580_v44 = vld [vmem:[%s7701_s26 + $0x78] sm:$0xff] }
 0x332   : > { %v2019_v50 = vmax.f32 %v1721_v46, 0.0 }
 0x333   : > { %v1725_v53 = vpop.f32.mrb[44].mxu1 }
 0x334   : > { %v1727_v54 = vpop.f32.mrb[45].mxu1  ;;  %v5072_v55 = vpack.c.bf16 %v2019_v50, %v2018_v49  ;;  %1989 = vmatmul.mubr.f32.gmra.mrb[150].mxu1 %v1555_v48  ;;  %v1726_v58 = vadd.f32 %v1725_v53, %v1571_v52 }
 0x335   : > { %1993 = vmatprep.mubr.f32.mxu1 %v1558_v51  ;;  %v1581_v51 = vld [vmem:[%s7701_s26 + $0x80] sm:$0xff] }
 0x336   : > { %5073 = vmatpush1.bf16.msra.mxu0 %v5072_v55  ;;  %5307 = vmatpush1.bf16.msra.mxu1 %v5072_v55  ;;  %v2020_v0 = vmax.f32 %v1726_v58, 0.0  ;;  %v1582_v55 = vld [vmem:[%s7701_s26 + $0x88] sm:$0xff] }
 0x337   : > { %v1730_v60 = vpop.f32.mrb[46].mxu1  ;;  %5074 = vmatprep.subr.bf16.mxu0 %v5905_v28  ;;  %5292 = vmatprep.subr.bf16.mxu1 %v5905_v28 }
 0x338   : > { %v1731_v61 = vadd.f32 %v1730_v60, %v1572_v56  ;;  %v1732_v62 = vpop.f32.mrb[47].mxu1  ;;  %1994 = vmatmul.mubr.f32.gmra.mrb[152].mxu1 %v1557_v57 }
 0x339   : > { %1998 = vmatprep.mubr.f32.mxu1 %v1560_v59  ;;  %v1583_v62 = vld [vmem:[%s7701_s26 + $0x90] sm:$0xff] }
 0x33a   : > { %v2021_v1 = vmax.f32 %v1731_v61, 0.0 }
 0x33b   : > { %v1735_v4 = vpop.f32.mrb[48].mxu1 }
 0x33c   : > { %v1737_v5 = vpop.f32.mrb[49].mxu1  ;;  %v5075_v6 = vpack.c.bf16 %v2021_v1, %v2020_v0  ;;  %1999 = vmatmul.mubr.f32.gmra.mrb[154].mxu1 %v1559_v63  ;;  %v1736_v9 = vadd.f32 %v1735_v4, %v1573_v3 }
 0x33d   : > { %2003 = vmatprep.mubr.f32.mxu1 %v1562_v2  ;;  %v1584_v2 = vld [vmem:[%s7701_s26 + $0x98] sm:$0xff] }
 0x33e   : > { %5076 = vmatpush1.bf16.msra.mxu0 %v5075_v6  ;;  %5308 = vmatpush1.bf16.msra.mxu1 %v5075_v6  ;;  %v2022_v15 = vmax.f32 %v1736_v9, 0.0  ;;  %v1585_v9 = vld [vmem:[%s7701_s26 + $0xa0] sm:$0xff] }
 0x33f   : > { %v1740_v11 = vpop.f32.mrb[50].mxu1  ;;  %5077 = vmatprep.subr.bf16.mxu0 %v5905_v28  ;;  %5293 = vmatprep.subr.bf16.mxu1 %v5905_v28 }
 0x340   : > { %v1741_v12 = vadd.f32 %v1740_v11, %v1574_v7  ;;  %v1742_v13 = vpop.f32.mrb[51].mxu1  ;;  %2004 = vmatmul.mubr.f32.gmra.mrb[156].mxu1 %v1561_v8 }
 0x341   : > { %2008 = vmatprep.mubr.f32.mxu1 %v1564_v10  ;;  %v1586_v13 = vld [vmem:[%s7701_s26 + $0xa8] sm:$0xff] }
 0x342   : > { %v2023_v16 = vmax.f32 %v1741_v12, 0.0 }
 0x343   : > { %v1745_v18 = vpop.f32.mrb[52].mxu1 }
 0x344   : > { %v1747_v19 = vpop.f32.mrb[53].mxu1  ;;  %v5078_v20 = vpack.c.bf16 %v2023_v16, %v2022_v15  ;;  %2009 = vmatmul.mubr.f32.gmra.mrb[158].mxu1 %v1563_v14  ;;  %v1746_v22 = vadd.f32 %v1745_v18, %v1575_v17 }
 0x346   : > { %5079 = vmatpush1.bf16.msra.mxu0 %v5078_v20  ;;  %5309 = vmatpush1.bf16.msra.mxu1 %v5078_v20  ;;  %v2024_v26 = vmax.f32 %v1746_v22, 0.0  ;;  %v1587_v20 = vld [vmem:[%s7701_s26 + $0xb0] sm:$0xff] }
 0x347   : > { %v1750_v23 = vpop.f32.mrb[54].mxu1  ;;  %5080 = vmatprep.subr.bf16.mxu0 %v5905_v28  ;;  %5294 = vmatprep.subr.bf16.mxu1 %v5905_v28 }
 0x348   : > { %v1751_v24 = vadd.f32 %v1750_v23, %v1576_v21  ;;  %v1752_v25 = vpop.f32.mrb[55].mxu1 }
 0x34a   : > { %v2025_v27 = vmax.f32 %v1751_v24, 0.0  ;;  %v1588_v24 = vld [vmem:[%s7701_s26 + $0xb8] sm:$0xff] }
 0x34b   : > { %v1755_v30 = vpop.f32.mrb[56].mxu1 }
 0x34c   : > { %v1757_v31 = vpop.f32.mrb[57].mxu1  ;;  %v5081_v32 = vpack.c.bf16 %v2025_v27, %v2024_v26  ;;  %v1756_v34 = vadd.f32 %v1755_v30, %v1577_v29 }
 0x34e   : > { %5082 = vmatpush1.bf16.msra.mxu0 %v5081_v32  ;;  %5310 = vmatpush1.bf16.msra.mxu1 %v5081_v32  ;;  %v2026_v38 = vmax.f32 %v1756_v34, 0.0  ;;  %v1589_v32 = vld [vmem:[%s7701_s26 + $0xc0] sm:$0xff] }
 0x34f   : > { %v1760_v35 = vpop.f32.mrb[58].mxu1  ;;  %5083 = vmatprep.subr.bf16.mxu0 %v5905_v28  ;;  %5295 = vmatprep.subr.bf16.mxu1 %v5905_v28 }
 0x350   : > { %v1761_v36 = vadd.f32 %v1760_v35, %v1578_v33  ;;  %v1762_v37 = vpop.f32.mrb[59].mxu1 }
 0x352   : > { %v2027_v39 = vmax.f32 %v1761_v36, 0.0  ;;  %v1590_v36 = vld [vmem:[%s7701_s26 + $0xc8] sm:$0xff] }
 0x353   : > { %v1765_v41 = vpop.f32.mrb[60].mxu1 }
 0x354   : > { %v1767_v42 = vpop.f32.mrb[61].mxu1  ;;  %v5084_v43 = vpack.c.bf16 %v2027_v39, %v2026_v38  ;;  %v1766_v45 = vadd.f32 %v1765_v41, %v1579_v40 }
 0x356   : > { %5085 = vmatpush1.bf16.msra.mxu0 %v5084_v43  ;;  %5311 = vmatpush1.bf16.msra.mxu1 %v5084_v43  ;;  %v2028_v49 = vmax.f32 %v1766_v45, 0.0  ;;  %v1591_v43 = vld [vmem:[%s7701_s26 + $0xd0] sm:$0xff] }
 0x357   : > { %v1770_v46 = vpop.f32.mrb[62].mxu1  ;;  %5086 = vmatprep.subr.bf16.mxu0 %v5905_v28  ;;  %5296 = vmatprep.subr.bf16.mxu1 %v5905_v28 }
 0x358   : > { %v1771_v47 = vadd.f32 %v1770_v46, %v1580_v44  ;;  %v1772_v48 = vpop.f32.mrb[63].mxu1 }
 0x35a   : > { %v2029_v50 = vmax.f32 %v1771_v47, 0.0  ;;  %v1592_v47 = vld [vmem:[%s7701_s26 + $0xd8] sm:$0xff] }
 0x35b   : > { %v1775_v52 = vpop.f32.mrb[64].mxu1 }
 0x35c   : > { %v1777_v53 = vpop.f32.mrb[65].mxu1  ;;  %v5087_v54 = vpack.c.bf16 %v2029_v50, %v2028_v49  ;;  %v1776_v56 = vadd.f32 %v1775_v52, %v1581_v51 }
 0x35e   : > { %5088 = vmatpush1.bf16.msra.mxu0 %v5087_v54  ;;  %5312 = vmatpush1.bf16.msra.mxu1 %v5087_v54  ;;  %v2030_v60 = vmax.f32 %v1776_v56, 0.0  ;;  %v1593_v54 = vld [vmem:[%s7701_s26 + $0xe0] sm:$0xff] }
 0x35f   : > { %v1780_v57 = vpop.f32.mrb[66].mxu1  ;;  %5089 = vmatprep.subr.bf16.mxu0 %v5905_v28  ;;  %5297 = vmatprep.subr.bf16.mxu1 %v5905_v28 }
 0x360   : > { %v1781_v58 = vadd.f32 %v1780_v57, %v1582_v55  ;;  %v1782_v59 = vpop.f32.mrb[67].mxu1 }
 0x362   : > { %v2031_v61 = vmax.f32 %v1781_v58, 0.0  ;;  %v1594_v58 = vld [vmem:[%s7701_s26 + $0xe8] sm:$0xff] }
 0x363   : > { %v1785_v63 = vpop.f32.mrb[68].mxu1 }
 0x364   : > { %v1787_v0 = vpop.f32.mrb[69].mxu1  ;;  %v5090_v1 = vpack.c.bf16 %v2031_v61, %v2030_v60  ;;  %v1786_v3 = vadd.f32 %v1785_v63, %v1583_v62 }
 0x366   : > { %5091 = vmatpush1.bf16.msra.mxu0 %v5090_v1  ;;  %5313 = vmatpush1.bf16.msra.mxu1 %v5090_v1  ;;  %v2032_v7 = vmax.f32 %v1786_v3, 0.0  ;;  %v1595_v1 = vld [vmem:[%s7701_s26 + $0xf0] sm:$0xff] }
 0x367   : > { %v1790_v4 = vpop.f32.mrb[70].mxu1  ;;  %5092 = vmatprep.subr.bf16.mxu0 %v5905_v28  ;;  %5298 = vmatprep.subr.bf16.mxu1 %v5905_v28 }
 0x368   : > { %v1791_v5 = vadd.f32 %v1790_v4, %v1584_v2  ;;  %v1792_v6 = vpop.f32.mrb[71].mxu1 }
 0x36a   : > { %v2033_v8 = vmax.f32 %v1791_v5, 0.0  ;;  %v1596_v5 = vld [vmem:[%s7701_s26 + $0xf8] sm:$0xff] }
 0x36b   : > { %v1795_v10 = vpop.f32.mrb[72].mxu1 }
 0x36c   : > { %v1797_v11 = vpop.f32.mrb[73].mxu1  ;;  %v5093_v12 = vpack.c.bf16 %v2033_v8, %v2032_v7  ;;  %v1796_v14 = vadd.f32 %v1795_v10, %v1585_v9  ;;  %v1597_v10 = vld [vmem:[%s7701_s26 + $0x100] sm:$0xff] }
 0x36e   : > { %5094 = vmatpush1.bf16.msra.mxu0 %v5093_v12  ;;  %5314 = vmatpush1.bf16.msra.mxu1 %v5093_v12  ;;  %v2034_v18 = vmax.f32 %v1796_v14, 0.0 }
 0x36f   : > { %v1800_v15 = vpop.f32.mrb[74].mxu1  ;;  %5095 = vmatprep.subr.bf16.mxu0 %v5905_v28  ;;  %5299 = vmatprep.subr.bf16.mxu1 %v5905_v28 }
 0x370   : > { %v1801_v16 = vadd.f32 %v1800_v15, %v1586_v13  ;;  %v1802_v17 = vpop.f32.mrb[75].mxu1 }
 0x371   : > { %v1598_v17 = vld [vmem:[%s7701_s26 + $0x108] sm:$0xff] }
 0x372   : > { %v2035_v19 = vmax.f32 %v1801_v16, 0.0 }
 0x373   : > { %v1805_v21 = vpop.f32.mrb[76].mxu1 }
 0x374   : > { %v1807_v22 = vpop.f32.mrb[77].mxu1  ;;  %v5096_v23 = vpack.c.bf16 %v2035_v19, %v2034_v18  ;;  %v1806_v25 = vadd.f32 %v1805_v21, %v1587_v20  ;;  %v2078_v18 = vld [vmem:[#allocation7] sm:$0xff]  ;;  %v2083_v20 = vld [vmem:[#allocation7 + $0x28] sm:$0xff] }
 0x376   : > { %5097 = vmatpush1.bf16.msra.mxu0 %v5096_v23  ;;  %5315 = vmatpush1.bf16.msra.mxu1 %v5096_v23  ;;  %v2036_v30 = vmax.f32 %v1806_v25, 0.0 }
 0x377   : > { %v1810_v26 = vpop.f32.mrb[78].mxu1  ;;  %5098 = vmatprep.subr.bf16.mxu0 %v5905_v28  ;;  %5300 = vmatprep.subr.bf16.mxu1 %v5905_v28 }
 0x378   : > { %v1811_v27 = vadd.f32 %v1810_v26, %v1588_v24  ;;  %v1812_v29 = vpop.f32.mrb[79].mxu1  ;;  %v1599_v24 = vld [vmem:[%s7701_s26 + $0x110] sm:$0xff]  ;;  %v2082_v26 = vld [vmem:[#allocation7 + $0x20] sm:$0xff] }
 0x379   : > { %v2087_v29 = vld [vmem:[#allocation7 + $0x48] sm:$0xff] }
 0x37a   : > { %v2037_v31 = vmax.f32 %v1811_v27, 0.0 }
 0x37b   : > { %v1815_v33 = vpop.f32.mrb[80].mxu1 }
 0x37c   : > { %v5099_v34 = vpack.c.bf16 %v2037_v31, %v2036_v30  ;;  %v1817_v35 = vpop.f32.mrb[81].mxu1  ;;  %v1816_v37 = vadd.f32 %v1815_v33, %v1589_v32  ;;  %v1600_v33 = vld [vmem:[%s7701_s26 + $0x118] sm:$0xff] }
 0x37e   : > { %5100 = vmatpush1.bf16.msra.mxu0 %v5099_v34  ;;  %5316 = vmatpush1.bf16.msra.mxu1 %v5099_v34  ;;  %v2038_v41 = vmax.f32 %v1816_v37, 0.0  ;;  %v2086_v34 = vld [vmem:[#allocation7 + $0x40] sm:$0xff] }
 0x37f   : > { %v1820_v38 = vpop.f32.mrb[82].mxu1  ;;  %5101 = vmatprep.subr.bf16.mxu0 %v5905_v28  ;;  %5301 = vmatprep.subr.bf16.mxu1 %v5905_v28 }
 0x380   : > { %v1821_v39 = vadd.f32 %v1820_v38, %v1590_v36  ;;  %v1822_v40 = vpop.f32.mrb[83].mxu1  ;;  %v2091_v36 = vld [vmem:[#allocation7 + $0x68] sm:$0xff] }
 0x381   : > { %v1601_v40 = vld [vmem:[%s7701_s26 + $0x120] sm:$0xff] }
 0x382   : > { %v2039_v42 = vmax.f32 %v1821_v39, 0.0 }
 0x383   : > { %v1825_v44 = vpop.f32.mrb[84].mxu1 }
 0x384   : > { %v5102_v45 = vpack.c.bf16 %v2039_v42, %v2038_v41  ;;  %v1827_v46 = vpop.f32.mrb[85].mxu1  ;;  %v1826_v48 = vadd.f32 %v1825_v44, %v1591_v43  ;;  %v2090_v42 = vld [vmem:[#allocation7 + $0x60] sm:$0xff]  ;;  %v2095_v44 = vld [vmem:[#allocation7 + $0x88] sm:$0xff] }
 0x386   : > { %5103 = vmatpush1.bf16.msra.mxu0 %v5102_v45  ;;  %5317 = vmatpush1.bf16.msra.mxu1 %v5102_v45  ;;  %v2040_v52 = vmax.f32 %v1826_v48, 0.0  ;;  %v1602_v48 = vld [vmem:[%s7701_s26 + $0x128] sm:$0xff] }
 0x387   : > { %v1830_v49 = vpop.f32.mrb[86].mxu1  ;;  %5104 = vmatprep.subr.bf16.mxu0 %v5905_v28  ;;  %5302 = vmatprep.subr.bf16.mxu1 %v5905_v28 }
 0x388   : > { %v1831_v50 = vadd.f32 %v1830_v49, %v1592_v47  ;;  %v1832_v51 = vpop.f32.mrb[87].mxu1  ;;  %v2094_v49 = vld [vmem:[#allocation7 + $0x80] sm:$0xff] }
 0x389   : > { %v2099_v51 = vld [vmem:[#allocation7 + $0xa8] sm:$0xff] }
 0x38a   : > { %v2041_v53 = vmax.f32 %v1831_v50, 0.0 }
 0x38b   : > { %v1835_v55 = vpop.f32.mrb[88].mxu1 }
 0x38c   : > { %v5105_v56 = vpack.c.bf16 %v2041_v53, %v2040_v52  ;;  %v1837_v57 = vpop.f32.mrb[89].mxu1  ;;  %v1836_v59 = vadd.f32 %v1835_v55, %v1593_v54  ;;  %v1603_v55 = vld [vmem:[%s7701_s26 + $0x130] sm:$0xff] }
 0x38d   : > { %v2098_v57 = vld [vmem:[#allocation7 + $0xa0] sm:$0xff] }
 0x38e   : > { %5106 = vmatpush1.bf16.msra.mxu0 %v5105_v56  ;;  %5318 = vmatpush1.bf16.msra.mxu1 %v5105_v56  ;;  %v2042_v63 = vmax.f32 %v1836_v59, 0.0 }
 0x38f   : > { %v1840_v60 = vpop.f32.mrb[90].mxu1  ;;  %5107 = vmatprep.subr.bf16.mxu0 %v5905_v28  ;;  %5303 = vmatprep.subr.bf16.mxu1 %v5905_v28 }
 0x390   : > { %v1841_v61 = vadd.f32 %v1840_v60, %v1594_v58  ;;  %v1842_v62 = vpop.f32.mrb[91].mxu1  ;;  %v2103_v58 = vld [vmem:[#allocation7 + $0xc8] sm:$0xff] }
 0x392   : > { %v2043_v0 = vmax.f32 %v1841_v61, 0.0 }
 0x393   : > { %v1845_v2 = vpop.f32.mrb[92].mxu1 }
 0x394   : > { %v5108_v3 = vpack.c.bf16 %v2043_v0, %v2042_v63  ;;  %v1847_v4 = vpop.f32.mrb[93].mxu1  ;;  %v1846_v6 = vadd.f32 %v1845_v2, %v1595_v1  ;;  %v1604_v63 = vld [vmem:[%s7701_s26 + $0x138] sm:$0xff]  ;;  %v2102_v0 = vld [vmem:[#allocation7 + $0xc0] sm:$0xff]  ;;  %v2107_v1 = vld [vmem:[#allocation7 + $0xe8] sm:$0xff] }
 0x396   : > { %5109 = vmatpush1.bf16.msra.mxu0 %v5108_v3  ;;  %5319 = vmatpush1.bf16.msra.mxu1 %v5108_v3  ;;  %v2044_v11 = vmax.f32 %v1846_v6, 0.0  ;;  %v1605_v6 = vld [vmem:[%s7701_s26 + $0x140] sm:$0xff] }
 0x397   : > { %v1850_v7 = vpop.f32.mrb[94].mxu1  ;;  %5110 = vmatprep.subr.bf16.mxu0 %v5905_v28  ;;  %5304 = vmatprep.subr.bf16.mxu1 %v5905_v28 }
 0x398   : > { %v1851_v8 = vadd.f32 %v1850_v7, %v1596_v5  ;;  %v1852_v9 = vpop.f32.mrb[95].mxu1 }
 0x399   : > { %v2111_v9 = vld [vmem:[#allocation7 + $0x108] sm:$0xff] }
 0x39a   : > { %v2045_v12 = vmax.f32 %v1851_v8, 0.0  ;;  %v2106_v8 = vld [vmem:[#allocation7 + $0xe0] sm:$0xff] }
 0x39b   : > { %v1855_v13 = vpop.f32.mrb[96].mxu1 }
 0x39c   : > { %v5111_v14 = vpack.c.bf16 %v2045_v12, %v2044_v11  ;;  %v1856_v15 = vadd.f32 %v1855_v13, %v1597_v10  ;;  %v1857_v16 = vpop.f32.mrb[97].mxu1 }
 0x39d   : > { %v2115_v16 = vld [vmem:[#allocation7 + $0x128] sm:$0xff] }
 0x39e   : > { %5112 = vmatpush1.bf16.msra.mxu0 %v5111_v14  ;;  %5320 = vmatpush1.bf16.msra.mxu1 %v5111_v14  ;;  %v2046_v21 = vmax.f32 %v1856_v15, 0.0  ;;  %v1606_v14 = vld [vmem:[%s7701_s26 + $0x148] sm:$0xff] }
 0x39f   : > { %v1860_v19 = vpop.f32.mrb[98].mxu1  ;;  %5113 = vmatprep.subr.bf16.mxu0 %v5905_v28  ;;  %v2110_v15 = vld [vmem:[#allocation7 + $0x100] sm:$0xff] }
 0x3a0   : > { %v1861_v22 = vadd.f32 %v1860_v19, %v1598_v17  ;;  %v1862_v23 = vpop.f32.mrb[99].mxu1 }
 0x3a1   : > { %2783 = vmatmul.mubr.f32.vlgmr.msra.gmra.mrb[0].mxu0 %v2078_v18 }
 0x3a2   : > { %v2047_v25 = vmax.f32 %v1861_v22, 0.0  ;;  %2787 = vmatprep.mubr.f32.mxu0 %v2083_v20  ;;  %v2114_v22 = vld [vmem:[#allocation7 + $0x120] sm:$0xff] }
 0x3a3   : > { %v1865_v27 = vpop.f32.mrb[100].mxu1 }
 0x3a4   : > { %v5114_v30 = vpack.c.bf16 %v2047_v25, %v2046_v21  ;;  %v1866_v31 = vadd.f32 %v1865_v27, %v1599_v24  ;;  %v1867_v32 = vpop.f32.mrb[101].mxu1  ;;  %v1607_v21 = vld [vmem:[%s7701_s26 + $0x150] sm:$0xff] }
 0x3a5   : > { %2788 = vmatmul.mubr.f32.gmra.mrb[2].mxu0 %v2082_v26  ;;  %v2119_v24 = vld [vmem:[#allocation7 + $0x148] sm:$0xff] }
 0x3a6   : > { %5115 = vmatpush1.bf16.msra.mxu0 %v5114_v30  ;;  %2792 = vmatprep.mubr.f32.mxu0 %v2087_v29  ;;  %v2048_v37 = vmax.f32 %v1866_v31, 0.0  ;;  %v1608_v30 = vld [vmem:[%s7701_s26 + $0x158] sm:$0xff]  ;;  %v2118_v31 = vld [vmem:[#allocation7 + $0x140] sm:$0xff]  ;;  %v2123_v32 = vld [vmem:[#allocation7 + $0x168] sm:$0xff] }
 0x3a7   : > { %v1870_v35 = vpop.f32.mrb[102].mxu1  ;;  %5116 = vmatprep.subr.bf16.mxu0 %v5905_v28 }
 0x3a8   : > { %v1871_v38 = vadd.f32 %v1870_v35, %v1600_v33  ;;  %v1872_v39 = vpop.f32.mrb[103].mxu1 }
 0x3a9   : > { %2793 = vmatmul.mubr.f32.gmra.mrb[4].mxu0 %v2086_v34 }
 0x3aa   : > { %v2049_v41 = vmax.f32 %v1871_v38, 0.0  ;;  %2797 = vmatprep.mubr.f32.mxu0 %v2091_v36  ;;  %v2122_v38 = vld [vmem:[#allocation7 + $0x160] sm:$0xff] }
 0x3ab   : > { %v1875_v43 = vpop.f32.mrb[104].mxu1 }
 0x3ac   : > { %v5117_v45 = vpack.c.bf16 %v2049_v41, %v2048_v37  ;;  %v1876_v46 = vadd.f32 %v1875_v43, %v1601_v40  ;;  %v1877_v47 = vpop.f32.mrb[105].mxu1  ;;  %v1609_v37 = vld [vmem:[%s7701_s26 + $0x160] sm:$0xff]  ;;  %v2127_v40 = vld [vmem:[#allocation7 + $0x188] sm:$0xff] }
 0x3ad   : > { %2798 = vmatmul.mubr.f32.gmra.mrb[6].mxu0 %v2090_v42  ;;  %v2131_v47 = vld [vmem:[#allocation7 + $0x1a8] sm:$0xff] }
 0x3ae   : > { %5118 = vmatpush1.bf16.msra.mxu0 %v5117_v45  ;;  %2802 = vmatprep.mubr.f32.mxu0 %v2095_v44  ;;  %v2050_v52 = vmax.f32 %v1876_v46, 0.0  ;;  %v1610_v45 = vld [vmem:[%s7701_s26 + $0x168] sm:$0xff] }
 0x3af   : > { %v1880_v50 = vpop.f32.mrb[106].mxu1  ;;  %5119 = vmatprep.subr.bf16.mxu0 %v5905_v28  ;;  %v2126_v46 = vld [vmem:[#allocation7 + $0x180] sm:$0xff] }
 0x3b0   : > { %v1881_v53 = vadd.f32 %v1880_v50, %v1602_v48  ;;  %v1882_v54 = vpop.f32.mrb[107].mxu1 }
 0x3b1   : > { %2803 = vmatmul.mubr.f32.gmra.mrb[8].mxu0 %v2094_v49 }
 0x3b2   : > { %v2051_v56 = vmax.f32 %v1881_v53, 0.0  ;;  %2807 = vmatprep.mubr.f32.mxu0 %v2099_v51  ;;  %v2130_v53 = vld [vmem:[#allocation7 + $0x1a0] sm:$0xff] }
 0x3b3   : > { %v1885_v59 = vpop.f32.mrb[108].mxu1 }
 0x3b4   : > { %v5120_v60 = vpack.c.bf16 %v2051_v56, %v2050_v52  ;;  %v1886_v61 = vadd.f32 %v1885_v59, %v1603_v55  ;;  %v1887_v62 = vpop.f32.mrb[109].mxu1  ;;  %v1611_v52 = vld [vmem:[%s7701_s26 + $0x170] sm:$0xff] }
 0x3b5   : > { %2808 = vmatmul.mubr.f32.gmra.mrb[10].mxu0 %v2098_v57  ;;  %v2135_v55 = vld [vmem:[#allocation7 + $0x1c8] sm:$0xff] }
 0x3b6   : > { %2812 = vmatprep.mubr.f32.mxu0 %v2103_v58  ;;  %5121 = vmatpush1.bf16.msra.mxu0 %v5120_v60  ;;  %v2052_v3 = vmax.f32 %v1886_v61, 0.0  ;;  %v1612_v60 = vld [vmem:[%s7701_s26 + $0x178] sm:$0xff]  ;;  %v2134_v61 = vld [vmem:[#allocation7 + $0x1c0] sm:$0xff]  ;;  %v2139_v62 = vld [vmem:[#allocation7 + $0x1e8] sm:$0xff] }
 0x3b7   : > { %v1890_v2 = vpop.f32.mrb[110].mxu1  ;;  %5122 = vmatprep.subr.bf16.mxu0 %v5905_v28 }
 0x3b8   : > { %v1891_v4 = vadd.f32 %v1890_v2, %v1604_v63  ;;  %v1892_v5 = vpop.f32.mrb[111].mxu1 }
 0x3b9   : > { %2813 = vmatmul.mubr.f32.gmra.mrb[12].mxu0 %v2102_v0 }
 0x3ba   : > { %2817 = vmatprep.mubr.f32.mxu0 %v2107_v1  ;;  %v2053_v7 = vmax.f32 %v1891_v4, 0.0  ;;  %v2138_v4 = vld [vmem:[#allocation7 + $0x1e0] sm:$0xff] }
 0x3bb   : > { %v1895_v10 = vpop.f32.mrb[112].mxu1 }
 0x3bc   : > { %v5123_v11 = vpack.c.bf16 %v2053_v7, %v2052_v3  ;;  %v1896_v12 = vadd.f32 %v1895_v10, %v1605_v6  ;;  %v1897_v13 = vpop.f32.mrb[113].mxu1  ;;  %v1613_v3 = vld [vmem:[%s7701_s26 + $0x180] sm:$0xff]  ;;  %v2143_v6 = vld [vmem:[#allocation7 + $0x208] sm:$0xff] }
 0x3bd   : > { %2818 = vmatmul.mubr.f32.gmra.mrb[14].mxu0 %v2106_v8  ;;  %v2147_v13 = vld [vmem:[#allocation7 + $0x228] sm:$0xff] }
 0x3be   : > { %2822 = vmatprep.mubr.f32.mxu0 %v2111_v9  ;;  %5124 = vmatpush1.bf16.msra.mxu0 %v5123_v11  ;;  %v2054_v18 = vmax.f32 %v1896_v12, 0.0  ;;  %v1614_v11 = vld [vmem:[%s7701_s26 + $0x188] sm:$0xff] }
 0x3bf   : > { %v1900_v17 = vpop.f32.mrb[114].mxu1  ;;  %5125 = vmatprep.subr.bf16.mxu0 %v5905_v28  ;;  %v2142_v12 = vld [vmem:[#allocation7 + $0x200] sm:$0xff] }
 0x3c0   : > { %v1901_v19 = vadd.f32 %v1900_v17, %v1606_v14  ;;  %v1902_v20 = vpop.f32.mrb[115].mxu1 }
 0x3c1   : > { %2823 = vmatmul.mubr.f32.gmra.mrb[16].mxu0 %v2110_v15 }
 0x3c2   : > { %2827 = vmatprep.mubr.f32.mxu0 %v2115_v16  ;;  %v2055_v23 = vmax.f32 %v1901_v19, 0.0  ;;  %v2146_v19 = vld [vmem:[#allocation7 + $0x220] sm:$0xff] }
 0x3c3   : > { %v1905_v25 = vpop.f32.mrb[116].mxu1 }
 0x3c4   : > { %v5126_v26 = vpack.c.bf16 %v2055_v23, %v2054_v18  ;;  %v1906_v27 = vadd.f32 %v1905_v25, %v1607_v21  ;;  %v1907_v29 = vpop.f32.mrb[117].mxu1  ;;  %v1615_v18 = vld [vmem:[%s7701_s26 + $0x190] sm:$0xff] }
 0x3c5   : > { %2828 = vmatmul.mubr.f32.gmra.mrb[18].mxu0 %v2114_v22  ;;  %v2151_v21 = vld [vmem:[#allocation7 + $0x248] sm:$0xff] }
 0x3c6   : > { %2832 = vmatprep.mubr.f32.mxu0 %v2119_v24  ;;  %5127 = vmatpush1.bf16.msra.mxu0 %v5126_v26  ;;  %v2056_v34 = vmax.f32 %v1906_v27, 0.0  ;;  %v1616_v26 = vld [vmem:[%s7701_s26 + $0x198] sm:$0xff]  ;;  %v2150_v27 = vld [vmem:[#allocation7 + $0x240] sm:$0xff]  ;;  %v2155_v29 = vld [vmem:[#allocation7 + $0x268] sm:$0xff] }
 0x3c7   : > { %v1910_v33 = vpop.f32.mrb[118].mxu1  ;;  %5128 = vmatprep.subr.bf16.mxu0 %v5905_v28 }
 0x3c8   : > { %v1911_v35 = vadd.f32 %v1910_v33, %v1608_v30  ;;  %v1912_v36 = vpop.f32.mrb[119].mxu1 }
 0x3c9   : > { %2833 = vmatmul.mubr.f32.gmra.mrb[20].mxu0 %v2118_v31 }
 0x3ca   : > { %2837 = vmatprep.mubr.f32.mxu0 %v2123_v32  ;;  %v2057_v39 = vmax.f32 %v1911_v35, 0.0  ;;  %v2154_v35 = vld [vmem:[#allocation7 + $0x260] sm:$0xff] }
 0x3cb   : > { %v1915_v41 = vpop.f32.mrb[120].mxu1 }
 0x3cc   : > { %v5129_v42 = vpack.c.bf16 %v2057_v39, %v2056_v34  ;;  %v1916_v43 = vadd.f32 %v1915_v41, %v1609_v37  ;;  %v1917_v44 = vpop.f32.mrb[121].mxu1  ;;  %v1617_v34 = vld [vmem:[%s7701_s26 + $0x1a0] sm:$0xff]  ;;  %v2159_v37 = vld [vmem:[#allocation7 + $0x288] sm:$0xff] }
 0x3cd   : > { %2838 = vmatmul.mubr.f32.gmra.mrb[22].mxu0 %v2122_v38  ;;  %v2163_v44 = vld [vmem:[#allocation7 + $0x2a8] sm:$0xff] }
 0x3ce   : > { %2842 = vmatprep.mubr.f32.mxu0 %v2127_v40  ;;  %5130 = vmatpush1.bf16.msra.mxu0 %v5129_v42  ;;  %v2058_v49 = vmax.f32 %v1916_v43, 0.0  ;;  %v1618_v42 = vld [vmem:[%s7701_s26 + $0x1a8] sm:$0xff] }
 0x3cf   : > { %v1920_v48 = vpop.f32.mrb[122].mxu1  ;;  %5131 = vmatprep.subr.bf16.mxu0 %v5905_v28  ;;  %v2158_v43 = vld [vmem:[#allocation7 + $0x280] sm:$0xff] }
 0x3d0   : > { %v1921_v50 = vadd.f32 %v1920_v48, %v1610_v45  ;;  %v1922_v51 = vpop.f32.mrb[123].mxu1 }
 0x3d1   : > { %2843 = vmatmul.mubr.f32.gmra.mrb[24].mxu0 %v2126_v46 }
 0x3d2   : > { %2847 = vmatprep.mubr.f32.mxu0 %v2131_v47  ;;  %v2059_v54 = vmax.f32 %v1921_v50, 0.0  ;;  %v2162_v50 = vld [vmem:[#allocation7 + $0x2a0] sm:$0xff] }
 0x3d3   : > { %v1925_v56 = vpop.f32.mrb[124].mxu1 }
 0x3d4   : > { %v5132_v57 = vpack.c.bf16 %v2059_v54, %v2058_v49  ;;  %v1926_v58 = vadd.f32 %v1925_v56, %v1611_v52  ;;  %v1927_v59 = vpop.f32.mrb[125].mxu1  ;;  %v1619_v49 = vld [vmem:[%s7701_s26 + $0x1b0] sm:$0xff] }
 0x3d5   : > { %2848 = vmatmul.mubr.f32.gmra.mrb[26].mxu0 %v2130_v53  ;;  %v2167_v52 = vld [vmem:[#allocation7 + $0x2c8] sm:$0xff] }
 0x3d6   : > { %2852 = vmatprep.mubr.f32.mxu0 %v2135_v55  ;;  %5133 = vmatpush1.bf16.msra.mxu0 %v5132_v57  ;;  %v2060_v0 = vmax.f32 %v1926_v58, 0.0  ;;  %v1620_v57 = vld [vmem:[%s7701_s26 + $0x1b8] sm:$0xff]  ;;  %v2166_v58 = vld [vmem:[#allocation7 + $0x2c0] sm:$0xff]  ;;  %v2171_v59 = vld [vmem:[#allocation7 + $0x2e8] sm:$0xff] }
 0x3d7   : > { %v1930_v63 = vpop.f32.mrb[126].mxu1  ;;  %5134 = vmatprep.subr.bf16.mxu0 %v5905_v28 }
 0x3d8   : > { %v1931_v1 = vadd.f32 %v1930_v63, %v1612_v60  ;;  %v1932_v2 = vpop.f32.mrb[127].mxu1 }
 0x3d9   : > { %2853 = vmatmul.mubr.f32.gmra.mrb[28].mxu0 %v2134_v61 }
 0x3da   : > { %2857 = vmatprep.mubr.f32.mxu0 %v2139_v62  ;;  %v2061_v5 = vmax.f32 %v1931_v1, 0.0  ;;  %v2170_v1 = vld [vmem:[#allocation7 + $0x2e0] sm:$0xff] }
 0x3db   : > { %v1935_v7 = vpop.f32.mrb[128].mxu1 }
 0x3dc   : > { %v5135_v8 = vpack.c.bf16 %v2061_v5, %v2060_v0  ;;  %v1936_v9 = vadd.f32 %v1935_v7, %v1613_v3  ;;  %v1937_v10 = vpop.f32.mrb[129].mxu1  ;;  %v1621_v0 = vld [vmem:[%s7701_s26 + $0x1c0] sm:$0xff]  ;;  %v2175_v3 = vld [vmem:[#allocation7 + $0x308] sm:$0xff] }
 0x3dd   : > { %2858 = vmatmul.mubr.f32.gmra.mrb[30].mxu0 %v2138_v4  ;;  %v2179_v10 = vld [vmem:[#allocation7 + $0x328] sm:$0xff] }
 0x3de   : > { %2862 = vmatprep.mubr.f32.mxu0 %v2143_v6  ;;  %5136 = vmatpush1.bf16.msra.mxu0 %v5135_v8  ;;  %v2062_v15 = vmax.f32 %v1936_v9, 0.0  ;;  %v1622_v8 = vld [vmem:[%s7701_s26 + $0x1c8] sm:$0xff] }
 0x3df   : > { %v1940_v14 = vpop.f32.mrb[130].mxu1  ;;  %5137 = vmatprep.subr.bf16.mxu0 %v5905_v28  ;;  %v2174_v9 = vld [vmem:[#allocation7 + $0x300] sm:$0xff] }
 0x3e0   : > { %v1941_v16 = vadd.f32 %v1940_v14, %v1614_v11  ;;  %v1942_v17 = vpop.f32.mrb[131].mxu1 }
 0x3e1   : > { %2863 = vmatmul.mubr.f32.gmra.mrb[32].mxu0 %v2142_v12 }
 0x3e2   : > { %2867 = vmatprep.mubr.f32.mxu0 %v2147_v13  ;;  %v2063_v20 = vmax.f32 %v1941_v16, 0.0  ;;  %v2178_v16 = vld [vmem:[#allocation7 + $0x320] sm:$0xff] }
 0x3e3   : > { %v1945_v22 = vpop.f32.mrb[132].mxu1 }
 0x3e4   : > { %v5138_v23 = vpack.c.bf16 %v2063_v20, %v2062_v15  ;;  %v1946_v24 = vadd.f32 %v1945_v22, %v1615_v18  ;;  %v1947_v25 = vpop.f32.mrb[133].mxu1  ;;  %v1623_v15 = vld [vmem:[%s7701_s26 + $0x1d0] sm:$0xff] }
 0x3e5   : > { %2868 = vmatmul.mubr.f32.gmra.mrb[34].mxu0 %v2146_v19  ;;  %v2183_v18 = vld [vmem:[#allocation7 + $0x348] sm:$0xff] }
 0x3e6   : > { %2872 = vmatprep.mubr.f32.mxu0 %v2151_v21  ;;  %5139 = vmatpush1.bf16.msra.mxu0 %v5138_v23  ;;  %v2064_v31 = vmax.f32 %v1946_v24, 0.0  ;;  %v1624_v23 = vld [vmem:[%s7701_s26 + $0x1d8] sm:$0xff]  ;;  %v2182_v24 = vld [vmem:[#allocation7 + $0x340] sm:$0xff]  ;;  %v2187_v25 = vld [vmem:[#allocation7 + $0x368] sm:$0xff] }
 0x3e7   : > { %v1950_v30 = vpop.f32.mrb[134].mxu1  ;;  %5140 = vmatprep.subr.bf16.mxu0 %v5905_v28 }
 0x3e8   : > { %v1951_v32 = vadd.f32 %v1950_v30, %v1616_v26  ;;  %v1952_v33 = vpop.f32.mrb[135].mxu1 }
 0x3e9   : > { %2873 = vmatmul.mubr.f32.gmra.mrb[36].mxu0 %v2150_v27 }
 0x3ea   : > { %2877 = vmatprep.mubr.f32.mxu0 %v2155_v29  ;;  %v2065_v36 = vmax.f32 %v1951_v32, 0.0  ;;  %v2186_v32 = vld [vmem:[#allocation7 + $0x360] sm:$0xff] }
 0x3eb   : > { %v1955_v38 = vpop.f32.mrb[136].mxu1 }
 0x3ec   : > { %v5141_v39 = vpack.c.bf16 %v2065_v36, %v2064_v31  ;;  %v1956_v40 = vadd.f32 %v1955_v38, %v1617_v34  ;;  %v1957_v41 = vpop.f32.mrb[137].mxu1  ;;  %v1625_v31 = vld [vmem:[%s7701_s26 + $0x1e0] sm:$0xff]  ;;  %v2191_v34 = vld [vmem:[#allocation7 + $0x388] sm:$0xff] }
 0x3ed   : > { %2878 = vmatmul.mubr.f32.gmra.mrb[38].mxu0 %v2154_v35  ;;  %v2195_v41 = vld [vmem:[#allocation7 + $0x3a8] sm:$0xff] }
 0x3ee   : > { %2882 = vmatprep.mubr.f32.mxu0 %v2159_v37  ;;  %5142 = vmatpush1.bf16.msra.mxu0 %v5141_v39  ;;  %v2066_v46 = vmax.f32 %v1956_v40, 0.0  ;;  %v1626_v39 = vld [vmem:[%s7701_s26 + $0x1e8] sm:$0xff] }
 0x3ef   : > { %v1960_v45 = vpop.f32.mrb[138].mxu1  ;;  %5143 = vmatprep.subr.bf16.mxu0 %v5905_v28  ;;  %v2190_v40 = vld [vmem:[#allocation7 + $0x380] sm:$0xff] }
 0x3f0   : > { %v1961_v47 = vadd.f32 %v1960_v45, %v1618_v42  ;;  %v1962_v48 = vpop.f32.mrb[139].mxu1 }
 0x3f1   : > { %2883 = vmatmul.mubr.f32.gmra.mrb[40].mxu0 %v2158_v43 }
 0x3f2   : > { %2887 = vmatprep.mubr.f32.mxu0 %v2163_v44  ;;  %v2067_v51 = vmax.f32 %v1961_v47, 0.0  ;;  %v2194_v47 = vld [vmem:[#allocation7 + $0x3a0] sm:$0xff] }
 0x3f3   : > { %v1965_v53 = vpop.f32.mrb[140].mxu1 }
 0x3f4   : > { %v5144_v54 = vpack.c.bf16 %v2067_v51, %v2066_v46  ;;  %v1966_v55 = vadd.f32 %v1965_v53, %v1619_v49  ;;  %v1967_v56 = vpop.f32.mrb[141].mxu1  ;;  %v1627_v46 = vld [vmem:[%s7701_s26 + $0x1f0] sm:$0xff] }
 0x3f5   : > { %2888 = vmatmul.mubr.f32.gmra.mrb[42].mxu0 %v2162_v50  ;;  %v2199_v49 = vld [vmem:[#allocation7 + $0x3c8] sm:$0xff] }
 0x3f6   : > { %2892 = vmatprep.mubr.f32.mxu0 %v2167_v52  ;;  %5145 = vmatpush1.bf16.msra.mxu0 %v5144_v54  ;;  %v2068_v61 = vmax.f32 %v1966_v55, 0.0  ;;  %v1628_v54 = vld [vmem:[%s7701_s26 + $0x1f8] sm:$0xff]  ;;  %v2198_v55 = vld [vmem:[#allocation7 + $0x3c0] sm:$0xff]  ;;  %v2203_v56 = vld [vmem:[#allocation7 + $0x3e8] sm:$0xff] }
 0x3f7   : > { %v1970_v60 = vpop.f32.mrb[142].mxu1  ;;  %5146 = vmatprep.subr.bf16.mxu0 %v5905_v28 }
 0x3f8   : > { %v1971_v62 = vadd.f32 %v1970_v60, %v1620_v57  ;;  %v1972_v63 = vpop.f32.mrb[143].mxu1 }
 0x3f9   : > { %2893 = vmatmul.mubr.f32.gmra.mrb[44].mxu0 %v2166_v58  ;;  %v2207_v63 = vld [vmem:[#allocation7 + $0x408] sm:$0xff] }
 0x3fa   : > { %2897 = vmatprep.mubr.f32.mxu0 %v2171_v59  ;;  %v2069_v2 = vmax.f32 %v1971_v62, 0.0 }
 0x3fb   : > { %v1975_v4 = vpop.f32.mrb[144].mxu1 }
 0x3fc   : > { %v5147_v5 = vpack.c.bf16 %v2069_v2, %v2068_v61  ;;  %v1976_v6 = vadd.f32 %v1975_v4, %v1621_v0  ;;  %v1977_v7 = vpop.f32.mrb[145].mxu1  ;;  %v2202_v61 = vld [vmem:[#allocation7 + $0x3e0] sm:$0xff]  ;;  %v2211_v2 = vld [vmem:[#allocation7 + $0x428] sm:$0xff] }
 0x3fd   : > { %2898 = vmatmul.mubr.f32.gmra.mrb[46].mxu0 %v2170_v1  ;;  %v2206_v1 = vld [vmem:[#allocation7 + $0x400] sm:$0xff]  ;;  %v2215_v4 = vld [vmem:[#allocation7 + $0x448] sm:$0xff] }
 0x3fe   : > { %2902 = vmatprep.mubr.f32.mxu0 %v2175_v3  ;;  %5148 = vmatpush1.bf16.msra.mxu0 %v5147_v5  ;;  %v2070_v12 = vmax.f32 %v1976_v6, 0.0  ;;  %v2210_v3 = vld [vmem:[#allocation7 + $0x420] sm:$0xff]  ;;  %v2219_v7 = vld [vmem:[#allocation7 + $0x468] sm:$0xff] }
 0x3ff   : > { %v1980_v11 = vpop.f32.mrb[146].mxu1  ;;  %5149 = vmatprep.subr.bf16.mxu0 %v5905_v28  ;;  %v2258_v5 = vld [vmem:[#allocation7 + $0x5a0] sm:$0xff] }
 0x400   : > { %v1981_v13 = vadd.f32 %v1980_v11, %v1622_v8  ;;  %v1982_v14 = vpop.f32.mrb[147].mxu1  ;;  %v2214_v6 = vld [vmem:[#allocation7 + $0x440] sm:$0xff]  ;;  %v2263_v8 = vld [vmem:[#allocation7 + $0x5c8] sm:$0xff] }
 0x401   : > { %2903 = vmatmul.mubr.f32.gmra.mrb[48].mxu0 %v2174_v9  ;;  %v2262_v9 = vld [vmem:[#allocation7 + $0x5c0] sm:$0xff]  ;;  %v2223_v11 = vld [vmem:[#allocation7 + $0x488] sm:$0xff] }
 0x402   : > { %2907 = vmatprep.mubr.f32.mxu0 %v2179_v10  ;;  %v2071_v17 = vmax.f32 %v1981_v13, 0.0  ;;  %v2218_v10 = vld [vmem:[#allocation7 + $0x460] sm:$0xff] }
 0x403   : > { %v1985_v19 = vpop.f32.mrb[148].mxu1  ;;  %v2266_v13 = vld [vmem:[#allocation7 + $0x5e0] sm:$0xff] }
 0x404   : > { %v5150_v20 = vpack.c.bf16 %v2071_v17, %v2070_v12  ;;  %v1986_v21 = vadd.f32 %v1985_v19, %v1623_v15  ;;  %v1987_v22 = vpop.f32.mrb[149].mxu1  ;;  %v2267_v12 = vld [vmem:[#allocation7 + $0x5e8] sm:$0xff]  ;;  %v2222_v14 = vld [vmem:[#allocation7 + $0x480] sm:$0xff] }
 0x405   : > { %2908 = vmatmul.mubr.f32.gmra.mrb[50].mxu0 %v2178_v16  ;;  %v2227_v15 = vld [vmem:[#allocation7 + $0x4a8] sm:$0xff]  ;;  %v2270_v17 = vld [vmem:[#allocation7 + $0x600] sm:$0xff] }
 0x406   : > { %2912 = vmatprep.mubr.f32.mxu0 %v2183_v18  ;;  %5151 = vmatpush1.bf16.msra.mxu0 %v5150_v20  ;;  %v2072_v27 = vmax.f32 %v1986_v21, 0.0  ;;  %v2271_v16 = vld [vmem:[#allocation7 + $0x608] sm:$0xff]  ;;  %v2226_v18 = vld [vmem:[#allocation7 + $0x4a0] sm:$0xff] }
 0x407   : > { %v1990_v26 = vpop.f32.mrb[150].mxu1  ;;  %5152 = vmatprep.subr.bf16.mxu0 %v5905_v28  ;;  %v2231_v19 = vld [vmem:[#allocation7 + $0x4c8] sm:$0xff]  ;;  %v2274_v21 = vld [vmem:[#allocation7 + $0x620] sm:$0xff] }
 0x408   : > { %v1991_v29 = vadd.f32 %v1990_v26, %v1624_v23  ;;  %v1992_v30 = vpop.f32.mrb[151].mxu1  ;;  %v2275_v20 = vld [vmem:[#allocation7 + $0x628] sm:$0xff]  ;;  %v2230_v22 = vld [vmem:[#allocation7 + $0x4c0] sm:$0xff] }
 0x409   : > { %2913 = vmatmul.mubr.f32.gmra.mrb[52].mxu0 %v2182_v24  ;;  %v2235_v23 = vld [vmem:[#allocation7 + $0x4e8] sm:$0xff]  ;;  %v2234_v26 = vld [vmem:[#allocation7 + $0x4e0] sm:$0xff] }
 0x40a   : > { %2917 = vmatprep.mubr.f32.mxu0 %v2187_v25  ;;  %v2073_v33 = vmax.f32 %v1991_v29, 0.0  ;;  %v2279_v24 = vld [vmem:[#allocation7 + $0x648] sm:$0xff]  ;;  %v2278_v25 = vld [vmem:[#allocation7 + $0x640] sm:$0xff] }
 0x40b   : > { %v1995_v35 = vpop.f32.mrb[152].mxu1  ;;  %v2283_v29 = vld [vmem:[#allocation7 + $0x668] sm:$0xff]  ;;  %v2282_v30 = vld [vmem:[#allocation7 + $0x660] sm:$0xff] }
 0x40c   : > { %v5153_v36 = vpack.c.bf16 %v2073_v33, %v2072_v27  ;;  %v1996_v37 = vadd.f32 %v1995_v35, %v1625_v31  ;;  %v1997_v38 = vpop.f32.mrb[153].mxu1  ;;  %v2239_v27 = vld [vmem:[#allocation7 + $0x508] sm:$0xff]  ;;  %v2238_v31 = vld [vmem:[#allocation7 + $0x500] sm:$0xff] }
 0x40d   : > { %2918 = vmatmul.mubr.f32.gmra.mrb[54].mxu0 %v2186_v32  ;;  %v2243_v32 = vld [vmem:[#allocation7 + $0x528] sm:$0xff]  ;;  %v2242_v35 = vld [vmem:[#allocation7 + $0x520] sm:$0xff] }
 0x40e   : > { %2922 = vmatprep.mubr.f32.mxu0 %v2191_v34  ;;  %5154 = vmatpush1.bf16.msra.mxu0 %v5153_v36  ;;  %v2074_v43 = vmax.f32 %v1996_v37, 0.0  ;;  %v2287_v33 = vld [vmem:[#allocation7 + $0x688] sm:$0xff]  ;;  %v2286_v34 = vld [vmem:[#allocation7 + $0x680] sm:$0xff] }
 0x40f   : > { %v2000_v42 = vpop.f32.mrb[154].mxu1  ;;  %5155 = vmatprep.subr.bf16.mxu0 %v5905_v28  ;;  %v2247_v36 = vld [vmem:[#allocation7 + $0x548] sm:$0xff]  ;;  %v2290_v38 = vld [vmem:[#allocation7 + $0x6a0] sm:$0xff] }
 0x410   : > { %v2001_v44 = vadd.f32 %v2000_v42, %v1626_v39  ;;  %v2002_v45 = vpop.f32.mrb[155].mxu1  ;;  %v2291_v37 = vld [vmem:[#allocation7 + $0x6a8] sm:$0xff]  ;;  %v2246_v39 = vld [vmem:[#allocation7 + $0x540] sm:$0xff] }
 0x411   : > { %2923 = vmatmul.mubr.f32.gmra.mrb[56].mxu0 %v2190_v40  ;;  %v2251_v40 = vld [vmem:[#allocation7 + $0x568] sm:$0xff]  ;;  %v2294_v42 = vld [vmem:[#allocation7 + $0x6c0] sm:$0xff] }
 0x412   : > { %2927 = vmatprep.mubr.f32.mxu0 %v2195_v41  ;;  %v2075_v48 = vmax.f32 %v2001_v44, 0.0  ;;  %v2295_v41 = vld [vmem:[#allocation7 + $0x6c8] sm:$0xff] }
 0x413   : > { %v2005_v50 = vpop.f32.mrb[156].mxu1  ;;  %v2255_v44 = vld [vmem:[#allocation7 + $0x588] sm:$0xff] }
 0x414   : > { %v5156_v51 = vpack.c.bf16 %v2075_v48, %v2074_v43  ;;  %v2006_v52 = vadd.f32 %v2005_v50, %v1627_v46  ;;  %v2007_v53 = vpop.f32.mrb[157].mxu1  ;;  %v2250_v43 = vld [vmem:[#allocation7 + $0x560] sm:$0xff]  ;;  %v2299_v45 = vld [vmem:[#allocation7 + $0x6e8] sm:$0xff]  ;;  %v2081_v48 = vld [vmem:[#allocation7 + $0x18] sm:$0xff] }
 0x415   : > { %2928 = vmatmul.mubr.f32.gmra.mrb[58].mxu0 %v2194_v47  ;;  %v2298_v46 = vld [vmem:[#allocation7 + $0x6e0] sm:$0xff]  ;;  %v2307_v53 = vld [vmem:[#allocation7 + $0x728] sm:$0xff] }
 0x416   : > { %2932 = vmatprep.mubr.f32.mxu0 %v2199_v49  ;;  %5157 = vmatpush1.bf16.msra.mxu0 %v5156_v51  ;;  %v2076_v58 = vmax.f32 %v2006_v52, 0.0  ;;  %v2254_v47 = vld [vmem:[#allocation7 + $0x580] sm:$0xff]  ;;  %v2303_v49 = vld [vmem:[#allocation7 + $0x708] sm:$0xff]  ;;  %v2080_v51 = vld [vmem:[#allocation7 + $0x10] sm:$0xff] }
 0x417   : > { %v2010_v57 = vpop.f32.mrb[158].mxu1  ;;  %5158 = vmatprep.subr.bf16.mxu0 %v5905_v28  ;;  %v2259_v28 = vld [vmem:[#allocation7 + $0x5a8] sm:$0xff]  ;;  %v2302_v50 = vld [vmem:[#allocation7 + $0x700] sm:$0xff]  ;;  %v2085_v52 = vld [vmem:[#allocation7 + $0x38] sm:$0xff] }
 0x418   : > { %v2011_v59 = vadd.f32 %v2010_v57, %v1628_v54  ;;  %v2012_v60 = vpop.f32.mrb[159].mxu1  ;;  %3007 = vmatprep.mubr.f32.mxu1 %v2259_v28  ;;  %v2306_v54 = vld [vmem:[#allocation7 + $0x720] sm:$0xff]  ;;  %v2311_v57 = vld [vmem:[#allocation7 + $0x748] sm:$0xff] }
 0x419   : > { %2933 = vmatmul.mubr.f32.gmra.mrb[60].mxu0 %v2198_v55  ;;  %3008 = vmatmul.mubr.f32.vlgmr.msra.gmra.mrb[160].mxu1 %v2258_v5  ;;  %v2084_v55 = vld [vmem:[#allocation7 + $0x30] sm:$0xff]  ;;  %v2093_v60 = vld [vmem:[#allocation7 + $0x78] sm:$0xff]  ;;  %v2323_v28 = vld [vmem:[#allocation7 + $0x7a8] sm:$0xff] }
 0x41a   : > { %2937 = vmatprep.mubr.f32.mxu0 %v2203_v56  ;;  %v2077_v62 = vmax.f32 %v2011_v59, 0.0  ;;  %3012 = vmatprep.mubr.f32.mxu1 %v2263_v8  ;;  %v2089_v56 = vld [vmem:[#allocation7 + $0x58] sm:$0xff]  ;;  %v2088_v59 = vld [vmem:[#allocation7 + $0x50] sm:$0xff]  ;;  %v2322_v5 = vld [vmem:[#allocation7 + $0x7a0] sm:$0xff] }
 0x41b   : > { %v2327_v8 = vld [vmem:[#allocation7 + $0x7c8] sm:$0xff] }
 0x41c   : > { %v5159_v0 = vpack.c.bf16 %v2077_v62, %v2076_v58  ;;  %v2310_v58 = vld [vmem:[#allocation7 + $0x740] sm:$0xff] }
 0x41d   : > { %2938 = vmatmul.mubr.f32.gmra.mrb[62].mxu0 %v2202_v61  ;;  %3013 = vmatmul.mubr.f32.gmra.mrb[162].mxu1 %v2262_v9  ;;  %v2315_v61 = vld [vmem:[#allocation7 + $0x768] sm:$0xff]  ;;  %v2314_v62 = vld [vmem:[#allocation7 + $0x760] sm:$0xff] }
 0x41e   : > { %2942 = vmatprep.mubr.f32.mxu0 %v2207_v63  ;;  %5160 = vmatpush1.bf16.msra.mxu0 %v5159_v0  ;;  %v2092_v63 = vld [vmem:[#allocation7 + $0x70] sm:$0xff]  ;;  %v2097_v0 = vld [vmem:[#allocation7 + $0x98] sm:$0xff]  ;;  %v2326_v9 = vld [vmem:[#allocation7 + $0x7c0] sm:$0xff] }
 0x41f   : > { %3017 = vmatprep.mubr.f32.mxu1 %v2267_v12  ;;  %v2331_v12 = vld [vmem:[#allocation7 + $0x7e8] sm:$0xff] }
 0x421   : > { %2943 = vmatmul.mubr.f32.gmra.mrb[64].mxu0 %v2206_v1  ;;  %3018 = vmatmul.mubr.f32.gmra.mrb[164].mxu1 %v2266_v13  ;;  %v2319_v1 = vld [vmem:[#allocation7 + $0x788] sm:$0xff]  ;;  %v2330_v13 = vld [vmem:[#allocation7 + $0x7e0] sm:$0xff] }
 0x422   : > { %2947 = vmatprep.mubr.f32.mxu0 %v2211_v2  ;;  %3022 = vmatprep.mubr.f32.mxu1 %v2271_v16  ;;  %v2318_v2 = vld [vmem:[#allocation7 + $0x780] sm:$0xff]  ;;  %v2335_v16 = vld [vmem:[#allocation7 + $0x808] sm:$0xff] }
 0x425   : > { %2948 = vmatmul.mubr.f32.gmra.mrb[66].mxu0 %v2210_v3  ;;  %3023 = vmatmul.mubr.f32.gmra.mrb[166].mxu1 %v2270_v17  ;;  %v2096_v3 = vld [vmem:[#allocation7 + $0x90] sm:$0xff]  ;;  %v2334_v17 = vld [vmem:[#allocation7 + $0x800] sm:$0xff] }
 0x426   : > { %2952 = vmatprep.mubr.f32.mxu0 %v2215_v4  ;;  %3027 = vmatprep.mubr.f32.mxu1 %v2275_v20  ;;  %v2101_v4 = vld [vmem:[#allocation7 + $0xb8] sm:$0xff]  ;;  %v2339_v20 = vld [vmem:[#allocation7 + $0x828] sm:$0xff] }
 0x429   : > { %2953 = vmatmul.mubr.f32.gmra.mrb[68].mxu0 %v2214_v6  ;;  %3028 = vmatmul.mubr.f32.gmra.mrb[168].mxu1 %v2274_v21  ;;  %v2100_v6 = vld [vmem:[#allocation7 + $0xb0] sm:$0xff]  ;;  %v2338_v21 = vld [vmem:[#allocation7 + $0x820] sm:$0xff] }
 0x42a   : > { %2957 = vmatprep.mubr.f32.mxu0 %v2219_v7  ;;  %3032 = vmatprep.mubr.f32.mxu1 %v2279_v24  ;;  %v2105_v7 = vld [vmem:[#allocation7 + $0xd8] sm:$0xff]  ;;  %v2343_v24 = vld [vmem:[#allocation7 + $0x848] sm:$0xff] }
 0x42d   : > { %2958 = vmatmul.mubr.f32.gmra.mrb[70].mxu0 %v2218_v10  ;;  %3033 = vmatmul.mubr.f32.gmra.mrb[170].mxu1 %v2278_v25  ;;  %v2104_v10 = vld [vmem:[#allocation7 + $0xd0] sm:$0xff]  ;;  %v2342_v25 = vld [vmem:[#allocation7 + $0x840] sm:$0xff] }
 0x42e   : > { %2962 = vmatprep.mubr.f32.mxu0 %v2223_v11  ;;  %3037 = vmatprep.mubr.f32.mxu1 %v2283_v29  ;;  %v2109_v11 = vld [vmem:[#allocation7 + $0xf8] sm:$0xff]  ;;  %v2347_v29 = vld [vmem:[#allocation7 + $0x868] sm:$0xff] }
 0x431   : > { %2963 = vmatmul.mubr.f32.gmra.mrb[72].mxu0 %v2222_v14  ;;  %3038 = vmatmul.mubr.f32.gmra.mrb[172].mxu1 %v2282_v30  ;;  %v2108_v14 = vld [vmem:[#allocation7 + $0xf0] sm:$0xff]  ;;  %v2346_v30 = vld [vmem:[#allocation7 + $0x860] sm:$0xff] }
 0x432   : > { %2967 = vmatprep.mubr.f32.mxu0 %v2227_v15  ;;  %3042 = vmatprep.mubr.f32.mxu1 %v2287_v33  ;;  %v2113_v15 = vld [vmem:[#allocation7 + $0x118] sm:$0xff]  ;;  %v2351_v33 = vld [vmem:[#allocation7 + $0x888] sm:$0xff] }
 0x435   : > { %2968 = vmatmul.mubr.f32.gmra.mrb[74].mxu0 %v2226_v18  ;;  %3043 = vmatmul.mubr.f32.gmra.mrb[174].mxu1 %v2286_v34  ;;  %v2112_v18 = vld [vmem:[#allocation7 + $0x110] sm:$0xff]  ;;  %v2350_v34 = vld [vmem:[#allocation7 + $0x880] sm:$0xff] }
 0x436   : > { %2972 = vmatprep.mubr.f32.mxu0 %v2231_v19  ;;  %3047 = vmatprep.mubr.f32.mxu1 %v2291_v37  ;;  %v2117_v19 = vld [vmem:[#allocation7 + $0x138] sm:$0xff]  ;;  %v2355_v37 = vld [vmem:[#allocation7 + $0x8a8] sm:$0xff] }
 0x439   : > { %2973 = vmatmul.mubr.f32.gmra.mrb[76].mxu0 %v2230_v22  ;;  %3048 = vmatmul.mubr.f32.gmra.mrb[176].mxu1 %v2290_v38  ;;  %v2116_v22 = vld [vmem:[#allocation7 + $0x130] sm:$0xff]  ;;  %v2354_v38 = vld [vmem:[#allocation7 + $0x8a0] sm:$0xff] }
 0x43a   : > { %2977 = vmatprep.mubr.f32.mxu0 %v2235_v23  ;;  %3052 = vmatprep.mubr.f32.mxu1 %v2295_v41  ;;  %v2121_v23 = vld [vmem:[#allocation7 + $0x158] sm:$0xff]  ;;  %v2359_v41 = vld [vmem:[#allocation7 + $0x8c8] sm:$0xff] }
 0x43d   : > { %2978 = vmatmul.mubr.f32.gmra.mrb[78].mxu0 %v2234_v26  ;;  %3053 = vmatmul.mubr.f32.gmra.mrb[178].mxu1 %v2294_v42  ;;  %v2120_v26 = vld [vmem:[#allocation7 + $0x150] sm:$0xff]  ;;  %v2358_v42 = vld [vmem:[#allocation7 + $0x8c0] sm:$0xff] }
 0x43e   : > { %2982 = vmatprep.mubr.f32.mxu0 %v2239_v27  ;;  %3057 = vmatprep.mubr.f32.mxu1 %v2299_v45  ;;  %v2125_v27 = vld [vmem:[#allocation7 + $0x178] sm:$0xff]  ;;  %v2363_v45 = vld [vmem:[#allocation7 + $0x8e8] sm:$0xff] }
 0x441   : > { %2983 = vmatmul.mubr.f32.gmra.mrb[80].mxu0 %v2238_v31  ;;  %3058 = vmatmul.mubr.f32.gmra.mrb[180].mxu1 %v2298_v46  ;;  %v2124_v31 = vld [vmem:[#allocation7 + $0x170] sm:$0xff]  ;;  %v2362_v46 = vld [vmem:[#allocation7 + $0x8e0] sm:$0xff] }
 0x442   : > { %2987 = vmatprep.mubr.f32.mxu0 %v2243_v32  ;;  %3062 = vmatprep.mubr.f32.mxu1 %v2303_v49  ;;  %v2129_v32 = vld [vmem:[#allocation7 + $0x198] sm:$0xff]  ;;  %v2367_v49 = vld [vmem:[#allocation7 + $0x908] sm:$0xff] }
 0x445   : > { %2988 = vmatmul.mubr.f32.gmra.mrb[82].mxu0 %v2242_v35  ;;  %3063 = vmatmul.mubr.f32.gmra.mrb[182].mxu1 %v2302_v50  ;;  %v2128_v35 = vld [vmem:[#allocation7 + $0x190] sm:$0xff]  ;;  %v2366_v50 = vld [vmem:[#allocation7 + $0x900] sm:$0xff] }
 0x446   : > { %2992 = vmatprep.mubr.f32.mxu0 %v2247_v36  ;;  %3067 = vmatprep.mubr.f32.mxu1 %v2307_v53  ;;  %v2133_v36 = vld [vmem:[#allocation7 + $0x1b8] sm:$0xff]  ;;  %v2371_v53 = vld [vmem:[#allocation7 + $0x928] sm:$0xff] }
 0x449   : > { %2993 = vmatmul.mubr.f32.gmra.mrb[84].mxu0 %v2246_v39  ;;  %3068 = vmatmul.mubr.f32.gmra.mrb[184].mxu1 %v2306_v54  ;;  %v2132_v39 = vld [vmem:[#allocation7 + $0x1b0] sm:$0xff]  ;;  %v2370_v54 = vld [vmem:[#allocation7 + $0x920] sm:$0xff] }
 0x44a   : > { %2997 = vmatprep.mubr.f32.mxu0 %v2251_v40  ;;  %3072 = vmatprep.mubr.f32.mxu1 %v2311_v57  ;;  %v2137_v40 = vld [vmem:[#allocation7 + $0x1d8] sm:$0xff]  ;;  %v2375_v57 = vld [vmem:[#allocation7 + $0x948] sm:$0xff] }
 0x44d   : > { %2998 = vmatmul.mubr.f32.gmra.mrb[86].mxu0 %v2250_v43  ;;  %3073 = vmatmul.mubr.f32.gmra.mrb[186].mxu1 %v2310_v58  ;;  %v2136_v43 = vld [vmem:[#allocation7 + $0x1d0] sm:$0xff]  ;;  %v2374_v58 = vld [vmem:[#allocation7 + $0x940] sm:$0xff] }
 0x44e   : > { %3002 = vmatprep.mubr.f32.mxu0 %v2255_v44  ;;  %3077 = vmatprep.mubr.f32.mxu1 %v2315_v61  ;;  %v2141_v44 = vld [vmem:[#allocation7 + $0x1f8] sm:$0xff]  ;;  %v2379_v61 = vld [vmem:[#allocation7 + $0x968] sm:$0xff] }
 0x451   : > { %3003 = vmatmul.mubr.f32.gmra.mrb[88].mxu0 %v2254_v47  ;;  %3078 = vmatmul.mubr.f32.gmra.mrb[188].mxu1 %v2314_v62  ;;  %v2140_v47 = vld [vmem:[#allocation7 + $0x1f0] sm:$0xff]  ;;  %v2378_v62 = vld [vmem:[#allocation7 + $0x960] sm:$0xff] }
 0x452   : > { %3487 = vmatprep.mubr.f32.mxu0 %v2081_v48  ;;  %3082 = vmatprep.mubr.f32.mxu1 %v2319_v1  ;;  %v2145_v48 = vld [vmem:[#allocation7 + $0x218] sm:$0xff]  ;;  %v2383_v1 = vld [vmem:[#allocation7 + $0x988] sm:$0xff] }
 0x455   : > { %3488 = vmatmul.mubr.f32.vlgmr.msra.gmra.mrb[0].mxu0 %v2080_v51  ;;  %3083 = vmatmul.mubr.f32.gmra.mrb[190].mxu1 %v2318_v2  ;;  %v2144_v51 = vld [vmem:[#allocation7 + $0x210] sm:$0xff]  ;;  %v2382_v2 = vld [vmem:[#allocation7 + $0x980] sm:$0xff] }
 0x456   : > { %3492 = vmatprep.mubr.f32.mxu0 %v2085_v52  ;;  %3087 = vmatprep.mubr.f32.mxu1 %v2323_v28  ;;  %v2149_v52 = vld [vmem:[#allocation7 + $0x238] sm:$0xff]  ;;  %v2387_v28 = vld [vmem:[#allocation7 + $0x9a8] sm:$0xff] }
 0x459   : > { %3493 = vmatmul.mubr.f32.gmra.mrb[2].mxu0 %v2084_v55  ;;  %3088 = vmatmul.mubr.f32.gmra.mrb[192].mxu1 %v2322_v5  ;;  %v2148_v55 = vld [vmem:[#allocation7 + $0x230] sm:$0xff]  ;;  %v2386_v5 = vld [vmem:[#allocation7 + $0x9a0] sm:$0xff] }
 0x45a   : > { %3497 = vmatprep.mubr.f32.mxu0 %v2089_v56  ;;  %3092 = vmatprep.mubr.f32.mxu1 %v2327_v8  ;;  %v2153_v56 = vld [vmem:[#allocation7 + $0x258] sm:$0xff]  ;;  %v2168_v8 = vld [vmem:[#allocation7 + $0x2d0] sm:$0xff] }
 0x45d   : > { %3498 = vmatmul.mubr.f32.gmra.mrb[4].mxu0 %v2088_v59  ;;  %3093 = vmatmul.mubr.f32.gmra.mrb[194].mxu1 %v2326_v9  ;;  %v2152_v59 = vld [vmem:[#allocation7 + $0x250] sm:$0xff]  ;;  %v2391_v9 = vld [vmem:[#allocation7 + $0x9c8] sm:$0xff] }
 0x45e   : > { %3502 = vmatprep.mubr.f32.mxu0 %v2093_v60  ;;  %3097 = vmatprep.mubr.f32.mxu1 %v2331_v12  ;;  %v2157_v60 = vld [vmem:[#allocation7 + $0x278] sm:$0xff]  ;;  %v2172_v12 = vld [vmem:[#allocation7 + $0x2f0] sm:$0xff] }
 0x461   : > { %3503 = vmatmul.mubr.f32.gmra.mrb[6].mxu0 %v2092_v63  ;;  %3098 = vmatmul.mubr.f32.gmra.mrb[196].mxu1 %v2330_v13  ;;  %v2156_v63 = vld [vmem:[#allocation7 + $0x270] sm:$0xff]  ;;  %v2395_v13 = vld [vmem:[#allocation7 + $0x9e8] sm:$0xff] }
 0x462   : > { %3507 = vmatprep.mubr.f32.mxu0 %v2097_v0  ;;  %3102 = vmatprep.mubr.f32.mxu1 %v2335_v16  ;;  %v2161_v0 = vld [vmem:[#allocation7 + $0x298] sm:$0xff]  ;;  %v2176_v16 = vld [vmem:[#allocation7 + $0x310] sm:$0xff] }
 0x465   : > { %3508 = vmatmul.mubr.f32.gmra.mrb[8].mxu0 %v2096_v3  ;;  %3103 = vmatmul.mubr.f32.gmra.mrb[198].mxu1 %v2334_v17  ;;  %v2160_v3 = vld [vmem:[#allocation7 + $0x290] sm:$0xff]  ;;  %v2399_v17 = vld [vmem:[#allocation7 + $0xa08] sm:$0xff] }
 0x466   : > { %3512 = vmatprep.mubr.f32.mxu0 %v2101_v4  ;;  %3107 = vmatprep.mubr.f32.mxu1 %v2339_v20  ;;  %v2165_v4 = vld [vmem:[#allocation7 + $0x2b8] sm:$0xff]  ;;  %v2180_v20 = vld [vmem:[#allocation7 + $0x330] sm:$0xff] }
 0x469   : > { %3513 = vmatmul.mubr.f32.gmra.mrb[10].mxu0 %v2100_v6  ;;  %3108 = vmatmul.mubr.f32.gmra.mrb[200].mxu1 %v2338_v21  ;;  %v2164_v6 = vld [vmem:[#allocation7 + $0x2b0] sm:$0xff]  ;;  %v2403_v21 = vld [vmem:[#allocation7 + $0xa28] sm:$0xff] }
 0x46a   : > { %3517 = vmatprep.mubr.f32.mxu0 %v2105_v7  ;;  %3112 = vmatprep.mubr.f32.mxu1 %v2343_v24  ;;  %v2169_v7 = vld [vmem:[#allocation7 + $0x2d8] sm:$0xff]  ;;  %v2184_v24 = vld [vmem:[#allocation7 + $0x350] sm:$0xff] }
 0x46d   : > { %3518 = vmatmul.mubr.f32.gmra.mrb[12].mxu0 %v2104_v10  ;;  %3113 = vmatmul.mubr.f32.gmra.mrb[202].mxu1 %v2342_v25  ;;  %v2173_v10 = vld [vmem:[#allocation7 + $0x2f8] sm:$0xff]  ;;  %v2407_v25 = vld [vmem:[#allocation7 + $0xa48] sm:$0xff] }
 0x46e   : > { %3522 = vmatprep.mubr.f32.mxu0 %v2109_v11  ;;  %3117 = vmatprep.mubr.f32.mxu1 %v2347_v29  ;;  %v2390_v11 = vld [vmem:[#allocation7 + $0x9c0] sm:$0xff]  ;;  %v2188_v29 = vld [vmem:[#allocation7 + $0x370] sm:$0xff] }
 0x471   : > { %3523 = vmatmul.mubr.f32.gmra.mrb[14].mxu0 %v2108_v14  ;;  %3118 = vmatmul.mubr.f32.gmra.mrb[204].mxu1 %v2346_v30  ;;  %v2177_v14 = vld [vmem:[#allocation7 + $0x318] sm:$0xff]  ;;  %v2411_v30 = vld [vmem:[#allocation7 + $0xa68] sm:$0xff] }
 0x472   : > { %3527 = vmatprep.mubr.f32.mxu0 %v2113_v15  ;;  %3122 = vmatprep.mubr.f32.mxu1 %v2351_v33  ;;  %v2394_v15 = vld [vmem:[#allocation7 + $0x9e0] sm:$0xff]  ;;  %v2192_v33 = vld [vmem:[#allocation7 + $0x390] sm:$0xff] }
 0x475   : > { %3528 = vmatmul.mubr.f32.gmra.mrb[16].mxu0 %v2112_v18  ;;  %3123 = vmatmul.mubr.f32.gmra.mrb[206].mxu1 %v2350_v34  ;;  %v2181_v18 = vld [vmem:[#allocation7 + $0x338] sm:$0xff]  ;;  %v2415_v34 = vld [vmem:[#allocation7 + $0xa88] sm:$0xff] }
 0x476   : > { %3532 = vmatprep.mubr.f32.mxu0 %v2117_v19  ;;  %3127 = vmatprep.mubr.f32.mxu1 %v2355_v37  ;;  %v2398_v19 = vld [vmem:[#allocation7 + $0xa00] sm:$0xff]  ;;  %v2196_v37 = vld [vmem:[#allocation7 + $0x3b0] sm:$0xff] }
 0x479   : > { %3533 = vmatmul.mubr.f32.gmra.mrb[18].mxu0 %v2116_v22  ;;  %3128 = vmatmul.mubr.f32.gmra.mrb[208].mxu1 %v2354_v38  ;;  %v2185_v22 = vld [vmem:[#allocation7 + $0x358] sm:$0xff]  ;;  %v2419_v38 = vld [vmem:[#allocation7 + $0xaa8] sm:$0xff] }
 0x47a   : > { %3537 = vmatprep.mubr.f32.mxu0 %v2121_v23  ;;  %3132 = vmatprep.mubr.f32.mxu1 %v2359_v41  ;;  %v2402_v23 = vld [vmem:[#allocation7 + $0xa20] sm:$0xff]  ;;  %v2200_v41 = vld [vmem:[#allocation7 + $0x3d0] sm:$0xff] }
 0x47d   : > { %3538 = vmatmul.mubr.f32.gmra.mrb[20].mxu0 %v2120_v26  ;;  %3133 = vmatmul.mubr.f32.gmra.mrb[210].mxu1 %v2358_v42  ;;  %v2189_v26 = vld [vmem:[#allocation7 + $0x378] sm:$0xff]  ;;  %v2423_v42 = vld [vmem:[#allocation7 + $0xac8] sm:$0xff] }
 0x47e   : > { %3542 = vmatprep.mubr.f32.mxu0 %v2125_v27  ;;  %3137 = vmatprep.mubr.f32.mxu1 %v2363_v45  ;;  %v2406_v27 = vld [vmem:[#allocation7 + $0xa40] sm:$0xff]  ;;  %v2204_v45 = vld [vmem:[#allocation7 + $0x3f0] sm:$0xff] }
 0x481   : > { %3543 = vmatmul.mubr.f32.gmra.mrb[22].mxu0 %v2124_v31  ;;  %3138 = vmatmul.mubr.f32.gmra.mrb[212].mxu1 %v2362_v46  ;;  %v2193_v31 = vld [vmem:[#allocation7 + $0x398] sm:$0xff]  ;;  %v2427_v46 = vld [vmem:[#allocation7 + $0xae8] sm:$0xff] }
 0x482   : > { %3547 = vmatprep.mubr.f32.mxu0 %v2129_v32  ;;  %3142 = vmatprep.mubr.f32.mxu1 %v2367_v49  ;;  %v2410_v32 = vld [vmem:[#allocation7 + $0xa60] sm:$0xff]  ;;  %v2208_v49 = vld [vmem:[#allocation7 + $0x410] sm:$0xff] }
 0x485   : > { %3548 = vmatmul.mubr.f32.gmra.mrb[24].mxu0 %v2128_v35  ;;  %3143 = vmatmul.mubr.f32.gmra.mrb[214].mxu1 %v2366_v50  ;;  %v2197_v35 = vld [vmem:[#allocation7 + $0x3b8] sm:$0xff]  ;;  %v2431_v50 = vld [vmem:[#allocation7 + $0xb08] sm:$0xff] }
 0x486   : > { %3552 = vmatprep.mubr.f32.mxu0 %v2133_v36  ;;  %3147 = vmatprep.mubr.f32.mxu1 %v2371_v53  ;;  %v2414_v36 = vld [vmem:[#allocation7 + $0xa80] sm:$0xff]  ;;  %v2212_v53 = vld [vmem:[#allocation7 + $0x430] sm:$0xff] }
 0x489   : > { %3553 = vmatmul.mubr.f32.gmra.mrb[26].mxu0 %v2132_v39  ;;  %3148 = vmatmul.mubr.f32.gmra.mrb[216].mxu1 %v2370_v54  ;;  %v2201_v39 = vld [vmem:[#allocation7 + $0x3d8] sm:$0xff]  ;;  %v2435_v54 = vld [vmem:[#allocation7 + $0xb28] sm:$0xff] }
 0x48a   : > { %3557 = vmatprep.mubr.f32.mxu0 %v2137_v40  ;;  %3152 = vmatprep.mubr.f32.mxu1 %v2375_v57  ;;  %v2418_v40 = vld [vmem:[#allocation7 + $0xaa0] sm:$0xff]  ;;  %v2216_v57 = vld [vmem:[#allocation7 + $0x450] sm:$0xff] }
 0x48d   : > { %3558 = vmatmul.mubr.f32.gmra.mrb[28].mxu0 %v2136_v43  ;;  %3153 = vmatmul.mubr.f32.gmra.mrb[218].mxu1 %v2374_v58  ;;  %v2205_v43 = vld [vmem:[#allocation7 + $0x3f8] sm:$0xff]  ;;  %v2439_v58 = vld [vmem:[#allocation7 + $0xb48] sm:$0xff] }
 0x48e   : > { %3562 = vmatprep.mubr.f32.mxu0 %v2141_v44  ;;  %3157 = vmatprep.mubr.f32.mxu1 %v2379_v61  ;;  %v2422_v44 = vld [vmem:[#allocation7 + $0xac0] sm:$0xff]  ;;  %v2220_v61 = vld [vmem:[#allocation7 + $0x470] sm:$0xff] }
 0x491   : > { %3563 = vmatmul.mubr.f32.gmra.mrb[30].mxu0 %v2140_v47  ;;  %3158 = vmatmul.mubr.f32.gmra.mrb[220].mxu1 %v2378_v62  ;;  %v2209_v47 = vld [vmem:[#allocation7 + $0x418] sm:$0xff]  ;;  %v2443_v62 = vld [vmem:[#allocation7 + $0xb68] sm:$0xff] }
 0x492   : > { %3567 = vmatprep.mubr.f32.mxu0 %v2145_v48  ;;  %3162 = vmatprep.mubr.f32.mxu1 %v2383_v1  ;;  %v2426_v48 = vld [vmem:[#allocation7 + $0xae0] sm:$0xff]  ;;  %v2224_v1 = vld [vmem:[#allocation7 + $0x490] sm:$0xff] }
 0x495   : > { %3568 = vmatmul.mubr.f32.gmra.mrb[32].mxu0 %v2144_v51  ;;  %3163 = vmatmul.mubr.f32.gmra.mrb[222].mxu1 %v2382_v2  ;;  %v2213_v51 = vld [vmem:[#allocation7 + $0x438] sm:$0xff]  ;;  %v2447_v2 = vld [vmem:[#allocation7 + $0xb88] sm:$0xff] }
 0x496   : > { %3572 = vmatprep.mubr.f32.mxu0 %v2149_v52  ;;  %3167 = vmatprep.mubr.f32.mxu1 %v2387_v28  ;;  %v2430_v52 = vld [vmem:[#allocation7 + $0xb00] sm:$0xff]  ;;  %v2228_v28 = vld [vmem:[#allocation7 + $0x4b0] sm:$0xff] }
 0x499   : > { %3573 = vmatmul.mubr.f32.gmra.mrb[34].mxu0 %v2148_v55  ;;  %3168 = vmatmul.mubr.f32.gmra.mrb[224].mxu1 %v2386_v5  ;;  %v2217_v55 = vld [vmem:[#allocation7 + $0x458] sm:$0xff]  ;;  %v2451_v5 = vld [vmem:[#allocation7 + $0xba8] sm:$0xff] }
 0x49a   : > { %3577 = vmatprep.mubr.f32.mxu0 %v2153_v56  ;;  %3172 = vmatprep.mubr.f32.mxu1 %v2391_v9  ;;  %v2434_v56 = vld [vmem:[#allocation7 + $0xb20] sm:$0xff]  ;;  %v2455_v9 = vld [vmem:[#allocation7 + $0xbc8] sm:$0xff] }
 0x49d   : > { %3578 = vmatmul.mubr.f32.gmra.mrb[36].mxu0 %v2152_v59  ;;  %3173 = vmatmul.mubr.f32.gmra.mrb[226].mxu1 %v2390_v11  ;;  %v2221_v59 = vld [vmem:[#allocation7 + $0x478] sm:$0xff]  ;;  %v2454_v11 = vld [vmem:[#allocation7 + $0xbc0] sm:$0xff] }
 0x49e   : > { %3582 = vmatprep.mubr.f32.mxu0 %v2157_v60  ;;  %3177 = vmatprep.mubr.f32.mxu1 %v2395_v13  ;;  %v2438_v60 = vld [vmem:[#allocation7 + $0xb40] sm:$0xff]  ;;  %v2459_v13 = vld [vmem:[#allocation7 + $0xbe8] sm:$0xff] }
 0x4a1   : > { %3583 = vmatmul.mubr.f32.gmra.mrb[38].mxu0 %v2156_v63  ;;  %3178 = vmatmul.mubr.f32.gmra.mrb[228].mxu1 %v2394_v15  ;;  %v2225_v63 = vld [vmem:[#allocation7 + $0x498] sm:$0xff]  ;;  %v2458_v15 = vld [vmem:[#allocation7 + $0xbe0] sm:$0xff] }
 0x4a2   : > { %3587 = vmatprep.mubr.f32.mxu0 %v2161_v0  ;;  %3182 = vmatprep.mubr.f32.mxu1 %v2399_v17  ;;  %v2442_v0 = vld [vmem:[#allocation7 + $0xb60] sm:$0xff]  ;;  %v2463_v17 = vld [vmem:[#allocation7 + $0xc08] sm:$0xff] }
 0x4a5   : > { %3588 = vmatmul.mubr.f32.gmra.mrb[40].mxu0 %v2160_v3  ;;  %3183 = vmatmul.mubr.f32.gmra.mrb[230].mxu1 %v2398_v19  ;;  %v2229_v3 = vld [vmem:[#allocation7 + $0x4b8] sm:$0xff]  ;;  %v2462_v19 = vld [vmem:[#allocation7 + $0xc00] sm:$0xff] }
 0x4a6   : > { %3592 = vmatprep.mubr.f32.mxu0 %v2165_v4  ;;  %3187 = vmatprep.mubr.f32.mxu1 %v2403_v21  ;;  %v2446_v4 = vld [vmem:[#allocation7 + $0xb80] sm:$0xff]  ;;  %v2467_v21 = vld [vmem:[#allocation7 + $0xc28] sm:$0xff] }
 0x4a9   : > { %3593 = vmatmul.mubr.f32.gmra.mrb[42].mxu0 %v2164_v6  ;;  %3188 = vmatmul.mubr.f32.gmra.mrb[232].mxu1 %v2402_v23  ;;  %v2233_v6 = vld [vmem:[#allocation7 + $0x4d8] sm:$0xff]  ;;  %v2466_v23 = vld [vmem:[#allocation7 + $0xc20] sm:$0xff] }
 0x4aa   : > { %3597 = vmatprep.mubr.f32.mxu0 %v2169_v7  ;;  %3192 = vmatprep.mubr.f32.mxu1 %v2407_v25  ;;  %v2450_v7 = vld [vmem:[#allocation7 + $0xba0] sm:$0xff]  ;;  %v2471_v25 = vld [vmem:[#allocation7 + $0xc48] sm:$0xff] }
 0x4ad   : > { %3598 = vmatmul.mubr.f32.gmra.mrb[44].mxu0 %v2168_v8  ;;  %3193 = vmatmul.mubr.f32.gmra.mrb[234].mxu1 %v2406_v27  ;;  %v2232_v8 = vld [vmem:[#allocation7 + $0x4d0] sm:$0xff]  ;;  %v2470_v27 = vld [vmem:[#allocation7 + $0xc40] sm:$0xff] }
 0x4ae   : > { %3602 = vmatprep.mubr.f32.mxu0 %v2173_v10  ;;  %3197 = vmatprep.mubr.f32.mxu1 %v2411_v30  ;;  %v2237_v10 = vld [vmem:[#allocation7 + $0x4f8] sm:$0xff]  ;;  %v2475_v30 = vld [vmem:[#allocation7 + $0xc68] sm:$0xff] }
 0x4b1   : > { %3603 = vmatmul.mubr.f32.gmra.mrb[46].mxu0 %v2172_v12  ;;  %3198 = vmatmul.mubr.f32.gmra.mrb[236].mxu1 %v2410_v32  ;;  %v2236_v12 = vld [vmem:[#allocation7 + $0x4f0] sm:$0xff]  ;;  %v2474_v32 = vld [vmem:[#allocation7 + $0xc60] sm:$0xff] }
 0x4b2   : > { %3607 = vmatprep.mubr.f32.mxu0 %v2177_v14  ;;  %3202 = vmatprep.mubr.f32.mxu1 %v2415_v34  ;;  %v2241_v14 = vld [vmem:[#allocation7 + $0x518] sm:$0xff]  ;;  %v2479_v34 = vld [vmem:[#allocation7 + $0xc88] sm:$0xff] }
 0x4b5   : > { %3608 = vmatmul.mubr.f32.gmra.mrb[48].mxu0 %v2176_v16  ;;  %3203 = vmatmul.mubr.f32.gmra.mrb[238].mxu1 %v2414_v36  ;;  %v2240_v16 = vld [vmem:[#allocation7 + $0x510] sm:$0xff]  ;;  %v2478_v36 = vld [vmem:[#allocation7 + $0xc80] sm:$0xff] }
 0x4b6   : > { %3612 = vmatprep.mubr.f32.mxu0 %v2181_v18  ;;  %3207 = vmatprep.mubr.f32.mxu1 %v2419_v38  ;;  %v2245_v18 = vld [vmem:[#allocation7 + $0x538] sm:$0xff]  ;;  %v2483_v38 = vld [vmem:[#allocation7 + $0xca8] sm:$0xff] }
 0x4b9   : > { %3613 = vmatmul.mubr.f32.gmra.mrb[50].mxu0 %v2180_v20  ;;  %3208 = vmatmul.mubr.f32.gmra.mrb[240].mxu1 %v2418_v40  ;;  %v2244_v20 = vld [vmem:[#allocation7 + $0x530] sm:$0xff]  ;;  %v2482_v40 = vld [vmem:[#allocation7 + $0xca0] sm:$0xff] }
 0x4ba   : > { %3617 = vmatprep.mubr.f32.mxu0 %v2185_v22  ;;  %3212 = vmatprep.mubr.f32.mxu1 %v2423_v42  ;;  %v2249_v22 = vld [vmem:[#allocation7 + $0x558] sm:$0xff]  ;;  %v2487_v42 = vld [vmem:[#allocation7 + $0xcc8] sm:$0xff] }
 0x4bd   : > { %3618 = vmatmul.mubr.f32.gmra.mrb[52].mxu0 %v2184_v24  ;;  %3213 = vmatmul.mubr.f32.gmra.mrb[242].mxu1 %v2422_v44  ;;  %v2248_v24 = vld [vmem:[#allocation7 + $0x550] sm:$0xff]  ;;  %v2486_v44 = vld [vmem:[#allocation7 + $0xcc0] sm:$0xff] }
 0x4be   : > { %3622 = vmatprep.mubr.f32.mxu0 %v2189_v26  ;;  %3217 = vmatprep.mubr.f32.mxu1 %v2427_v46  ;;  %v2253_v26 = vld [vmem:[#allocation7 + $0x578] sm:$0xff]  ;;  %v2491_v46 = vld [vmem:[#allocation7 + $0xce8] sm:$0xff] }
 0x4c1   : > { %3623 = vmatmul.mubr.f32.gmra.mrb[54].mxu0 %v2188_v29  ;;  %3218 = vmatmul.mubr.f32.gmra.mrb[244].mxu1 %v2426_v48  ;;  %v2252_v29 = vld [vmem:[#allocation7 + $0x570] sm:$0xff]  ;;  %v2490_v48 = vld [vmem:[#allocation7 + $0xce0] sm:$0xff] }
 0x4c2   : > { %3627 = vmatprep.mubr.f32.mxu0 %v2193_v31  ;;  %3222 = vmatprep.mubr.f32.mxu1 %v2431_v50  ;;  %v2257_v31 = vld [vmem:[#allocation7 + $0x598] sm:$0xff]  ;;  %v2495_v50 = vld [vmem:[#allocation7 + $0xd08] sm:$0xff] }
 0x4c5   : > { %3628 = vmatmul.mubr.f32.gmra.mrb[56].mxu0 %v2192_v33  ;;  %3223 = vmatmul.mubr.f32.gmra.mrb[246].mxu1 %v2430_v52  ;;  %v2256_v33 = vld [vmem:[#allocation7 + $0x590] sm:$0xff]  ;;  %v2494_v52 = vld [vmem:[#allocation7 + $0xd00] sm:$0xff] }
 0x4c6   : > { %3632 = vmatprep.mubr.f32.mxu0 %v2197_v35  ;;  %3227 = vmatprep.mubr.f32.mxu1 %v2435_v54  ;;  %v2261_v35 = vld [vmem:[#allocation7 + $0x5b8] sm:$0xff]  ;;  %v2499_v54 = vld [vmem:[#allocation7 + $0xd28] sm:$0xff] }
 0x4c9   : > { %3633 = vmatmul.mubr.f32.gmra.mrb[58].mxu0 %v2196_v37  ;;  %3228 = vmatmul.mubr.f32.gmra.mrb[248].mxu1 %v2434_v56  ;;  %v2260_v37 = vld [vmem:[#allocation7 + $0x5b0] sm:$0xff]  ;;  %v2498_v56 = vld [vmem:[#allocation7 + $0xd20] sm:$0xff] }
 0x4ca   : > { %3637 = vmatprep.mubr.f32.mxu0 %v2201_v39  ;;  %3232 = vmatprep.mubr.f32.mxu1 %v2439_v58  ;;  %v2265_v39 = vld [vmem:[#allocation7 + $0x5d8] sm:$0xff]  ;;  %v2503_v58 = vld [vmem:[#allocation7 + $0xd48] sm:$0xff] }
 0x4cd   : > { %3638 = vmatmul.mubr.f32.gmra.mrb[60].mxu0 %v2200_v41  ;;  %3233 = vmatmul.mubr.f32.gmra.mrb[250].mxu1 %v2438_v60  ;;  %v2264_v41 = vld [vmem:[#allocation7 + $0x5d0] sm:$0xff]  ;;  %v2502_v60 = vld [vmem:[#allocation7 + $0xd40] sm:$0xff] }
 0x4ce   : > { %3642 = vmatprep.mubr.f32.mxu0 %v2205_v43  ;;  %3237 = vmatprep.mubr.f32.mxu1 %v2443_v62  ;;  %v2269_v43 = vld [vmem:[#allocation7 + $0x5f8] sm:$0xff]  ;;  %v2507_v62 = vld [vmem:[#allocation7 + $0xd68] sm:$0xff] }
 0x4d1   : > { %3643 = vmatmul.mubr.f32.gmra.mrb[62].mxu0 %v2204_v45  ;;  %3238 = vmatmul.mubr.f32.gmra.mrb[252].mxu1 %v2442_v0  ;;  %v2268_v45 = vld [vmem:[#allocation7 + $0x5f0] sm:$0xff]  ;;  %v2506_v0 = vld [vmem:[#allocation7 + $0xd60] sm:$0xff] }
 0x4d2   : > { %3647 = vmatprep.mubr.f32.mxu0 %v2209_v47  ;;  %3242 = vmatprep.mubr.f32.mxu1 %v2447_v2  ;;  %v2273_v47 = vld [vmem:[#allocation7 + $0x618] sm:$0xff]  ;;  %v2511_v2 = vld [vmem:[#allocation7 + $0xd88] sm:$0xff] }
 0x4d5   : > { %3648 = vmatmul.mubr.f32.gmra.mrb[64].mxu0 %v2208_v49  ;;  %3243 = vmatmul.mubr.f32.gmra.mrb[254].mxu1 %v2446_v4  ;;  %v2272_v49 = vld [vmem:[#allocation7 + $0x610] sm:$0xff]  ;;  %v2510_v4 = vld [vmem:[#allocation7 + $0xd80] sm:$0xff] }
 0x4d6   : > { %3652 = vmatprep.mubr.f32.mxu0 %v2213_v51  ;;  %3247 = vmatprep.mubr.f32.mxu1 %v2451_v5  ;;  %v2277_v51 = vld [vmem:[#allocation7 + $0x638] sm:$0xff]  ;;  %v2515_v5 = vld [vmem:[#allocation7 + $0xda8] sm:$0xff] }
 0x4d9   : > { %3653 = vmatmul.mubr.f32.gmra.mrb[66].mxu0 %v2212_v53  ;;  %3248 = vmatmul.mubr.f32.gmra.mrb[0].mxu1 %v2450_v7  ;;  %v2276_v53 = vld [vmem:[#allocation7 + $0x630] sm:$0xff]  ;;  %v2514_v7 = vld [vmem:[#allocation7 + $0xda0] sm:$0xff] }
 0x4da   : > { %3657 = vmatprep.mubr.f32.mxu0 %v2217_v55  ;;  %3252 = vmatprep.mubr.f32.mxu1 %v2455_v9  ;;  %v2281_v55 = vld [vmem:[#allocation7 + $0x658] sm:$0xff] }
 0x4dd   : > { %3658 = vmatmul.mubr.f32.gmra.mrb[68].mxu0 %v2216_v57  ;;  %3253 = vmatmul.mubr.f32.gmra.mrb[2].mxu1 %v2454_v11  ;;  %v2280_v57 = vld [vmem:[#allocation7 + $0x650] sm:$0xff]  ;;  %v2591_v11 = vld [vmem:[%s7702_s16 + $0x8] sm:$0xff] }
 0x4de   : > { %3662 = vmatprep.mubr.f32.mxu0 %v2221_v59  ;;  %3257 = vmatprep.mubr.f32.mxu1 %v2459_v13  ;;  %v2285_v59 = vld [vmem:[#allocation7 + $0x678] sm:$0xff]  ;;  %v2519_v13 = vld [vmem:[#allocation7 + $0xdc8] sm:$0xff] }
 0x4e1   : > { %3663 = vmatmul.mubr.f32.gmra.mrb[70].mxu0 %v2220_v61  ;;  %3258 = vmatmul.mubr.f32.gmra.mrb[4].mxu1 %v2458_v15  ;;  %v2284_v61 = vld [vmem:[#allocation7 + $0x670] sm:$0xff]  ;;  %v2301_v15 = vld [vmem:[#allocation7 + $0x6f8] sm:$0xff] }
 0x4e2   : > { %3667 = vmatprep.mubr.f32.mxu0 %v2225_v63  ;;  %3262 = vmatprep.mubr.f32.mxu1 %v2463_v17  ;;  %v2289_v63 = vld [vmem:[#allocation7 + $0x698] sm:$0xff] }
 0x4e5   : > { %3668 = vmatmul.mubr.f32.gmra.mrb[72].mxu0 %v2224_v1  ;;  %3263 = vmatmul.mubr.f32.gmra.mrb[6].mxu1 %v2462_v19  ;;  %v2288_v1 = vld [vmem:[#allocation7 + $0x690] sm:$0xff] }
 0x4e6   : > { %3672 = vmatprep.mubr.f32.mxu0 %v2229_v3  ;;  %3267 = vmatprep.mubr.f32.mxu1 %v2467_v21  ;;  %v2293_v3 = vld [vmem:[#allocation7 + $0x6b8] sm:$0xff]  ;;  %v2523_v21 = vld [vmem:[#allocation7 + $0xde8] sm:$0xff] }
 0x4e9   : > { %3673 = vmatmul.mubr.f32.gmra.mrb[74].mxu0 %v2228_v28  ;;  %3268 = vmatmul.mubr.f32.gmra.mrb[8].mxu1 %v2466_v23  ;;  %v2292_v28 = vld [vmem:[#allocation7 + $0x6b0] sm:$0xff] }
 0x4ea   : > { %3677 = vmatprep.mubr.f32.mxu0 %v2233_v6  ;;  %3272 = vmatprep.mubr.f32.mxu1 %v2471_v25  ;;  %v2297_v6 = vld [vmem:[#allocation7 + $0x6d8] sm:$0xff]  ;;  %v2522_v25 = vld [vmem:[#allocation7 + $0xde0] sm:$0xff] }
 0x4ed   : > { %3678 = vmatmul.mubr.f32.gmra.mrb[76].mxu0 %v2232_v8  ;;  %3273 = vmatmul.mubr.f32.gmra.mrb[10].mxu1 %v2470_v27  ;;  %v2590_v8 = vld [vmem:[%s7702_s16] sm:$0xff] }
 0x4ee   : > { %3682 = vmatprep.mubr.f32.mxu0 %v2237_v10  ;;  %3277 = vmatprep.mubr.f32.mxu1 %v2475_v30 }
 0x4f1   : > { %3683 = vmatmul.mubr.f32.gmra.mrb[78].mxu0 %v2236_v12  ;;  %3278 = vmatmul.mubr.f32.gmra.mrb[12].mxu1 %v2474_v32  ;;  %v2296_v12 = vld [vmem:[#allocation7 + $0x6d0] sm:$0xff] }
 0x4f2   : > { %3687 = vmatprep.mubr.f32.mxu0 %v2241_v14  ;;  %3282 = vmatprep.mubr.f32.mxu1 %v2479_v34  ;;  %v2304_v32 = vld [vmem:[#allocation7 + $0x710] sm:$0xff] }
 0x4f5   : > { %3688 = vmatmul.mubr.f32.gmra.mrb[80].mxu0 %v2240_v16  ;;  %3283 = vmatmul.mubr.f32.gmra.mrb[14].mxu1 %v2478_v36  ;;  %v2518_v16 = vld [vmem:[#allocation7 + $0xdc0] sm:$0xff] }
 0x4f6   : > { %3692 = vmatprep.mubr.f32.mxu0 %v2245_v18  ;;  %3287 = vmatprep.mubr.f32.mxu1 %v2483_v38  ;;  %v2526_v36 = vld [vmem:[#allocation7 + $0xe00] sm:$0xff] }
 0x4f9   : > { %3693 = vmatmul.mubr.f32.gmra.mrb[82].mxu0 %v2244_v20  ;;  %3288 = vmatmul.mubr.f32.gmra.mrb[16].mxu1 %v2482_v40  ;;  %v2300_v20 = vld [vmem:[#allocation7 + $0x6f0] sm:$0xff] }
 0x4fa   : > { %3697 = vmatprep.mubr.f32.mxu0 %v2249_v22  ;;  %3292 = vmatprep.mubr.f32.mxu1 %v2487_v42  ;;  %v2308_v40 = vld [vmem:[#allocation7 + $0x730] sm:$0xff] }
 0x4fd   : > { %3698 = vmatmul.mubr.f32.gmra.mrb[84].mxu0 %v2248_v24  ;;  %3293 = vmatmul.mubr.f32.gmra.mrb[18].mxu1 %v2486_v44  ;;  %v2305_v24 = vld [vmem:[#allocation7 + $0x718] sm:$0xff] }
 0x4fe   : > { %3702 = vmatprep.mubr.f32.mxu0 %v2253_v26  ;;  %3297 = vmatprep.mubr.f32.mxu1 %v2491_v46  ;;  %v2592_v26 = vld [vmem:[%s7702_s16 + $0x10] sm:$0xff]  ;;  %v2313_v44 = vld [vmem:[#allocation7 + $0x758] sm:$0xff] }
 0x4ff   : > { %v2594_v46 = vld [vmem:[%s7702_s16 + $0x20] sm:$0xff] }
 0x501   : > { %3703 = vmatmul.mubr.f32.gmra.mrb[86].mxu0 %v2252_v29  ;;  %3298 = vmatmul.mubr.f32.gmra.mrb[20].mxu1 %v2490_v48 }
 0x502   : > { %3707 = vmatprep.mubr.f32.mxu0 %v2257_v31  ;;  %3302 = vmatprep.mubr.f32.mxu1 %v2495_v50  ;;  %v2593_v31 = vld [vmem:[%s7702_s16 + $0x18] sm:$0xff]  ;;  %v2595_v50 = vld [vmem:[%s7702_s16 + $0x28] sm:$0xff] }
 0x505   : > { %3708 = vmatmul.mubr.f32.gmra.mrb[88].mxu0 %v2256_v33  ;;  %3303 = vmatmul.mubr.f32.gmra.mrb[22].mxu1 %v2494_v52  ;;  %v2527_v33 = vld [vmem:[#allocation7 + $0xe08] sm:$0xff] }
 0x506   : > { %3712 = vmatprep.mubr.f32.mxu0 %v2261_v35  ;;  %3307 = vmatprep.mubr.f32.mxu1 %v2499_v54  ;;  %v2309_v35 = vld [vmem:[#allocation7 + $0x738] sm:$0xff]  ;;  %v2535_v52 = vld [vmem:[#allocation7 + $0xe48] sm:$0xff] }
 0x507   : > { %v2317_v54 = vld [vmem:[#allocation7 + $0x778] sm:$0xff] }
 0x509   : > { %3713 = vmatmul.mubr.f32.gmra.mrb[90].mxu0 %v2260_v37  ;;  %3308 = vmatmul.mubr.f32.gmra.mrb[24].mxu1 %v2498_v56 }
 0x50a   : > { %3717 = vmatprep.mubr.f32.mxu0 %v2265_v39  ;;  %3312 = vmatprep.mubr.f32.mxu1 %v2503_v58 }
 0x50d   : > { %3718 = vmatmul.mubr.f32.gmra.mrb[92].mxu0 %v2264_v41  ;;  %3313 = vmatmul.mubr.f32.gmra.mrb[26].mxu1 %v2502_v60  ;;  %v2531_v41 = vld [vmem:[#allocation7 + $0xe28] sm:$0xff] }
 0x50e   : > { %3722 = vmatprep.mubr.f32.mxu0 %v2269_v43  ;;  %3317 = vmatprep.mubr.f32.mxu1 %v2507_v62  ;;  %v2539_v60 = vld [vmem:[#allocation7 + $0xe68] sm:$0xff] }
 0x511   : > { %3723 = vmatmul.mubr.f32.gmra.mrb[94].mxu0 %v2268_v45  ;;  %3318 = vmatmul.mubr.f32.gmra.mrb[28].mxu1 %v2506_v0  ;;  %v2530_v45 = vld [vmem:[#allocation7 + $0xe20] sm:$0xff] }
 0x512   : > { %3727 = vmatprep.mubr.f32.mxu0 %v2273_v47  ;;  %3322 = vmatprep.mubr.f32.mxu1 %v2511_v2  ;;  %v2538_v0 = vld [vmem:[#allocation7 + $0xe60] sm:$0xff] }
 0x515   : > { %3728 = vmatmul.mubr.f32.gmra.mrb[96].mxu0 %v2272_v49  ;;  %3323 = vmatmul.mubr.f32.gmra.mrb[30].mxu1 %v2510_v4 }
 0x516   : > { %3732 = vmatprep.mubr.f32.mxu0 %v2277_v51  ;;  %3327 = vmatprep.mubr.f32.mxu1 %v2515_v5  ;;  %v2312_v51 = vld [vmem:[#allocation7 + $0x750] sm:$0xff] }
 0x517   : > { %v2320_v5 = vld [vmem:[#allocation7 + $0x790] sm:$0xff] }
 0x519   : > { %3733 = vmatmul.mubr.f32.gmra.mrb[98].mxu0 %v2276_v53  ;;  %3328 = vmatmul.mubr.f32.gmra.mrb[32].mxu1 %v2514_v7 }
 0x51a   : > { %3737 = vmatprep.mubr.f32.mxu0 %v2281_v55  ;;  %3332 = vmatprep.mubr.f32.mxu1 %v2519_v13  ;;  %v2534_v55 = vld [vmem:[#allocation7 + $0xe40] sm:$0xff]  ;;  %v2324_v13 = vld [vmem:[#allocation7 + $0x7b0] sm:$0xff] }
 0x51d   : > { %3738 = vmatmul.mubr.f32.gmra.mrb[100].mxu0 %v2280_v57  ;;  %3333 = vmatmul.mubr.f32.gmra.mrb[34].mxu1 %v2518_v16 }
 0x51e   : > { %3742 = vmatprep.mubr.f32.mxu0 %v2285_v59  ;;  %3337 = vmatprep.mubr.f32.mxu1 %v2523_v21  ;;  %v2316_v59 = vld [vmem:[#allocation7 + $0x770] sm:$0xff] }
 0x521   : > { %3743 = vmatmul.mubr.f32.gmra.mrb[102].mxu0 %v2284_v61  ;;  %3338 = vmatmul.mubr.f32.gmra.mrb[36].mxu1 %v2522_v25  ;;  %v2551_v25 = vld [vmem:[#allocation7 + $0xec8] sm:$0xff] }
 0x522   : > { %3747 = vmatprep.mubr.f32.mxu0 %v2289_v63  ;;  %3342 = vmatprep.mubr.f32.mxu1 %v2527_v33  ;;  %v2321_v63 = vld [vmem:[#allocation7 + $0x798] sm:$0xff] }
 0x525   : > { %3748 = vmatmul.mubr.f32.gmra.mrb[104].mxu0 %v2288_v1  ;;  %3343 = vmatmul.mubr.f32.gmra.mrb[38].mxu1 %v2526_v36  ;;  %v2596_v1 = vld [vmem:[%s7702_s16 + $0x30] sm:$0xff] }
 0x526   : > { %3752 = vmatprep.mubr.f32.mxu0 %v2293_v3  ;;  %3347 = vmatprep.mubr.f32.mxu1 %v2531_v41 }
 0x528   : > { %v3489_v9 = vpop.f32.mrb[0].mxu0 }
 0x529   : > { %v3491_v10 = vpop.f32.mrb[1].mxu0  ;;  %3753 = vmatmul.mubr.f32.gmra.mrb[106].mxu0 %v2292_v28  ;;  %v5321_v14 = vadd.f32 %v3489_v9, %v2590_v8  ;;  %3348 = vmatmul.mubr.f32.gmra.mrb[40].mxu1 %v2530_v45  ;;  %v2597_v28 = vld [vmem:[%s7702_s16 + $0x38] sm:$0xff]  ;;  %v2325_v8 = vld [vmem:[#allocation7 + $0x7b8] sm:$0xff]  ;;  %v2542_v9 = vld [vmem:[#allocation7 + $0xe80] sm:$0xff] }
 0x52a   : > { %3757 = vmatprep.mubr.f32.mxu0 %v2297_v6  ;;  %3352 = vmatprep.mubr.f32.mxu1 %v2535_v52  ;;  %v2543_v6 = vld [vmem:[#allocation7 + $0xe88] sm:$0xff]  ;;  %v2336_v45 = vld [vmem:[#allocation7 + $0x810] sm:$0xff] }
 0x52b   : > { %v4128_v22 = vmax.f32 %v5321_v14, 0.0  ;;  %v2547_v14 = vld [vmem:[#allocation7 + $0xea8] sm:$0xff] }
 0x52c   : > { %v3494_v17 = vpop.f32.mrb[2].mxu0 }
 0x52d   : > { %v5322_v18 = vadd.f32 %v3494_v17, %v2591_v11  ;;  %v3496_v19 = vpop.f32.mrb[3].mxu0  ;;  %3758 = vmatmul.mubr.f32.gmra.mrb[108].mxu0 %v2296_v12  ;;  %3353 = vmatmul.mubr.f32.gmra.mrb[42].mxu1 %v2534_v55  ;;  %v2329_v17 = vld [vmem:[#allocation7 + $0x7d8] sm:$0xff]  ;;  %v2563_v55 = vld [vmem:[#allocation7 + $0xf28] sm:$0xff] }
 0x52e   : > { %3762 = vmatprep.mubr.f32.mxu0 %v2301_v15  ;;  %3357 = vmatprep.mubr.f32.mxu1 %v2539_v60  ;;  %v2598_v19 = vld [vmem:[%s7702_s16 + $0x40] sm:$0xff] }
 0x52f   : > { %v4129_v23 = vmax.f32 %v5322_v18, 0.0  ;;  %v2546_v18 = vld [vmem:[#allocation7 + $0xea0] sm:$0xff]  ;;  %v2602_v60 = vld [vmem:[%s7702_s16 + $0x60] sm:$0xff] }
 0x530   : > { %v3499_v27 = vpop.f32.mrb[4].mxu0 }
 0x531   : > { %v6897_v29 = vpack.c.bf16 %v4129_v23, %v4128_v22  ;;  %v3501_v30 = vpop.f32.mrb[5].mxu0  ;;  %3763 = vmatmul.mubr.f32.gmra.mrb[110].mxu0 %v2300_v20  ;;  %v5323_v34 = vadd.f32 %v3499_v27, %v2592_v26  ;;  %3358 = vmatmul.mubr.f32.gmra.mrb[44].mxu1 %v2538_v0  ;;  %v2599_v23 = vld [vmem:[%s7702_s16 + $0x48] sm:$0xff]  ;;  %v2333_v27 = vld [vmem:[#allocation7 + $0x7f8] sm:$0xff]  ;;  %v6939_v0 = vpop.f32.mrb[160].mxu1 }
 0x532   : > { %3767 = vmatprep.mubr.f32.mxu0 %v2305_v24  ;;  %3362 = vmatprep.mubr.f32.mxu1 %v2543_v6  ;;  %v2328_v24 = vld [vmem:[#allocation7 + $0x7d0] sm:$0xff]  ;;  %v2550_v30 = vld [vmem:[#allocation7 + $0xec0] sm:$0xff]  ;;  %v2349_v6 = vld [vmem:[#allocation7 + $0x878] sm:$0xff] }
 0x533   : > { %v4130_v42 = vmax.f32 %v5323_v34, 0.0  ;;  %v2332_v34 = vld [vmem:[#allocation7 + $0x7f0] sm:$0xff] }
 0x534   : > { %v3504_v37 = vpop.f32.mrb[6].mxu0 }
 0x535   : > { %v5324_v38 = vadd.f32 %v3504_v37, %v2593_v31  ;;  %v3506_v39 = vpop.f32.mrb[7].mxu0  ;;  %3768 = vmatmul.mubr.f32.gmra.mrb[112].mxu0 %v2304_v32  ;;  %3363 = vmatmul.mubr.f32.gmra.mrb[46].mxu1 %v2542_v9 }
 0x536   : > { %3772 = vmatprep.mubr.f32.mxu0 %v2309_v35  ;;  %3367 = vmatprep.mubr.f32.mxu1 %v2547_v14  ;;  %v2555_v35 = vld [vmem:[#allocation7 + $0xee8] sm:$0xff]  ;;  %v2554_v39 = vld [vmem:[#allocation7 + $0xee0] sm:$0xff] }
 0x537   : > { %v4131_v43 = vmax.f32 %v5324_v38, 0.0  ;;  %v2337_v38 = vld [vmem:[#allocation7 + $0x818] sm:$0xff] }
 0x538   : > { %v3509_v47 = vpop.f32.mrb[8].mxu0 }
 0x539   : > { %v6905_v48 = vpack.c.bf16 %v4131_v43, %v4130_v42  ;;  %v3511_v49 = vpop.f32.mrb[9].mxu0  ;;  %3773 = vmatmul.mubr.f32.gmra.mrb[114].mxu0 %v2308_v40  ;;  %v5325_v53 = vadd.f32 %v3509_v47, %v2594_v46  ;;  %3368 = vmatmul.mubr.f32.gmra.mrb[48].mxu1 %v2546_v18  ;;  %v2600_v40 = vld [vmem:[%s7702_s16 + $0x50] sm:$0xff]  ;;  %v2570_v18 = vld [vmem:[#allocation7 + $0xf60] sm:$0xff] }
 0x53a   : > { %3777 = vmatprep.mubr.f32.mxu0 %v2313_v44  ;;  %3372 = vmatprep.mubr.f32.mxu1 %v2551_v25  ;;  %v2601_v44 = vld [vmem:[%s7702_s16 + $0x58] sm:$0xff]  ;;  %v2559_v46 = vld [vmem:[#allocation7 + $0xf08] sm:$0xff]  ;;  %v2341_v49 = vld [vmem:[#allocation7 + $0x838] sm:$0xff] }
 0x53b   : > { %v4132_v61 = vmax.f32 %v5325_v53, 0.0  ;;  %v2575_v25 = vld [vmem:[#allocation7 + $0xf88] sm:$0xff] }
 0x53c   : > { %v3514_v56 = vpop.f32.mrb[10].mxu0 }
 0x53d   : > { %v5326_v57 = vadd.f32 %v3514_v56, %v2595_v50  ;;  %v3516_v58 = vpop.f32.mrb[11].mxu0  ;;  %3778 = vmatmul.mubr.f32.gmra.mrb[116].mxu0 %v2312_v51  ;;  %3373 = vmatmul.mubr.f32.gmra.mrb[50].mxu1 %v2550_v30  ;;  %v2558_v50 = vld [vmem:[#allocation7 + $0xf00] sm:$0xff] }
 0x53e   : > { %3782 = vmatprep.mubr.f32.mxu0 %v2317_v54  ;;  %3377 = vmatprep.mubr.f32.mxu1 %v2555_v35  ;;  %v2340_v54 = vld [vmem:[#allocation7 + $0x830] sm:$0xff]  ;;  %v2345_v58 = vld [vmem:[#allocation7 + $0x858] sm:$0xff] }
 0x53f   : > { %v4133_v62 = vmax.f32 %v5326_v57, 0.0 }
 0x540   : > { %v3519_v2 = vpop.f32.mrb[12].mxu0 }
 0x541   : > { %v6913_v3 = vpack.c.bf16 %v4133_v62, %v4132_v61  ;;  %v3521_v4 = vpop.f32.mrb[13].mxu0  ;;  %3783 = vmatmul.mubr.f32.gmra.mrb[118].mxu0 %v2316_v59  ;;  %v5327_v7 = vadd.f32 %v3519_v2, %v2596_v1  ;;  %3378 = vmatmul.mubr.f32.gmra.mrb[52].mxu1 %v2554_v39  ;;  %v2562_v59 = vld [vmem:[#allocation7 + $0xf20] sm:$0xff]  ;;  %v2344_v2 = vld [vmem:[#allocation7 + $0x850] sm:$0xff]  ;;  %v2579_v39 = vld [vmem:[#allocation7 + $0xfa8] sm:$0xff] }
 0x542   : > { %3787 = vmatprep.mubr.f32.mxu0 %v2321_v63  ;;  %3382 = vmatprep.mubr.f32.mxu1 %v2559_v46  ;;  %v2603_v1 = vld [vmem:[%s7702_s16 + $0x68] sm:$0xff]  ;;  %v2567_v4 = vld [vmem:[#allocation7 + $0xf48] sm:$0xff]  ;;  %v2606_v46 = vld [vmem:[%s7702_s16 + $0x80] sm:$0xff] }
 0x543   : > { %v4134_v15 = vmax.f32 %v5327_v7, 0.0  ;;  %v2566_v7 = vld [vmem:[#allocation7 + $0xf40] sm:$0xff] }
 0x544   : > { %v3524_v10 = vpop.f32.mrb[14].mxu0 }
 0x545   : > { %v5328_v11 = vadd.f32 %v3524_v10, %v2597_v28  ;;  %v3526_v12 = vpop.f32.mrb[15].mxu0  ;;  %3788 = vmatmul.mubr.f32.gmra.mrb[120].mxu0 %v2320_v5  ;;  %3383 = vmatmul.mubr.f32.gmra.mrb[54].mxu1 %v2558_v50  ;;  %v3011_v28 = vpop.f32.mrb[161].mxu1 }
 0x546   : > { %3792 = vmatprep.mubr.f32.mxu0 %v2325_v8  ;;  %3387 = vmatprep.mubr.f32.mxu1 %v2563_v55  ;;  %v2348_v12 = vld [vmem:[#allocation7 + $0x870] sm:$0xff] }
 0x547   : > { %v4135_v16 = vmax.f32 %v5328_v11, 0.0  ;;  %v6944_v11 = vpop.f32.mrb[162].mxu1 }
 0x548   : > { %v3529_v20 = vpop.f32.mrb[16].mxu0  ;;  %v3016_v14 = vpop.f32.mrb[163].mxu1 }
 0x549   : > { %v6921_v21 = vpack.c.bf16 %v4135_v16, %v4134_v15  ;;  %v3531_v22 = vpop.f32.mrb[17].mxu0  ;;  %3793 = vmatmul.mubr.f32.gmra.mrb[122].mxu0 %v2324_v13  ;;  %v5329_v26 = vadd.f32 %v3529_v20, %v2598_v19  ;;  %3388 = vmatmul.mubr.f32.gmra.mrb[56].mxu1 %v2562_v59  ;;  %v2571_v13 = vld [vmem:[#allocation7 + $0xf68] sm:$0xff] }
 0x54a   : > { %3797 = vmatprep.mubr.f32.mxu0 %v2329_v17  ;;  %3392 = vmatprep.mubr.f32.mxu1 %v2567_v4  ;;  %v2353_v17 = vld [vmem:[#allocation7 + $0x898] sm:$0xff]  ;;  %v2604_v19 = vld [vmem:[%s7702_s16 + $0x70] sm:$0xff] }
 0x54b   : > { %v4136_v36 = vmax.f32 %v5329_v26, 0.0  ;;  %v2605_v26 = vld [vmem:[%s7702_s16 + $0x78] sm:$0xff] }
 0x54c   : > { %v3534_v31 = vpop.f32.mrb[18].mxu0 }
 0x54d   : > { %v5330_v32 = vadd.f32 %v3534_v31, %v2599_v23  ;;  %v3536_v33 = vpop.f32.mrb[19].mxu0  ;;  %3798 = vmatmul.mubr.f32.gmra.mrb[124].mxu0 %v2328_v24  ;;  %3393 = vmatmul.mubr.f32.gmra.mrb[58].mxu1 %v2566_v7  ;;  %v6951_v24 = vpop.f32.mrb[164].mxu1  ;;  %v2586_v7 = vld [vmem:[#allocation7 + $0xfe0] sm:$0xff] }
 0x54e   : > { %3802 = vmatprep.mubr.f32.mxu0 %v2333_v27  ;;  %3397 = vmatprep.mubr.f32.mxu1 %v2571_v13  ;;  %v2352_v27 = vld [vmem:[#allocation7 + $0x890] sm:$0xff]  ;;  %v3021_v30 = vpop.f32.mrb[165].mxu1  ;;  %v2574_v33 = vld [vmem:[#allocation7 + $0xf80] sm:$0xff] }
 0x54f   : > { %v4137_v37 = vmax.f32 %v5330_v32, 0.0  ;;  %v2357_v32 = vld [vmem:[#allocation7 + $0x8b8] sm:$0xff]  ;;  %v2372_v30 = vld [vmem:[#allocation7 + $0x930] sm:$0xff] }
 0x550   : > { %v3539_v41 = vpop.f32.mrb[20].mxu0 }
 0x551   : > { %v6929_v42 = vpack.c.bf16 %v4137_v37, %v4136_v36  ;;  %v3541_v43 = vpop.f32.mrb[21].mxu0  ;;  %3803 = vmatmul.mubr.f32.gmra.mrb[126].mxu0 %v2332_v34  ;;  %v5331_v47 = vadd.f32 %v3539_v41, %v2600_v40  ;;  %3398 = vmatmul.mubr.f32.gmra.mrb[60].mxu1 %v2570_v18  ;;  %v6956_v37 = vpop.f32.mrb[166].mxu1 }
 0x552   : > { %3807 = vmatprep.mubr.f32.mxu0 %v2337_v38  ;;  %3402 = vmatprep.mubr.f32.mxu1 %v2575_v25  ;;  %v2356_v38 = vld [vmem:[#allocation7 + $0x8b0] sm:$0xff]  ;;  %v3026_v40 = vpop.f32.mrb[167].mxu1 }
 0x553   : > { %v4138_v56 = vmax.f32 %v5331_v47, 0.0  ;;  %v2611_v40 = vld [vmem:[%s7702_s16 + $0xa8] sm:$0xff] }
 0x554   : > { %v3544_v51 = vpop.f32.mrb[22].mxu0 }
 0x555   : > { %v5332_v52 = vadd.f32 %v3544_v51, %v2601_v44  ;;  %v3546_v53 = vpop.f32.mrb[23].mxu0  ;;  %3808 = vmatmul.mubr.f32.gmra.mrb[128].mxu0 %v2336_v45  ;;  %3403 = vmatmul.mubr.f32.gmra.mrb[62].mxu1 %v2574_v33  ;;  %v2361_v44 = vld [vmem:[#allocation7 + $0x8d8] sm:$0xff]  ;;  %v2578_v45 = vld [vmem:[#allocation7 + $0xfa0] sm:$0xff]  ;;  %v6963_v51 = vpop.f32.mrb[168].mxu1 }
 0x556   : > { %3812 = vmatprep.mubr.f32.mxu0 %v2341_v49  ;;  %3407 = vmatprep.mubr.f32.mxu1 %v2579_v39  ;;  %v2360_v53 = vld [vmem:[#allocation7 + $0x8d0] sm:$0xff]  ;;  %v3031_v55 = vpop.f32.mrb[169].mxu1 }
 0x557   : > { %v4139_v57 = vmax.f32 %v5332_v52, 0.0  ;;  %v2607_v52 = vld [vmem:[%s7702_s16 + $0x88] sm:$0xff] }
 0x558   : > { %v3549_v61 = vpop.f32.mrb[24].mxu0 }
 0x559   : > { %v6937_v62 = vpack.c.bf16 %v4139_v57, %v4138_v56  ;;  %v3551_v63 = vpop.f32.mrb[25].mxu0  ;;  %3813 = vmatmul.mubr.f32.gmra.mrb[130].mxu0 %v2340_v54  ;;  %v5333_v5 = vadd.f32 %v3549_v61, %v2602_v60  ;;  %3408 = vmatmul.mubr.f32.gmra.mrb[64].mxu1 %v2578_v45  ;;  %v2583_v54 = vld [vmem:[#allocation7 + $0xfc8] sm:$0xff]  ;;  %v2365_v57 = vld [vmem:[#allocation7 + $0x8f8] sm:$0xff] }
 0x55a   : > { %3817 = vmatprep.mubr.f32.mxu0 %v2345_v58  ;;  %3412 = vmatprep.mubr.f32.mxu1 %v2583_v54  ;;  %v2582_v58 = vld [vmem:[#allocation7 + $0xfc0] sm:$0xff]  ;;  %v6968_v63 = vpop.f32.mrb[170].mxu1  ;;  %v2381_v45 = vld [vmem:[#allocation7 + $0x978] sm:$0xff] }
 0x55b   : > { %v4140_v15 = vmax.f32 %v5333_v5, 0.0  ;;  %v3036_v4 = vpop.f32.mrb[171].mxu1 }
 0x55c   : > { %v3554_v8 = vpop.f32.mrb[26].mxu0  ;;  %v6975_v14 = vpop.f32.mrb[172].mxu1 }
 0x55d   : > { %v5334_v9 = vadd.f32 %v3554_v8, %v2603_v1  ;;  %v3556_v10 = vpop.f32.mrb[27].mxu0  ;;  %3818 = vmatmul.mubr.f32.gmra.mrb[132].mxu0 %v2344_v2  ;;  %3413 = vmatmul.mubr.f32.gmra.mrb[66].mxu1 %v2582_v58  ;;  %v2364_v1 = vld [vmem:[#allocation7 + $0x8f0] sm:$0xff]  ;;  %v2587_v2 = vld [vmem:[#allocation7 + $0xfe8] sm:$0xff]  ;;  %v3041_v18 = vpop.f32.mrb[173].mxu1 }
 0x55e   : > { %3822 = vmatprep.mubr.f32.mxu0 %v2349_v6  ;;  %v2369_v6 = vld [vmem:[#allocation7 + $0x918] sm:$0xff]  ;;  %3417 = vmatprep.mubr.f32.mxu1 %v2587_v2  ;;  %v2608_v8 = vld [vmem:[%s7702_s16 + $0x90] sm:$0xff]  ;;  %v6973_v10 = vld [vmem:[#allocation8] sm:$0xff] }
 0x55f   : > { %v4141_v16 = vmax.f32 %v5334_v9, 0.0  ;;  %v2612_v58 = vld [vmem:[%s7702_s16 + $0xb0] sm:$0xff]  ;;  %v2384_v2 = vld [vmem:[#allocation7 + $0x990] sm:$0xff]  ;;  %v2614_v18 = vld [vmem:[%s7702_s16 + $0xc0] sm:$0xff] }
 0x560   : > { %v3559_v20 = vpop.f32.mrb[28].mxu0 }
 0x561   : > { %v6949_v22 = vpack.c.bf16 %v4141_v16, %v4140_v15  ;;  %v3561_v23 = vpop.f32.mrb[29].mxu0  ;;  %3823 = vmatmul.mubr.f32.gmra.mrb[134].mxu0 %v2348_v12  ;;  %v5335_v31 = vadd.f32 %v3559_v20, %v2604_v19  ;;  %3418 = vmatmul.mubr.f32.gmra.mrb[68].mxu1 %v2586_v7  ;;  %v4265_v15 = vcombine.high %v6973_v10, %v6973_v10  ;;  %v2609_v16 = vld [vmem:[%s7702_s16 + $0x98] sm:$0xff]  ;;  %v2373_v20 = vld [vmem:[#allocation7 + $0x938] sm:$0xff] }
 0x562   : > { %3827 = vmatprep.mubr.f32.mxu0 %v2353_v17  ;;  %v2368_v17 = vld [vmem:[#allocation7 + $0x910] sm:$0xff] }
 0x563   : > { %v4142_v41 = vmax.f32 %v5335_v31, 0.0  ;;  %4337 = vmatprep.mubr.f32.mxu1 %v4265_v15 }
 0x564   : > { %v3564_v34 = vpop.f32.mrb[30].mxu0 }
 0x565   : > { %v5336_v35 = vadd.f32 %v3564_v34, %v2605_v26  ;;  %v3566_v36 = vpop.f32.mrb[31].mxu0  ;;  %3828 = vmatmul.mubr.f32.gmra.mrb[136].mxu0 %v2352_v27  ;;  %v6983_v27 = vpop.f32.mrb[174].mxu1  ;;  %v2377_v34 = vld [vmem:[#allocation7 + $0x958] sm:$0xff] }
 0x566   : > { %3832 = vmatprep.mubr.f32.mxu0 %v2357_v32  ;;  %v3046_v31 = vpop.f32.mrb[175].mxu1 }
 0x567   : > { %v4143_v43 = vmax.f32 %v5336_v35, 0.0  ;;  %v2610_v35 = vld [vmem:[%s7702_s16 + $0xa0] sm:$0xff] }
 0x568   : > { %v3569_v47 = vpop.f32.mrb[32].mxu0 }
 0x569   : > { %v6961_v49 = vpack.c.bf16 %v4143_v43, %v4142_v41  ;;  %v3571_v50 = vpop.f32.mrb[33].mxu0  ;;  %3833 = vmatmul.mubr.f32.gmra.mrb[138].mxu0 %v2356_v38  ;;  %v5337_v56 = vadd.f32 %v3569_v47, %v2606_v46  ;;  %v2376_v41 = vld [vmem:[#allocation7 + $0x950] sm:$0xff] }
 0x56a   : > { %3837 = vmatprep.mubr.f32.mxu0 %v2361_v44 }
 0x56b   : > { %v4144_v28 = vmax.f32 %v5337_v56, 0.0 }
 0x56c   : > { %v3574_v59 = vpop.f32.mrb[34].mxu0 }
 0x56d   : > { %v5338_v60 = vadd.f32 %v3574_v59, %v2607_v52  ;;  %v3576_v61 = vpop.f32.mrb[35].mxu0  ;;  %3838 = vmatmul.mubr.f32.gmra.mrb[140].mxu0 %v2360_v53  ;;  %v2380_v53 = vld [vmem:[#allocation7 + $0x970] sm:$0xff] }
 0x56e   : > { %3842 = vmatprep.mubr.f32.mxu0 %v2365_v57  ;;  %v2385_v57 = vld [vmem:[#allocation7 + $0x998] sm:$0xff] }
 0x56f   : > { %v4145_v5 = vmax.f32 %v5338_v60, 0.0 }
 0x570   : > { %v3579_v9 = vpop.f32.mrb[36].mxu0 }
 0x571   : > { %v5161_v12 = vpack.c.bf16 %v4145_v5, %v4144_v28  ;;  %v3581_v13 = vpop.f32.mrb[37].mxu0  ;;  %3843 = vmatmul.mubr.f32.gmra.mrb[142].mxu0 %v2364_v1  ;;  %v5339_v19 = vadd.f32 %v3579_v9, %v2608_v8  ;;  %v2613_v1 = vld [vmem:[%s7702_s16 + $0xb8] sm:$0xff]  ;;  %v2389_v5 = vld [vmem:[#allocation7 + $0x9b8] sm:$0xff] }
 0x572   : > { %3847 = vmatprep.mubr.f32.mxu0 %v2369_v6 }
 0x573   : > { %5162 = vmatprep.subr.bf16.mxu1 %v5161_v12  ;;  %v4146_v32 = vmax.f32 %v5339_v19, 0.0  ;;  %v2388_v12 = vld [vmem:[#allocation7 + $0x9b0] sm:$0xff] }
 0x574   : > { %v3584_v23 = vpop.f32.mrb[38].mxu0  ;;  %5164 = vmatpush3.bf16.msra.mxu1 %v6897_v29  ;;  %v6988_v29 = vpop.f32.mrb[176].mxu1 }
 0x575   : > { %v5340_v25 = vadd.f32 %v3584_v23, %v2609_v16  ;;  %v3586_v26 = vpop.f32.mrb[39].mxu0  ;;  %3848 = vmatmul.mubr.f32.gmra.mrb[144].mxu0 %v2368_v17  ;;  %v3051_v43 = vpop.f32.mrb[177].mxu1  ;;  %v2393_v17 = vld [vmem:[#allocation7 + $0x9d8] sm:$0xff] }
 0x576   : > { %3852 = vmatprep.mubr.f32.mxu0 %v2373_v20  ;;  %v6994_v52 = vpop.f32.mrb[178].mxu1  ;;  %v2392_v26 = vld [vmem:[#allocation7 + $0x9d0] sm:$0xff]  ;;  %v2401_v43 = vld [vmem:[#allocation7 + $0xa18] sm:$0xff] }
 0x577   : > { %v4147_v33 = vmax.f32 %v5340_v25, 0.0  ;;  %v3056_v54 = vpop.f32.mrb[179].mxu1  ;;  %v2615_v25 = vld [vmem:[%s7702_s16 + $0xc8] sm:$0xff] }
 0x578   : > { %v3589_v36 = vpop.f32.mrb[40].mxu0 }
 0x579   : > { %v5165_v38 = vpack.c.bf16 %v4147_v33, %v4146_v32  ;;  %v3591_v39 = vpop.f32.mrb[41].mxu0  ;;  %3853 = vmatmul.mubr.f32.gmra.mrb[146].mxu0 %v2372_v30  ;;  %v5341_v44 = vadd.f32 %v3589_v36, %v2610_v35  ;;  %v2397_v32 = vld [vmem:[#allocation7 + $0x9f8] sm:$0xff] }
 0x57a   : > { %3857 = vmatprep.mubr.f32.mxu0 %v2377_v34 }
 0x57b   : > { %5166 = vmatprep.subr.bf16.mxu1 %v5165_v38  ;;  %v4148_v55 = vmax.f32 %v5341_v44, 0.0  ;;  %v2396_v38 = vld [vmem:[#allocation7 + $0x9f0] sm:$0xff]  ;;  %v2616_v44 = vld [vmem:[%s7702_s16 + $0xd0] sm:$0xff] }
 0x57c   : > { %v3594_v46 = vpop.f32.mrb[42].mxu0  ;;  %5168 = vmatpush3.bf16.msra.mxu1 %v6905_v48  ;;  %v6999_v48 = vpop.f32.mrb[180].mxu1 }
 0x57d   : > { %v5342_v47 = vadd.f32 %v3594_v46, %v2611_v40  ;;  %v3596_v50 = vpop.f32.mrb[43].mxu0  ;;  %3858 = vmatmul.mubr.f32.gmra.mrb[148].mxu0 %v2376_v41  ;;  %v3061_v4 = vpop.f32.mrb[181].mxu1 }
 0x57e   : > { %3862 = vmatprep.mubr.f32.mxu0 %v2381_v45  ;;  %v7005_v9 = vpop.f32.mrb[182].mxu1  ;;  %v2617_v50 = vld [vmem:[%s7702_s16 + $0xd8] sm:$0xff] }
 0x57f   : > { %v4149_v56 = vmax.f32 %v5342_v47, 0.0  ;;  %v3066_v13 = vpop.f32.mrb[183].mxu1 }
 0x580   : > { %v3599_v59 = vpop.f32.mrb[44].mxu0  ;;  %v2408_v13 = vld [vmem:[#allocation7 + $0xa50] sm:$0xff] }
 0x581   : > { %v5169_v60 = vpack.c.bf16 %v4149_v56, %v4148_v55  ;;  %v3601_v61 = vpop.f32.mrb[45].mxu0  ;;  %3863 = vmatmul.mubr.f32.gmra.mrb[150].mxu0 %v2380_v53  ;;  %v5343_v28 = vadd.f32 %v3599_v59, %v2612_v58  ;;  %v2400_v53 = vld [vmem:[#allocation7 + $0xa10] sm:$0xff]  ;;  %v2405_v56 = vld [vmem:[#allocation7 + $0xa38] sm:$0xff] }
 0x582   : > { %3867 = vmatprep.mubr.f32.mxu0 %v2385_v57  ;;  %v2404_v61 = vld [vmem:[#allocation7 + $0xa30] sm:$0xff] }
 0x583   : > { %5170 = vmatprep.subr.bf16.mxu1 %v5169_v60  ;;  %v4150_v15 = vmax.f32 %v5343_v28, 0.0  ;;  %v2409_v28 = vld [vmem:[#allocation7 + $0xa58] sm:$0xff] }
 0x584   : > { %v3604_v6 = vpop.f32.mrb[46].mxu0  ;;  %5172 = vmatpush3.bf16.msra.mxu1 %v6913_v3  ;;  %v7010_v3 = vpop.f32.mrb[184].mxu1 }
 0x585   : > { %v5344_v7 = vadd.f32 %v3604_v6, %v2613_v1  ;;  %v3606_v8 = vpop.f32.mrb[47].mxu0  ;;  %3868 = vmatmul.mubr.f32.gmra.mrb[152].mxu0 %v2384_v2  ;;  %v3071_v30 = vpop.f32.mrb[185].mxu1 }
 0x586   : > { %3872 = vmatprep.mubr.f32.mxu0 %v2389_v5  ;;  %v7016_v36 = vpop.f32.mrb[186].mxu1  ;;  %v2618_v5 = vld [vmem:[%s7702_s16 + $0xe0] sm:$0xff] }
 0x587   : > { %v4151_v16 = vmax.f32 %v5344_v7, 0.0  ;;  %v3076_v39 = vpop.f32.mrb[187].mxu1 }
 0x588   : > { %v3609_v19 = vpop.f32.mrb[48].mxu0  ;;  %v2621_v39 = vld [vmem:[%s7702_s16 + $0xf8] sm:$0xff] }
 0x589   : > { %v5173_v20 = vpack.c.bf16 %v4151_v16, %v4150_v15  ;;  %v3611_v23 = vpop.f32.mrb[49].mxu0  ;;  %3873 = vmatmul.mubr.f32.gmra.mrb[154].mxu0 %v2388_v12  ;;  %v5345_v31 = vadd.f32 %v3609_v19, %v2614_v18  ;;  %v2619_v12 = vld [vmem:[%s7702_s16 + $0xe8] sm:$0xff] }
 0x58a   : > { %3877 = vmatprep.mubr.f32.mxu0 %v2393_v17  ;;  %v2413_v17 = vld [vmem:[#allocation7 + $0xa78] sm:$0xff] }
 0x58b   : > { %5174 = vmatprep.subr.bf16.mxu1 %v5173_v20  ;;  %v4152_v40 = vmax.f32 %v5345_v31, 0.0 }
 0x58c   : > { %v3614_v33 = vpop.f32.mrb[50].mxu0  ;;  %5176 = vmatpush3.bf16.msra.mxu1 %v6921_v21  ;;  %v7021_v21 = vpop.f32.mrb[188].mxu1 }
 0x58d   : > { %v5346_v34 = vadd.f32 %v3614_v33, %v2615_v25  ;;  %v3616_v35 = vpop.f32.mrb[51].mxu0  ;;  %3878 = vmatmul.mubr.f32.gmra.mrb[156].mxu0 %v2392_v26  ;;  %v3081_v54 = vpop.f32.mrb[189].mxu1  ;;  %v2412_v25 = vld [vmem:[#allocation7 + $0xa70] sm:$0xff]  ;;  %v2620_v33 = vld [vmem:[%s7702_s16 + $0xf0] sm:$0xff] }
 0x58e   : > { %3882 = vmatprep.mubr.f32.mxu0 %v2397_v32  ;;  %v7027_v60 = vpop.f32.mrb[190].mxu1  ;;  %v2417_v32 = vld [vmem:[#allocation7 + $0xa98] sm:$0xff] }
 0x58f   : > { %v4153_v41 = vmax.f32 %v5346_v34, 0.0  ;;  %v3086_v1 = vpop.f32.mrb[191].mxu1 }
 0x590   : > { %v3619_v45 = vpop.f32.mrb[52].mxu0 }
 0x591   : > { %v5177_v46 = vpack.c.bf16 %v4153_v41, %v4152_v40  ;;  %v3621_v47 = vpop.f32.mrb[53].mxu0  ;;  %3883 = vmatmul.mubr.f32.gmra.mrb[158].mxu0 %v2396_v38  ;;  %v5347_v55 = vadd.f32 %v3619_v45, %v2616_v44  ;;  %v2416_v40 = vld [vmem:[#allocation7 + $0xa90] sm:$0xff]  ;;  %v2421_v44 = vld [vmem:[#allocation7 + $0xab8] sm:$0xff] }
 0x592   : > { %3887 = vmatprep.mubr.f32.mxu0 %v2401_v43 }
 0x593   : > { %5178 = vmatprep.subr.bf16.mxu1 %v5177_v46  ;;  %v4154_v2 = vmax.f32 %v5347_v55, 0.0 }
 0x594   : > { %v3624_v57 = vpop.f32.mrb[54].mxu0  ;;  %5180 = vmatpush3.bf16.msra.mxu1 %v6929_v42  ;;  %v7032_v42 = vpop.f32.mrb[192].mxu1 }
 0x595   : > { %v5348_v58 = vadd.f32 %v3624_v57, %v2617_v50  ;;  %v3626_v59 = vpop.f32.mrb[55].mxu0  ;;  %3888 = vmatmul.mubr.f32.gmra.mrb[160].mxu0 %v2400_v53  ;;  %v3091_v15 = vpop.f32.mrb[193].mxu1  ;;  %v2420_v53 = vld [vmem:[#allocation7 + $0xab0] sm:$0xff]  ;;  %v2425_v57 = vld [vmem:[#allocation7 + $0xad8] sm:$0xff] }
 0x596   : > { %3892 = vmatprep.mubr.f32.mxu0 %v2405_v56  ;;  %v7038_v23 = vpop.f32.mrb[194].mxu1  ;;  %v2428_v15 = vld [vmem:[#allocation7 + $0xaf0] sm:$0xff] }
 0x597   : > { %v4155_v4 = vmax.f32 %v5348_v58, 0.0  ;;  %v3096_v26 = vpop.f32.mrb[195].mxu1  ;;  %v2622_v58 = vld [vmem:[%s7702_s16 + $0x100] sm:$0xff] }
 0x598   : > { %v3629_v6 = vpop.f32.mrb[56].mxu0 }
 0x599   : > { %v5181_v7 = vpack.c.bf16 %v4155_v4, %v4154_v2  ;;  %v3631_v8 = vpop.f32.mrb[57].mxu0  ;;  %3893 = vmatmul.mubr.f32.gmra.mrb[162].mxu0 %v2404_v61  ;;  %v5349_v16 = vadd.f32 %v3629_v6, %v2618_v5  ;;  %v2623_v2 = vld [vmem:[%s7702_s16 + $0x108] sm:$0xff]  ;;  %v2424_v4 = vld [vmem:[#allocation7 + $0xad0] sm:$0xff]  ;;  %v2429_v6 = vld [vmem:[#allocation7 + $0xaf8] sm:$0xff] }
 0x59a   : > { %3897 = vmatprep.mubr.f32.mxu0 %v2409_v28 }
 0x59b   : > { %5182 = vmatprep.subr.bf16.mxu1 %v5181_v7  ;;  %v4156_v30 = vmax.f32 %v5349_v16, 0.0 }
 0x59c   : > { %v3634_v18 = vpop.f32.mrb[58].mxu0  ;;  %5184 = vmatpush3.bf16.msra.mxu1 %v6937_v62  ;;  %v7043_v62 = vpop.f32.mrb[196].mxu1 }
 0x59d   : > { %v5350_v19 = vadd.f32 %v3634_v18, %v2619_v12  ;;  %v3636_v20 = vpop.f32.mrb[59].mxu0  ;;  %3898 = vmatmul.mubr.f32.gmra.mrb[164].mxu0 %v2408_v13  ;;  %v3101_v41 = vpop.f32.mrb[197].mxu1 }
 0x59e   : > { %3902 = vmatprep.mubr.f32.mxu0 %v2413_v17  ;;  %v7049_v50 = vpop.f32.mrb[198].mxu1  ;;  %v2624_v20 = vld [vmem:[%s7702_s16 + $0x110] sm:$0xff]  ;;  %v2436_v41 = vld [vmem:[#allocation7 + $0xb30] sm:$0xff] }
 0x59f   : > { %v4157_v31 = vmax.f32 %v5350_v19, 0.0  ;;  %v3106_v54 = vpop.f32.mrb[199].mxu1  ;;  %v2433_v19 = vld [vmem:[#allocation7 + $0xb18] sm:$0xff] }
 0x5a0   : > { %v3639_v34 = vpop.f32.mrb[60].mxu0 }
 0x5a1   : > { %v5185_v35 = vpack.c.bf16 %v4157_v31, %v4156_v30  ;;  %v3641_v38 = vpop.f32.mrb[61].mxu0  ;;  %3903 = vmatmul.mubr.f32.gmra.mrb[166].mxu0 %v2412_v25  ;;  %v5351_v43 = vadd.f32 %v3639_v34, %v2620_v33  ;;  %v2625_v31 = vld [vmem:[%s7702_s16 + $0x118] sm:$0xff] }
 0x5a2   : > { %3907 = vmatprep.mubr.f32.mxu0 %v2417_v32  ;;  %v2432_v32 = vld [vmem:[#allocation7 + $0xb10] sm:$0xff] }
 0x5a3   : > { %5186 = vmatprep.subr.bf16.mxu1 %v5185_v35  ;;  %v4158_v55 = vmax.f32 %v5351_v43, 0.0 }
 0x5a4   : > { %v3644_v45 = vpop.f32.mrb[62].mxu0  ;;  %5188 = vmatpush3.bf16.msra.mxu1 %v6949_v22  ;;  %v7054_v22 = vpop.f32.mrb[200].mxu1 }
 0x5a5   : > { %v5352_v46 = vadd.f32 %v3644_v45, %v2621_v39  ;;  %v3646_v47 = vpop.f32.mrb[63].mxu0  ;;  %3908 = vmatmul.mubr.f32.gmra.mrb[168].mxu0 %v2416_v40  ;;  %v3111_v28 = vpop.f32.mrb[201].mxu1 }
 0x5a6   : > { %3912 = vmatprep.mubr.f32.mxu0 %v2421_v44  ;;  %v7060_v13 = vpop.f32.mrb[202].mxu1  ;;  %v2626_v47 = vld [vmem:[%s7702_s16 + $0x120] sm:$0xff] }
 0x5a7   : > { %v4159_v56 = vmax.f32 %v5352_v46, 0.0  ;;  %v3116_v16 = vpop.f32.mrb[203].mxu1  ;;  %v2441_v46 = vld [vmem:[#allocation7 + $0xb58] sm:$0xff] }
 0x5a8   : > { %v3649_v59 = vpop.f32.mrb[64].mxu0  ;;  %v7068_v30 = vpop.f32.mrb[204].mxu1  ;;  %v2628_v16 = vld [vmem:[%s7702_s16 + $0x130] sm:$0xff] }
 0x5a9   : > { %v5189_v61 = vpack.c.bf16 %v4159_v56, %v4158_v55  ;;  %v3651_v1 = vpop.f32.mrb[65].mxu0  ;;  %3913 = vmatmul.mubr.f32.gmra.mrb[170].mxu0 %v2420_v53  ;;  %v5353_v5 = vadd.f32 %v3649_v59, %v2622_v58  ;;  %v3121_v33 = vpop.f32.mrb[205].mxu1  ;;  %v2440_v58 = vld [vmem:[#allocation7 + $0xb50] sm:$0xff] }
 0x5aa   : > { %3917 = vmatprep.mubr.f32.mxu0 %v2425_v57  ;;  %v7073_v40 = vpop.f32.mrb[206].mxu1  ;;  %v2627_v57 = vld [vmem:[%s7702_s16 + $0x128] sm:$0xff]  ;;  %v2445_v1 = vld [vmem:[#allocation7 + $0xb78] sm:$0xff] }
 0x5ab   : > { %5190 = vmatprep.subr.bf16.mxu1 %v5189_v61  ;;  %v4160_v17 = vmax.f32 %v5353_v5, 0.0  ;;  %v3126_v43 = vpop.f32.mrb[207].mxu1  ;;  %v2453_v33 = vld [vmem:[#allocation7 + $0xbb8] sm:$0xff] }
 0x5ac   : > { %v3654_v7 = vpop.f32.mrb[66].mxu0  ;;  %5192 = vmatpush3.bf16.msra.mxu1 %v6961_v49  ;;  %v7080_v56 = vpop.f32.mrb[208].mxu1 }
 0x5ad   : > { %v5354_v8 = vadd.f32 %v3654_v7, %v2623_v2  ;;  %v3656_v12 = vpop.f32.mrb[67].mxu0  ;;  %3918 = vmatmul.mubr.f32.gmra.mrb[172].mxu0 %v2424_v4  ;;  %v3131_v59 = vpop.f32.mrb[209].mxu1 }
 0x5ae   : > { %3922 = vmatprep.mubr.f32.mxu0 %v2429_v6  ;;  %v7085_v5 = vpop.f32.mrb[210].mxu1  ;;  %v2444_v6 = vld [vmem:[#allocation7 + $0xb70] sm:$0xff] }
 0x5af   : > { %v4161_v18 = vmax.f32 %v5354_v8, 0.0  ;;  %4338 = vmatmul.mubr.f32.vlgmr.msra.gmra.mrb[70].mxu1 %v6973_v10  ;;  %v2437_v10 = vld [vmem:[#allocation7 + $0xb38] sm:$0xff]  ;;  %v3136_v7 = vpop.f32.mrb[211].mxu1  ;;  %v2456_v59 = vld [vmem:[#allocation7 + $0xbd0] sm:$0xff] }
 0x5b0   : > { %v3659_v25 = vpop.f32.mrb[68].mxu0 }
 0x5b1   : > { %v7066_v26 = vpack.c.bf16 %v4161_v18, %v4160_v17  ;;  %v3661_v49 = vpop.f32.mrb[69].mxu0  ;;  %3923 = vmatmul.mubr.f32.gmra.mrb[174].mxu0 %v2428_v15  ;;  %v5355_v34 = vadd.f32 %v3659_v25, %v2624_v20  ;;  %v2449_v15 = vld [vmem:[#allocation7 + $0xb98] sm:$0xff]  ;;  %v7092_v20 = vpop.f32.mrb[212].mxu1  ;;  %v2629_v25 = vld [vmem:[%s7702_s16 + $0x138] sm:$0xff] }
 0x5b2   : > { %3927 = vmatprep.mubr.f32.mxu0 %v2433_v19  ;;  %v2448_v49 = vld [vmem:[#allocation7 + $0xb90] sm:$0xff] }
 0x5b3   : > { %v4162_v44 = vmax.f32 %v5355_v34, 0.0 }
 0x5b4   : > { %v3664_v35 = vpop.f32.mrb[70].mxu0 }
 0x5b5   : > { %v5356_v38 = vadd.f32 %v3664_v35, %v2625_v31  ;;  %v3666_v39 = vpop.f32.mrb[71].mxu0  ;;  %3928 = vmatmul.mubr.f32.gmra.mrb[176].mxu0 %v2432_v32  ;;  %v3141_v31 = vpop.f32.mrb[213].mxu1 }
 0x5b6   : > { %3932 = vmatprep.mubr.f32.mxu0 %v2437_v10  ;;  %v2452_v39 = vld [vmem:[#allocation7 + $0xbb0] sm:$0xff] }
 0x5b7   : > { %v4163_v45 = vmax.f32 %v5356_v38, 0.0  ;;  %v7097_v38 = vpop.f32.mrb[214].mxu1 }
 0x5b8   : > { %v3669_v53 = vpop.f32.mrb[72].mxu0 }
 0x5b9   : > { %v7078_v54 = vpack.c.bf16 %v4163_v45, %v4162_v44  ;;  %v3671_v55 = vpop.f32.mrb[73].mxu0  ;;  %3933 = vmatmul.mubr.f32.gmra.mrb[178].mxu0 %v2436_v41  ;;  %v5357_v61 = vadd.f32 %v3669_v53, %v2626_v47  ;;  %v3146_v41 = vpop.f32.mrb[215].mxu1  ;;  %v2457_v45 = vld [vmem:[#allocation7 + $0xbd8] sm:$0xff] }
 0x5ba   : > { %3937 = vmatprep.mubr.f32.mxu0 %v2441_v46  ;;  %v2630_v46 = vld [vmem:[%s7702_s16 + $0x140] sm:$0xff] }
 0x5bb   : > { %v4164_v8 = vmax.f32 %v5357_v61, 0.0 }
 0x5bc   : > { %v3674_v2 = vpop.f32.mrb[74].mxu0 }
 0x5bd   : > { %v5358_v4 = vadd.f32 %v3674_v2, %v2627_v57  ;;  %v3676_v28 = vpop.f32.mrb[75].mxu0  ;;  %3938 = vmatmul.mubr.f32.gmra.mrb[180].mxu0 %v2440_v58  ;;  %v7104_v57 = vpop.f32.mrb[216].mxu1  ;;  %v2631_v58 = vld [vmem:[%s7702_s16 + $0x148] sm:$0xff]  ;;  %v2461_v2 = vld [vmem:[#allocation7 + $0xbf8] sm:$0xff] }
 0x5be   : > { %3942 = vmatprep.mubr.f32.mxu0 %v2445_v1  ;;  %v3151_v61 = vpop.f32.mrb[217].mxu1 }
 0x5bf   : > { %v4165_v12 = vmax.f32 %v5358_v4, 0.0  ;;  %v7109_v7 = vpop.f32.mrb[218].mxu1  ;;  %v2473_v61 = vld [vmem:[#allocation7 + $0xc58] sm:$0xff] }
 0x5c0   : > { %v3679_v17 = vpop.f32.mrb[76].mxu0 }
 0x5c1   : > { %v7090_v18 = vpack.c.bf16 %v4165_v12, %v4164_v8  ;;  %v3681_v19 = vpop.f32.mrb[77].mxu0  ;;  %3943 = vmatmul.mubr.f32.gmra.mrb[182].mxu0 %v2444_v6  ;;  %v5359_v32 = vadd.f32 %v3679_v17, %v2628_v16  ;;  %v2460_v8 = vld [vmem:[#allocation7 + $0xbf0] sm:$0xff]  ;;  %v3156_v12 = vpop.f32.mrb[219].mxu1  ;;  %v2465_v17 = vld [vmem:[#allocation7 + $0xc18] sm:$0xff] }
 0x5c2   : > { %3947 = vmatprep.mubr.f32.mxu0 %v2449_v15  ;;  %v2632_v19 = vld [vmem:[%s7702_s16 + $0x150] sm:$0xff]  ;;  %v2472_v12 = vld [vmem:[#allocation7 + $0xc50] sm:$0xff] }
 0x5c3   : > { %v4166_v43 = vmax.f32 %v5359_v32, 0.0  ;;  %v7116_v32 = vpop.f32.mrb[220].mxu1 }
 0x5c4   : > { %v3684_v34 = vpop.f32.mrb[78].mxu0 }
 0x5c5   : > { %v5360_v10 = vadd.f32 %v3684_v34, %v2629_v25  ;;  %v3686_v35 = vpop.f32.mrb[79].mxu0  ;;  %3948 = vmatmul.mubr.f32.gmra.mrb[184].mxu0 %v2448_v49  ;;  %v2464_v34 = vld [vmem:[#allocation7 + $0xc10] sm:$0xff] }
 0x5c6   : > { %3952 = vmatprep.mubr.f32.mxu0 %v2453_v33  ;;  %v2633_v33 = vld [vmem:[%s7702_s16 + $0x158] sm:$0xff] }
 0x5c7   : > { %v4167_v44 = vmax.f32 %v5360_v10, 0.0  ;;  %v3161_v10 = vpop.f32.mrb[221].mxu1 }
 0x5c8   : > { %v3689_v47 = vpop.f32.mrb[80].mxu0 }
 0x5c9   : > { %v7102_v53 = vpack.c.bf16 %v4167_v44, %v4166_v43  ;;  %v3691_v55 = vpop.f32.mrb[81].mxu0  ;;  %3953 = vmatmul.mubr.f32.gmra.mrb[186].mxu0 %v2452_v39  ;;  %v5361_v1 = vadd.f32 %v3689_v47, %v2630_v46  ;;  %v2469_v39 = vld [vmem:[#allocation7 + $0xc38] sm:$0xff]  ;;  %v2468_v46 = vld [vmem:[#allocation7 + $0xc30] sm:$0xff]  ;;  %v2635_v47 = vld [vmem:[%s7702_s16 + $0x168] sm:$0xff] }
 0x5ca   : > { %3957 = vmatprep.mubr.f32.mxu0 %v2457_v45  ;;  %v7121_v45 = vpop.f32.mrb[222].mxu1 }
 0x5cb   : > { %v4168_v15 = vmax.f32 %v5361_v1, 0.0  ;;  %v3166_v55 = vpop.f32.mrb[223].mxu1  ;;  %v2634_v1 = vld [vmem:[%s7702_s16 + $0x160] sm:$0xff] }
 0x5cc   : > { %v3694_v4 = vpop.f32.mrb[82].mxu0 }
 0x5cd   : > { %v5362_v28 = vadd.f32 %v3694_v4, %v2631_v58  ;;  %v3696_v6 = vpop.f32.mrb[83].mxu0  ;;  %3958 = vmatmul.mubr.f32.gmra.mrb[188].mxu0 %v2456_v59 }
 0x5ce   : > { %3962 = vmatprep.mubr.f32.mxu0 %v2461_v2  ;;  %v3010_v6 = vadd.f32 %v6939_v0, %v2635_v47  ;;  %v2476_v0 = vld [vmem:[#allocation7 + $0xc70] sm:$0xff] }
 0x5cf   : > { %v4169_v16 = vmax.f32 %v5362_v28, 0.0 }
 0x5d0   : > { %v3699_v25 = vpop.f32.mrb[84].mxu0 }
 0x5d1   : > { %v7114_v49 = vpack.c.bf16 %v4169_v16, %v4168_v15  ;;  %v3701_v31 = vpop.f32.mrb[85].mxu0  ;;  %3963 = vmatmul.mubr.f32.gmra.mrb[190].mxu0 %v2460_v8  ;;  %v5363_v35 = vadd.f32 %v3699_v25, %v2632_v19  ;;  %v7132_v8 = vpop.f32.mrb[224].mxu1  ;;  %v2636_v15 = vld [vmem:[%s7702_s16 + $0x170] sm:$0xff]  ;;  %v2477_v19 = vld [vmem:[#allocation7 + $0xc78] sm:$0xff] }
 0x5d2   : > { %3967 = vmatprep.mubr.f32.mxu0 %v2465_v17  ;;  %v3171_v16 = vpop.f32.mrb[225].mxu1 }
 0x5d3   : > { %v4170_v58 = vmax.f32 %v5363_v35, 0.0  ;;  %v7138_v10 = vpop.f32.mrb[226].mxu1  ;;  %v2637_v35 = vld [vmem:[%s7702_s16 + $0x178] sm:$0xff] }
 0x5d4   : > { %v3704_v41 = vpop.f32.mrb[86].mxu0  ;;  %v3020_v55 = vadd.f32 %v6951_v24, %v2637_v35  ;;  %v2484_v24 = vld [vmem:[#allocation7 + $0xcb0] sm:$0xff] }
 0x5d5   : > { %v5364_v43 = vadd.f32 %v3704_v41, %v2633_v33  ;;  %v3706_v44 = vpop.f32.mrb[87].mxu0  ;;  %3968 = vmatmul.mubr.f32.gmra.mrb[192].mxu0 %v2464_v34  ;;  %v3015_v33 = vadd.f32 %v6944_v11, %v2636_v15 }
 0x5d6   : > { %3972 = vmatprep.mubr.f32.mxu0 %v2469_v39  ;;  %v3176_v39 = vpop.f32.mrb[227].mxu1  ;;  %v2481_v44 = vld [vmem:[#allocation7 + $0xc98] sm:$0xff] }
 0x5d7   : > { %v4171_v59 = vmax.f32 %v5364_v43, 0.0 }
 0x5d8   : > { %v3709_v2 = vpop.f32.mrb[88].mxu0 }
 0x5d9   : > { %v7129_v4 = vpack.c.bf16 %v4171_v59, %v4170_v58  ;;  %v3711_v28 = vpop.f32.mrb[89].mxu0  ;;  %3973 = vmatmul.mubr.f32.gmra.mrb[194].mxu0 %v2468_v46  ;;  %v5365_v17 = vadd.f32 %v3709_v2, %v2634_v1  ;;  %v7146_v59 = vpop.f32.mrb[228].mxu1  ;;  %v2638_v1 = vld [vmem:[%s7702_s16 + $0x180] sm:$0xff] }
 0x5da   : > { %3977 = vmatprep.mubr.f32.mxu0 %v2473_v61  ;;  %v2480_v61 = vld [vmem:[#allocation7 + $0xc90] sm:$0xff]  ;;  %v3181_v2 = vpop.f32.mrb[229].mxu1  ;;  %v2485_v28 = vld [vmem:[#allocation7 + $0xcb8] sm:$0xff]  ;;  %v3025_v15 = vadd.f32 %v6956_v37, %v2638_v1 }
 0x5db   : > { %v4172_v41 = vmax.f32 %v5365_v17, 0.0  ;;  %v7152_v17 = vpop.f32.mrb[230].mxu1 }
 0x5dc   : > { %v3714_v25 = vpop.f32.mrb[90].mxu0 }
 0x5dd   : > { %v3715_v31 = vadd.f32 %v3714_v25, %v3010_v6  ;;  %3978 = vmatmul.mubr.f32.gmra.mrb[196].mxu0 %v2472_v12  ;;  %v3716_v34 = vpop.f32.mrb[91].mxu0  ;;  %v3186_v25 = vpop.f32.mrb[231].mxu1 }
 0x5de   : > { %3982 = vmatprep.mubr.f32.mxu0 %v2477_v19  ;;  %v2639_v19 = vld [vmem:[%s7702_s16 + $0x188] sm:$0xff]  ;;  %v2489_v34 = vld [vmem:[#allocation7 + $0xcd8] sm:$0xff]  ;;  %v7171_v25 = vld [vmem:[#allocation8 + $0x8] sm:$0xff] }
 0x5df   : > { %v4173_v43 = vmax.f32 %v3715_v31, 0.0  ;;  %v3030_v39 = vadd.f32 %v6963_v51, %v2639_v19  ;;  %v2492_v51 = vld [vmem:[#allocation7 + $0xcf0] sm:$0xff] }
 0x5e0   : > { %v3719_v46 = vpop.f32.mrb[92].mxu0 }
 0x5e1   : > { %v7143_v47 = vpack.c.bf16 %v4173_v43, %v4172_v41  ;;  %3983 = vmatmul.mubr.f32.gmra.mrb[198].mxu0 %v2476_v0  ;;  %v3720_v11 = vadd.f32 %v3719_v46, %v3015_v33  ;;  %v3721_v58 = vpop.f32.mrb[93].mxu0  ;;  %v7160_v43 = vpop.f32.mrb[232].mxu1  ;;  %v2640_v46 = vld [vmem:[%s7702_s16 + $0x190] sm:$0xff] }
 0x5e2   : > { %3987 = vmatprep.mubr.f32.mxu0 %v2481_v44  ;;  %v2488_v44 = vld [vmem:[#allocation7 + $0xcd0] sm:$0xff]  ;;  %v3035_v1 = vadd.f32 %v6968_v63, %v2640_v46  ;;  %v2501_v46 = vld [vmem:[#allocation7 + $0xd38] sm:$0xff] }
 0x5e3   : > { %v4174_v31 = vmax.f32 %v3720_v11, 0.0  ;;  %v2493_v11 = vld [vmem:[#allocation7 + $0xcf8] sm:$0xff] }
 0x5e4   : > { %v3724_v6 = vpop.f32.mrb[94].mxu0 }
 0x5e5   : > { %v3725_v12 = vadd.f32 %v3724_v6, %v3020_v55  ;;  %3988 = vmatmul.mubr.f32.gmra.mrb[200].mxu0 %v2480_v61  ;;  %v3726_v16 = vpop.f32.mrb[95].mxu0  ;;  %v3191_v55 = vpop.f32.mrb[233].mxu1  ;;  %v2641_v6 = vld [vmem:[%s7702_s16 + $0x198] sm:$0xff] }
 0x5e6   : > { %3992 = vmatprep.mubr.f32.mxu0 %v2485_v28  ;;  %v7166_v28 = vpop.f32.mrb[234].mxu1  ;;  %v3040_v63 = vadd.f32 %v6975_v14, %v2641_v6 }
 0x5e7   : > { %v4175_v33 = vmax.f32 %v3725_v12, 0.0  ;;  %v3196_v12 = vpop.f32.mrb[235].mxu1 }
 0x5e8   : > { %v3729_v0 = vpop.f32.mrb[96].mxu0 }
 0x5e9   : > { %v7157_v35 = vpack.c.bf16 %v4175_v33, %v4174_v31  ;;  %3993 = vmatmul.mubr.f32.gmra.mrb[202].mxu0 %v2484_v24  ;;  %v3730_v37 = vadd.f32 %v3729_v0, %v3025_v15  ;;  %v3731_v41 = vpop.f32.mrb[97].mxu0  ;;  %v2497_v24 = vld [vmem:[#allocation7 + $0xd18] sm:$0xff]  ;;  %v7174_v0 = vpop.f32.mrb[236].mxu1 }
 0x5ea   : > { %3997 = vmatprep.mubr.f32.mxu0 %v2489_v34  ;;  %v2496_v41 = vld [vmem:[#allocation7 + $0xd10] sm:$0xff] }
 0x5eb   : > { %v4176_v15 = vmax.f32 %v3730_v37, 0.0  ;;  %v2642_v37 = vld [vmem:[%s7702_s16 + $0x1a0] sm:$0xff] }
 0x5ec   : > { %v3734_v58 = vpop.f32.mrb[98].mxu0 }
 0x5ed   : > { %v3735_v61 = vadd.f32 %v3734_v58, %v3030_v39  ;;  %3998 = vmatmul.mubr.f32.gmra.mrb[204].mxu0 %v2488_v44  ;;  %v3736_v2 = vpop.f32.mrb[99].mxu0  ;;  %v4266_v39 = vcombine.high %v7171_v25, %v7171_v25  ;;  %v3201_v44 = vpop.f32.mrb[237].mxu1 }
 0x5ee   : > { %4002 = vmatprep.mubr.f32.mxu0 %v2493_v11  ;;  %v3045_v11 = vadd.f32 %v6983_v27, %v2642_v37  ;;  %v2643_v2 = vld [vmem:[%s7702_s16 + $0x1a8] sm:$0xff] }
 0x5ef   : > { %v4177_v16 = vmax.f32 %v3735_v61, 0.0  ;;  %4407 = vmatprep.mubr.f32.mxu1 %v4266_v39  ;;  %v7183_v61 = vpop.f32.mrb[238].mxu1 }
 0x5f0   : > { %v3739_v19 = vpop.f32.mrb[100].mxu0 }
 0x5f1   : > { %v5193_v31 = vpack.c.bf16 %v4177_v16, %v4176_v15  ;;  %4003 = vmatmul.mubr.f32.gmra.mrb[206].mxu0 %v2492_v51  ;;  %v3740_v33 = vadd.f32 %v3739_v19, %v3035_v1  ;;  %v3741_v34 = vpop.f32.mrb[101].mxu0  ;;  %v2500_v1 = vld [vmem:[#allocation7 + $0xd30] sm:$0xff]  ;;  %v3206_v51 = vpop.f32.mrb[239].mxu1  ;;  %v2505_v15 = vld [vmem:[#allocation7 + $0xd58] sm:$0xff] }
 0x5f2   : > { %4007 = vmatprep.mubr.f32.mxu0 %v2497_v24  ;;  %v2644_v34 = vld [vmem:[%s7702_s16 + $0x1b0] sm:$0xff] }
 0x5f3   : > { %5194 = vmatprep.subr.bf16.mxu1 %v5193_v31  ;;  %v4178_v6 = vmax.f32 %v3740_v33, 0.0  ;;  %v7189_v31 = vpop.f32.mrb[240].mxu1  ;;  %v2509_v33 = vld [vmem:[#allocation7 + $0xd78] sm:$0xff] }
 0x5f4   : > { %v3744_v55 = vpop.f32.mrb[102].mxu0  ;;  %5196 = vmatpush3.bf16.msra.mxu1 %v7066_v26  ;;  %v3050_v26 = vadd.f32 %v6988_v29, %v2643_v2  ;;  %v3211_v39 = vpop.f32.mrb[241].mxu1  ;;  %v3055_v29 = vadd.f32 %v6994_v52, %v2644_v34  ;;  %v2513_v2 = vld [vmem:[#allocation7 + $0xd98] sm:$0xff] }
 0x5f5   : > { %v3745_v14 = vadd.f32 %v3744_v55, %v3040_v63  ;;  %4008 = vmatmul.mubr.f32.gmra.mrb[208].mxu0 %v2496_v41  ;;  %v3746_v58 = vpop.f32.mrb[103].mxu0  ;;  %v2504_v63 = vld [vmem:[#allocation7 + $0xd50] sm:$0xff] }
 0x5f6   : > { %4012 = vmatprep.mubr.f32.mxu0 %v2501_v46  ;;  %v7196_v46 = vpop.f32.mrb[242].mxu1  ;;  %v2508_v55 = vld [vmem:[#allocation7 + $0xd70] sm:$0xff] }
 0x5f7   : > { %v4179_v12 = vmax.f32 %v3745_v14, 0.0  ;;  %v2645_v14 = vld [vmem:[%s7702_s16 + $0x1b8] sm:$0xff] }
 0x5f8   : > { %v3749_v16 = vpop.f32.mrb[104].mxu0 }
 0x5f9   : > { %v5197_v24 = vpack.c.bf16 %v4179_v12, %v4178_v6  ;;  %4013 = vmatmul.mubr.f32.gmra.mrb[210].mxu0 %v2500_v1  ;;  %v3750_v19 = vadd.f32 %v3749_v16, %v3045_v11  ;;  %v3751_v27 = vpop.f32.mrb[105].mxu0  ;;  %v3216_v11 = vpop.f32.mrb[243].mxu1  ;;  %v2512_v16 = vld [vmem:[#allocation7 + $0xd90] sm:$0xff] }
 0x5fa   : > { %4017 = vmatprep.mubr.f32.mxu0 %v2505_v15  ;;  %v7202_v15 = vpop.f32.mrb[244].mxu1 }
 0x5fb   : > { %5198 = vmatprep.subr.bf16.mxu1 %v5197_v24  ;;  %v4180_v58 = vmax.f32 %v3750_v19, 0.0  ;;  %v2646_v24 = vld [vmem:[%s7702_s16 + $0x1c0] sm:$0xff] }
 0x5fc   : > { %v3754_v41 = vpop.f32.mrb[106].mxu0  ;;  %5200 = vmatpush3.bf16.msra.mxu1 %v7078_v54  ;;  %v3060_v54 = vadd.f32 %v6999_v48, %v2645_v14  ;;  %v2517_v19 = vld [vmem:[#allocation7 + $0xdb8] sm:$0xff]  ;;  %v3065_v48 = vadd.f32 %v7005_v9, %v2646_v24 }
 0x5fd   : > { %v3755_v37 = vadd.f32 %v3754_v41, %v3050_v26  ;;  %4018 = vmatmul.mubr.f32.gmra.mrb[212].mxu0 %v2504_v63  ;;  %v3756_v44 = vpop.f32.mrb[107].mxu0  ;;  %v3221_v26 = vpop.f32.mrb[245].mxu1  ;;  %v2647_v41 = vld [vmem:[%s7702_s16 + $0x1c8] sm:$0xff] }
 0x5fe   : > { %4022 = vmatprep.mubr.f32.mxu0 %v2509_v33  ;;  %v7209_v39 = vpop.f32.mrb[246].mxu1  ;;  %v2516_v33 = vld [vmem:[#allocation7 + $0xdb0] sm:$0xff] }
 0x5ff   : > { %v4181_v1 = vmax.f32 %v3755_v37, 0.0  ;;  %v3226_v37 = vpop.f32.mrb[247].mxu1  ;;  %v2524_v26 = vld [vmem:[#allocation7 + $0xdf0] sm:$0xff] }
 0x600   : > { %v3759_v51 = vpop.f32.mrb[108].mxu0 }
 0x601   : > { %v5201_v6 = vpack.c.bf16 %v4181_v1, %v4180_v58  ;;  %4023 = vmatmul.mubr.f32.gmra.mrb[214].mxu0 %v2508_v55  ;;  %v3760_v12 = vadd.f32 %v3759_v51, %v3055_v29  ;;  %v3761_v52 = vpop.f32.mrb[109].mxu0  ;;  %v2521_v55 = vld [vmem:[#allocation7 + $0xdd8] sm:$0xff]  ;;  %v7215_v1 = vpop.f32.mrb[248].mxu1  ;;  %v2648_v51 = vld [vmem:[%s7702_s16 + $0x1d0] sm:$0xff] }
 0x602   : > { %4027 = vmatprep.mubr.f32.mxu0 %v2513_v2  ;;  %v2520_v2 = vld [vmem:[#allocation7 + $0xdd0] sm:$0xff] }
 0x603   : > { %5202 = vmatprep.subr.bf16.mxu1 %v5201_v6  ;;  %v4182_v29 = vmax.f32 %v3760_v12, 0.0  ;;  %v3231_v6 = vpop.f32.mrb[249].mxu1 }
 0x604   : > { %v3764_v27 = vpop.f32.mrb[110].mxu0  ;;  %5204 = vmatpush3.bf16.msra.mxu1 %v7090_v18  ;;  %v3070_v18 = vadd.f32 %v7010_v3, %v2647_v41  ;;  %v3075_v3 = vadd.f32 %v7016_v36, %v2648_v51  ;;  %v7222_v24 = vpop.f32.mrb[250].mxu1  ;;  %v2532_v51 = vld [vmem:[#allocation7 + $0xe30] sm:$0xff]  ;;  %v2651_v6 = vld [vmem:[%s7702_s16 + $0x1e8] sm:$0xff] }
 0x605   : > { %v3765_v63 = vadd.f32 %v3764_v27, %v3060_v54  ;;  %4028 = vmatmul.mubr.f32.gmra.mrb[216].mxu0 %v2512_v16  ;;  %v3766_v34 = vpop.f32.mrb[111].mxu0  ;;  %v2525_v54 = vld [vmem:[#allocation7 + $0xdf8] sm:$0xff]  ;;  %v3236_v27 = vpop.f32.mrb[251].mxu1 }
 0x606   : > { %4032 = vmatprep.mubr.f32.mxu0 %v2517_v19  ;;  %v2649_v19 = vld [vmem:[%s7702_s16 + $0x1d8] sm:$0xff]  ;;  %v2529_v34 = vld [vmem:[#allocation7 + $0xe18] sm:$0xff] }
 0x607   : > { %v4183_v44 = vmax.f32 %v3765_v63, 0.0 }
 0x608   : > { %v3769_v14 = vpop.f32.mrb[112].mxu0 }
 0x609   : > { %v5205_v11 = vpack.c.bf16 %v4183_v44, %v4182_v29  ;;  %4033 = vmatmul.mubr.f32.gmra.mrb[218].mxu0 %v2516_v33  ;;  %v3770_v58 = vadd.f32 %v3769_v14, %v3065_v48  ;;  %v3771_v9 = vpop.f32.mrb[113].mxu0  ;;  %v7228_v29 = vpop.f32.mrb[252].mxu1  ;;  %v2528_v44 = vld [vmem:[#allocation7 + $0xe10] sm:$0xff] }
 0x60a   : > { %4037 = vmatprep.mubr.f32.mxu0 %v2521_v55  ;;  %v2650_v55 = vld [vmem:[%s7702_s16 + $0x1e0] sm:$0xff]  ;;  %v3241_v14 = vpop.f32.mrb[253].mxu1 }
 0x60b   : > { %5206 = vmatprep.subr.bf16.mxu1 %v5205_v11  ;;  %v4184_v63 = vmax.f32 %v3770_v58, 0.0  ;;  %v2533_v11 = vld [vmem:[#allocation7 + $0xe38] sm:$0xff] }
 0x60c   : > { %v3774_v12 = vpop.f32.mrb[114].mxu0  ;;  %5208 = vmatpush3.bf16.msra.mxu1 %v7102_v53  ;;  %v3080_v53 = vadd.f32 %v7021_v21, %v2649_v19  ;;  %v3085_v21 = vadd.f32 %v7027_v60, %v2650_v55  ;;  %v2653_v55 = vld [vmem:[%s7702_s16 + $0x1f8] sm:$0xff] }
 0x60d   : > { %v3775_v52 = vadd.f32 %v3774_v12, %v3070_v18  ;;  %4038 = vmatmul.mubr.f32.gmra.mrb[220].mxu0 %v2520_v2  ;;  %v3776_v16 = vpop.f32.mrb[115].mxu0  ;;  %v7235_v2 = vpop.f32.mrb[254].mxu1 }
 0x60e   : > { %4042 = vmatprep.mubr.f32.mxu0 %v2525_v54  ;;  %v3246_v54 = vpop.f32.mrb[255].mxu1 }
 0x60f   : > { %v4185_v48 = vmax.f32 %v3775_v52, 0.0  ;;  %v7241_v27 = vpop.f32.mrb[0].mxu1  ;;  %v2544_v54 = vld [vmem:[#allocation7 + $0xe90] sm:$0xff] }
 0x610   : > { %v3779_v33 = vpop.f32.mrb[116].mxu0 }
 0x611   : > { %v5209_v41 = vpack.c.bf16 %v4185_v48, %v4184_v63  ;;  %4043 = vmatmul.mubr.f32.gmra.mrb[222].mxu0 %v2524_v26  ;;  %v3780_v37 = vadd.f32 %v3779_v33, %v3075_v3  ;;  %v3781_v36 = vpop.f32.mrb[117].mxu0  ;;  %v2537_v3 = vld [vmem:[#allocation7 + $0xe58] sm:$0xff]  ;;  %v2536_v63 = vld [vmem:[#allocation7 + $0xe50] sm:$0xff]  ;;  %v2652_v48 = vld [vmem:[%s7702_s16 + $0x1f0] sm:$0xff] }
 0x612   : > { %4047 = vmatprep.mubr.f32.mxu0 %v2529_v34  ;;  %v3251_v34 = vpop.f32.mrb[1].mxu1  ;;  %v2541_v33 = vld [vmem:[#allocation7 + $0xe78] sm:$0xff] }
 0x613   : > { %5210 = vmatprep.subr.bf16.mxu1 %v5209_v41  ;;  %v4186_v12 = vmax.f32 %v3780_v37, 0.0  ;;  %v7248_v36 = vpop.f32.mrb[2].mxu1 }
 0x614   : > { %v3784_v18 = vpop.f32.mrb[118].mxu0  ;;  %5212 = vmatpush3.bf16.msra.mxu1 %v7114_v49  ;;  %v3090_v49 = vadd.f32 %v7032_v42, %v2651_v6  ;;  %v3095_v42 = vadd.f32 %v7038_v23, %v2652_v48  ;;  %v3256_v14 = vpop.f32.mrb[3].mxu1 }
 0x615   : > { %v3785_v58 = vadd.f32 %v3784_v18, %v3080_v53  ;;  %4048 = vmatmul.mubr.f32.gmra.mrb[224].mxu0 %v2528_v44  ;;  %v3786_v9 = vpop.f32.mrb[119].mxu0  ;;  %v2540_v44 = vld [vmem:[#allocation7 + $0xe70] sm:$0xff]  ;;  %v7254_v6 = vpop.f32.mrb[4].mxu1  ;;  %v2656_v14 = vld [vmem:[%s7702_s16 + $0x210] sm:$0xff] }
 0x616   : > { %4052 = vmatprep.mubr.f32.mxu0 %v2533_v11 }
 0x617   : > { %v4187_v52 = vmax.f32 %v3785_v58, 0.0  ;;  %v2545_v58 = vld [vmem:[#allocation7 + $0xe98] sm:$0xff] }
 0x618   : > { %v3789_v16 = vpop.f32.mrb[120].mxu0 }
 0x619   : > { %v5213_v26 = vpack.c.bf16 %v4187_v52, %v4186_v12  ;;  %4053 = vmatmul.mubr.f32.gmra.mrb[226].mxu0 %v2532_v51  ;;  %v3790_v19 = vadd.f32 %v3789_v16, %v3085_v21  ;;  %v3791_v60 = vpop.f32.mrb[121].mxu0  ;;  %v2654_v12 = vld [vmem:[%s7702_s16 + $0x200] sm:$0xff]  ;;  %v3261_v52 = vpop.f32.mrb[5].mxu1 }
 0x61a   : > { %4057 = vmatprep.mubr.f32.mxu0 %v2537_v3  ;;  %v2549_v3 = vld [vmem:[#allocation7 + $0xeb8] sm:$0xff]  ;;  %v2548_v60 = vld [vmem:[#allocation7 + $0xeb0] sm:$0xff] }
 0x61b   : > { %5214 = vmatprep.subr.bf16.mxu1 %v5213_v26  ;;  %v4188_v11 = vmax.f32 %v3790_v19, 0.0  ;;  %v7261_v19 = vpop.f32.mrb[6].mxu1 }
 0x61c   : > { %v3794_v41 = vpop.f32.mrb[122].mxu0  ;;  %5216 = vmatpush3.bf16.msra.mxu1 %v7129_v4  ;;  %v3100_v4 = vadd.f32 %v7043_v62, %v2653_v55  ;;  %v3105_v62 = vadd.f32 %v7049_v50, %v2654_v12  ;;  %v3266_v48 = vpop.f32.mrb[7].mxu1  ;;  %v2552_v55 = vld [vmem:[#allocation7 + $0xed0] sm:$0xff] }
 0x61d   : > { %v3795_v53 = vadd.f32 %v3794_v41, %v3090_v49  ;;  %4058 = vmatmul.mubr.f32.gmra.mrb[228].mxu0 %v2536_v63  ;;  %v3796_v37 = vpop.f32.mrb[123].mxu0  ;;  %v2655_v63 = vld [vmem:[%s7702_s16 + $0x208] sm:$0xff]  ;;  %v2553_v41 = vld [vmem:[#allocation7 + $0xed8] sm:$0xff] }
 0x61e   : > { %4062 = vmatprep.mubr.f32.mxu0 %v2541_v33 }
 0x61f   : > { %v4189_v18 = vmax.f32 %v3795_v53, 0.0 }
 0x620   : > { %v3799_v21 = vpop.f32.mrb[124].mxu0 }
 0x621   : > { %v5217_v9 = vpack.c.bf16 %v4189_v18, %v4188_v11  ;;  %4063 = vmatmul.mubr.f32.gmra.mrb[230].mxu0 %v2540_v44  ;;  %v3800_v51 = vadd.f32 %v3799_v21, %v3095_v42  ;;  %v3801_v23 = vpop.f32.mrb[125].mxu0  ;;  %v7267_v44 = vpop.f32.mrb[8].mxu1  ;;  %v2557_v18 = vld [vmem:[#allocation7 + $0xef8] sm:$0xff] }
 0x622   : > { %4067 = vmatprep.mubr.f32.mxu0 %v2545_v58  ;;  %v3271_v11 = vpop.f32.mrb[9].mxu1  ;;  %v2657_v23 = vld [vmem:[%s7702_s16 + $0x218] sm:$0xff] }
 0x623   : > { %5218 = vmatprep.subr.bf16.mxu1 %v5217_v9  ;;  %v4190_v34 = vmax.f32 %v3800_v51, 0.0  ;;  %v2556_v51 = vld [vmem:[#allocation7 + $0xef0] sm:$0xff] }
 0x624   : > { %v3804_v16 = vpop.f32.mrb[126].mxu0  ;;  %5220 = vmatpush3.bf16.msra.mxu1 %v7143_v47  ;;  %v3110_v47 = vadd.f32 %v7054_v22, %v2655_v63  ;;  %v3115_v22 = vadd.f32 %v7060_v13, %v2656_v14  ;;  %v3120_v13 = vadd.f32 %v7068_v30, %v2657_v23  ;;  %v2658_v63 = vld [vmem:[%s7702_s16 + $0x220] sm:$0xff]  ;;  %v2564_v30 = vld [vmem:[#allocation7 + $0xf30] sm:$0xff] }
 0x625   : > { %v3805_v26 = vadd.f32 %v3804_v16, %v3100_v4  ;;  %4068 = vmatmul.mubr.f32.gmra.mrb[232].mxu0 %v2544_v54  ;;  %v3806_v49 = vpop.f32.mrb[127].mxu0  ;;  %v7274_v4 = vpop.f32.mrb[10].mxu1  ;;  %v2569_v14 = vld [vmem:[#allocation7 + $0xf58] sm:$0xff] }
 0x626   : > { %4072 = vmatprep.mubr.f32.mxu0 %v2549_v3  ;;  %v3276_v54 = vpop.f32.mrb[11].mxu1  ;;  %v2561_v3 = vld [vmem:[#allocation7 + $0xf18] sm:$0xff] }
 0x627   : > { %v4191_v33 = vmax.f32 %v3805_v26, 0.0  ;;  %v7283_v49 = vpop.f32.mrb[12].mxu1  ;;  %v2573_v54 = vld [vmem:[#allocation7 + $0xf78] sm:$0xff] }
 0x628   : > { %v3809_v53 = vpop.f32.mrb[128].mxu0  ;;  %v3281_v48 = vpop.f32.mrb[13].mxu1 }
 0x629   : > { %v5221_v42 = vpack.c.bf16 %v4191_v33, %v4190_v34  ;;  %4073 = vmatmul.mubr.f32.gmra.mrb[234].mxu0 %v2548_v60  ;;  %v3810_v37 = vadd.f32 %v3809_v53, %v3105_v62  ;;  %v3811_v50 = vpop.f32.mrb[129].mxu0  ;;  %v2560_v60 = vld [vmem:[#allocation7 + $0xf10] sm:$0xff]  ;;  %v2565_v34 = vld [vmem:[#allocation7 + $0xf38] sm:$0xff] }
 0x62a   : > { %4077 = vmatprep.mubr.f32.mxu0 %v2553_v41  ;;  %v3125_v41 = vadd.f32 %v7073_v40, %v2658_v63  ;;  %v2577_v48 = vld [vmem:[#allocation7 + $0xf98] sm:$0xff] }
 0x62b   : > { %5222 = vmatprep.subr.bf16.mxu1 %v5221_v42  ;;  %v4192_v12 = vmax.f32 %v3810_v37, 0.0  ;;  %v7289_v42 = vpop.f32.mrb[14].mxu1 }
 0x62c   : > { %5224 = vmatpush3.bf16.msra.mxu1 %v7157_v35  ;;  %v3814_v58 = vpop.f32.mrb[130].mxu0  ;;  %v3286_v37 = vpop.f32.mrb[15].mxu1 }
 0x62d   : > { %v3815_v21 = vadd.f32 %v3814_v58, %v3110_v47  ;;  %4078 = vmatmul.mubr.f32.gmra.mrb[236].mxu0 %v2552_v55  ;;  %v3816_v9 = vpop.f32.mrb[131].mxu0  ;;  %v2659_v47 = vld [vmem:[%s7702_s16 + $0x228] sm:$0xff] }
 0x62e   : > { %4082 = vmatprep.mubr.f32.mxu0 %v2557_v18  ;;  %v3130_v58 = vadd.f32 %v7080_v56, %v2659_v47  ;;  %v2568_v9 = vld [vmem:[#allocation7 + $0xf50] sm:$0xff]  ;;  %v2662_v47 = vld [vmem:[%s7702_s16 + $0x240] sm:$0xff] }
 0x62f   : > { %v4193_v52 = vmax.f32 %v3815_v21, 0.0  ;;  %4408 = vmatmul.mubr.f32.vlgmr.msra.gmra.mrb[72].mxu1 %v7171_v25  ;;  %v2572_v56 = vld [vmem:[#allocation7 + $0xf70] sm:$0xff] }
 0x630   : > { %v3819_v35 = vpop.f32.mrb[132].mxu0 }
 0x631   : > { %v7280_v16 = vpack.c.bf16 %v4193_v52, %v4192_v12  ;;  %4083 = vmatmul.mubr.f32.gmra.mrb[238].mxu0 %v2556_v51  ;;  %v3820_v26 = vadd.f32 %v3819_v35, %v3115_v22  ;;  %v3821_v62 = vpop.f32.mrb[133].mxu0  ;;  %v7297_v22 = vpop.f32.mrb[16].mxu1  ;;  %v2660_v51 = vld [vmem:[%s7702_s16 + $0x230] sm:$0xff] }
 0x632   : > { %4087 = vmatprep.mubr.f32.mxu0 %v2561_v3  ;;  %v3291_v23 = vpop.f32.mrb[17].mxu1  ;;  %v3135_v3 = vadd.f32 %v7085_v5, %v2660_v51 }
 0x633   : > { %v4194_v50 = vmax.f32 %v3820_v26, 0.0  ;;  %v2661_v26 = vld [vmem:[%s7702_s16 + $0x238] sm:$0xff] }
 0x634   : > { %v3824_v33 = vpop.f32.mrb[134].mxu0 }
 0x635   : > { %v3825_v25 = vadd.f32 %v3824_v33, %v3120_v13  ;;  %4088 = vmatmul.mubr.f32.gmra.mrb[240].mxu0 %v2560_v60  ;;  %v3826_v53 = vpop.f32.mrb[135].mxu0  ;;  %v7303_v13 = vpop.f32.mrb[18].mxu1 }
 0x636   : > { %4092 = vmatprep.mubr.f32.mxu0 %v2565_v34  ;;  %v3296_v62 = vpop.f32.mrb[19].mxu1 }
 0x637   : > { %v4195_v55 = vmax.f32 %v3825_v25, 0.0  ;;  %v3140_v25 = vadd.f32 %v7092_v20, %v2661_v26  ;;  %v7311_v53 = vpop.f32.mrb[20].mxu1  ;;  %v2580_v20 = vld [vmem:[#allocation7 + $0xfb0] sm:$0xff]  ;;  %v2664_v62 = vld [vmem:[%s7702_s16 + $0x250] sm:$0xff] }
 0x638   : > { %v3829_v11 = vpop.f32.mrb[136].mxu0  ;;  %v3301_v37 = vpop.f32.mrb[21].mxu1  ;;  %v2584_v26 = vld [vmem:[#allocation7 + $0xfd0] sm:$0xff] }
 0x639   : > { %v7294_v18 = vpack.c.bf16 %v4195_v55, %v4194_v50  ;;  %4093 = vmatmul.mubr.f32.gmra.mrb[242].mxu0 %v2564_v30  ;;  %v3830_v40 = vadd.f32 %v3829_v11, %v3125_v41  ;;  %v3831_v21 = vpop.f32.mrb[137].mxu0  ;;  %v2576_v30 = vld [vmem:[#allocation7 + $0xf90] sm:$0xff]  ;;  %v2581_v50 = vld [vmem:[#allocation7 + $0xfb8] sm:$0xff]  ;;  %v3145_v11 = vadd.f32 %v7097_v38, %v2662_v47 }
 0x63a   : > { %4097 = vmatprep.mubr.f32.mxu0 %v2569_v14  ;;  %v2663_v21 = vld [vmem:[%s7702_s16 + $0x248] sm:$0xff] }
 0x63b   : > { %v4196_v60 = vmax.f32 %v3830_v40, 0.0  ;;  %v7317_v40 = vpop.f32.mrb[22].mxu1 }
 0x63c   : > { %v3834_v12 = vpop.f32.mrb[138].mxu0 }
 0x63d   : > { %v3835_v52 = vadd.f32 %v3834_v12, %v3130_v58  ;;  %4098 = vmatmul.mubr.f32.gmra.mrb[244].mxu0 %v2568_v9  ;;  %v3836_v35 = vpop.f32.mrb[139].mxu0  ;;  %v3306_v9 = vpop.f32.mrb[23].mxu1 }
 0x63e   : > { %4102 = vmatprep.mubr.f32.mxu0 %v2573_v54  ;;  %v2585_v54 = vld [vmem:[#allocation7 + $0xfd8] sm:$0xff] }
 0x63f   : > { %v4197_v63 = vmax.f32 %v3835_v52, 0.0 }
 0x640   : > { %v3839_v34 = vpop.f32.mrb[140].mxu0 }
 0x641   : > { %v7308_v33 = vpack.c.bf16 %v4197_v63, %v4196_v60  ;;  %4103 = vmatmul.mubr.f32.gmra.mrb[246].mxu0 %v2572_v56  ;;  %v3840_v5 = vadd.f32 %v3839_v34, %v3135_v3  ;;  %v3841_v41 = vpop.f32.mrb[141].mxu0  ;;  %v3150_v3 = vadd.f32 %v7104_v57, %v2663_v21  ;;  %v7325_v56 = vpop.f32.mrb[24].mxu1  ;;  %v2589_v63 = vld [vmem:[#allocation7 + $0xff8] sm:$0xff]  ;;  %v2588_v57 = vld [vmem:[#allocation7 + $0xff0] sm:$0xff] }
 0x642   : > { %4107 = vmatprep.mubr.f32.mxu0 %v2577_v48  ;;  %v3311_v60 = vpop.f32.mrb[25].mxu1 }
 0x643   : > { %v4198_v51 = vmax.f32 %v3840_v5, 0.0  ;;  %v7331_v41 = vpop.f32.mrb[26].mxu1 }
 0x644   : > { %v3844_v55 = vpop.f32.mrb[142].mxu0  ;;  %v3316_v47 = vpop.f32.mrb[27].mxu1 }
 0x645   : > { %v3845_v14 = vadd.f32 %v3844_v55, %v3140_v25  ;;  %4108 = vmatmul.mubr.f32.gmra.mrb[248].mxu0 %v2576_v30  ;;  %v3846_v58 = vpop.f32.mrb[143].mxu0  ;;  %v3155_v25 = vadd.f32 %v7109_v7, %v2664_v62  ;;  %v2665_v30 = vld [vmem:[%s7702_s16 + $0x258] sm:$0xff]  ;;  %v7343_v9 = vpop.f32.mrb[28].mxu1 }
 0x646   : > { %4112 = vmatprep.mubr.f32.mxu0 %v2581_v50  ;;  %v7336_v55 = vld [vmem:[#allocation8 + $0x10] sm:$0xff]  ;;  %v3160_v7 = vadd.f32 %v7116_v32, %v2665_v30  ;;  %v2667_v32 = vld [vmem:[%s7702_s16 + $0x268] sm:$0xff] }
 0x647   : > { %v4199_v23 = vmax.f32 %v3845_v14, 0.0 }
 0x648   : > { %v3849_v12 = vpop.f32.mrb[144].mxu0 }
 0x649   : > { %v7322_v52 = vpack.c.bf16 %v4199_v23, %v4198_v51  ;;  %4113 = vmatmul.mubr.f32.gmra.mrb[250].mxu0 %v2580_v20  ;;  %v3850_v38 = vadd.f32 %v3849_v12, %v3145_v11  ;;  %v3851_v35 = vpop.f32.mrb[145].mxu0  ;;  %v4267_v11 = vcombine.high %v7336_v55, %v7336_v55  ;;  %v2666_v51 = vld [vmem:[%s7702_s16 + $0x260] sm:$0xff]  ;;  %v3321_v23 = vpop.f32.mrb[29].mxu1 }
 0x64a   : > { %4117 = vmatprep.mubr.f32.mxu0 %v2585_v54  ;;  %v7349_v35 = vpop.f32.mrb[30].mxu1 }
 0x64b   : > { %v4200_v37 = vmax.f32 %v3850_v38, 0.0  ;;  %4477 = vmatprep.mubr.f32.mxu1 %v4267_v11 }
 0x64c   : > { %v3854_v48 = vpop.f32.mrb[146].mxu0 }
 0x64d   : > { %v3855_v34 = vadd.f32 %v3854_v48, %v3150_v3  ;;  %4118 = vmatmul.mubr.f32.gmra.mrb[252].mxu0 %v2584_v26  ;;  %v3856_v5 = vpop.f32.mrb[147].mxu0  ;;  %v3165_v3 = vadd.f32 %v7121_v45, %v2666_v51  ;;  %v3326_v26 = vpop.f32.mrb[31].mxu1  ;;  %v2668_v45 = vld [vmem:[%s7702_s16 + $0x270] sm:$0xff] }
 0x64e   : > { %4122 = vmatprep.mubr.f32.mxu0 %v2589_v63 }
 0x64f   : > { %v4201_v50 = vmax.f32 %v3855_v34, 0.0  ;;  %v3170_v34 = vadd.f32 %v7132_v8, %v2667_v32  ;;  %v2669_v8 = vld [vmem:[%s7702_s16 + $0x278] sm:$0xff] }
 0x650   : > { %v3859_v14 = vpop.f32.mrb[148].mxu0 }
 0x651   : > { %v7340_v58 = vpack.c.bf16 %v4201_v50, %v4200_v37  ;;  %4123 = vmatmul.mubr.f32.gmra.mrb[254].mxu0 %v2588_v57  ;;  %v3860_v20 = vadd.f32 %v3859_v14, %v3155_v25  ;;  %v3861_v21 = vpop.f32.mrb[149].mxu0  ;;  %v7357_v57 = vpop.f32.mrb[32].mxu1  ;;  %v3175_v50 = vadd.f32 %v7138_v10, %v2668_v45  ;;  %v2670_v10 = vld [vmem:[%s7702_s16 + $0x280] sm:$0xff] }
 0x652   : > { %v3331_v30 = vpop.f32.mrb[33].mxu1 }
 0x653   : > { %v4202_v62 = vmax.f32 %v3860_v20, 0.0  ;;  %v7363_v11 = vpop.f32.mrb[34].mxu1 }
 0x654   : > { %v3864_v54 = vpop.f32.mrb[150].mxu0 }
 0x655   : > { %v3865_v12 = vadd.f32 %v3864_v54, %v3160_v7  ;;  %v3866_v38 = vpop.f32.mrb[151].mxu0  ;;  %v3336_v7 = vpop.f32.mrb[35].mxu1  ;;  %v3180_v54 = vadd.f32 %v7146_v59, %v2669_v8  ;;  %v2671_v59 = vld [vmem:[%s7702_s16 + $0x288] sm:$0xff] }
 0x656   : > { %v7371_v38 = vpop.f32.mrb[36].mxu1 }
 0x657   : > { %v4203_v60 = vmax.f32 %v3865_v12, 0.0  ;;  %v3341_v32 = vpop.f32.mrb[37].mxu1 }
 0x658   : > { %v3869_v63 = vpop.f32.mrb[152].mxu0 }
 0x659   : > { %v7354_v48 = vpack.c.bf16 %v4203_v60, %v4202_v62  ;;  %v3870_v25 = vadd.f32 %v3869_v63, %v3165_v3  ;;  %v3871_v5 = vpop.f32.mrb[153].mxu0  ;;  %v3185_v60 = vadd.f32 %v7152_v17, %v2670_v10  ;;  %v2672_v17 = vld [vmem:[%s7702_s16 + $0x290] sm:$0xff] }
 0x65b   : > { %v4204_v20 = vmax.f32 %v3870_v25, 0.0 }
 0x65c   : > { %v3874_v47 = vpop.f32.mrb[154].mxu0 }
 0x65d   : > { %v3875_v37 = vadd.f32 %v3874_v47, %v3170_v34  ;;  %v3876_v14 = vpop.f32.mrb[155].mxu0  ;;  %v7377_v34 = vpop.f32.mrb[38].mxu1 }
 0x65e   : > { %v3346_v25 = vpop.f32.mrb[39].mxu1 }
 0x65f   : > { %v4205_v21 = vmax.f32 %v3875_v37, 0.0  ;;  %v3190_v37 = vadd.f32 %v7160_v43, %v2671_v59  ;;  %v7385_v8 = vpop.f32.mrb[40].mxu1  ;;  %v2673_v43 = vld [vmem:[%s7702_s16 + $0x298] sm:$0xff] }
 0x660   : > { %v3879_v51 = vpop.f32.mrb[156].mxu0  ;;  %v3351_v7 = vpop.f32.mrb[41].mxu1 }
 0x661   : > { %v7368_v23 = vpack.c.bf16 %v4205_v21, %v4204_v20  ;;  %v3880_v12 = vadd.f32 %v3879_v51, %v3175_v50  ;;  %v3881_v3 = vpop.f32.mrb[157].mxu0  ;;  %v3195_v51 = vadd.f32 %v7166_v28, %v2672_v17  ;;  %v2674_v28 = vld [vmem:[%s7702_s16 + $0x2a0] sm:$0xff] }
 0x663   : > { %v4206_v5 = vmax.f32 %v3880_v12, 0.0  ;;  %v7391_v12 = vpop.f32.mrb[42].mxu1 }
 0x664   : > { %v3884_v26 = vpop.f32.mrb[158].mxu0  ;;  %v3356_v3 = vpop.f32.mrb[43].mxu1 }
 0x665   : > { %v3885_v62 = vadd.f32 %v3884_v26, %v3180_v54  ;;  %v3886_v63 = vpop.f32.mrb[159].mxu0  ;;  %v7397_v25 = vpop.f32.mrb[44].mxu1 }
 0x667   : > { %v4207_v45 = vmax.f32 %v3885_v62, 0.0 }
 0x668   : > { %v3889_v30 = vpop.f32.mrb[160].mxu0 }
 0x669   : > { %v7382_v47 = vpack.c.bf16 %v4207_v45, %v4206_v5  ;;  %v3890_v50 = vadd.f32 %v3889_v30, %v3185_v60  ;;  %v3891_v14 = vpop.f32.mrb[161].mxu0  ;;  %v3200_v60 = vadd.f32 %v7174_v0, %v2673_v43  ;;  %v3361_v5 = vpop.f32.mrb[45].mxu1  ;;  %v2675_v0 = vld [vmem:[%s7702_s16 + $0x2a8] sm:$0xff] }
 0x66a   : > { %v7404_v14 = vpop.f32.mrb[46].mxu1 }
 0x66b   : > { %v4208_v10 = vmax.f32 %v3890_v50, 0.0  ;;  %v3366_v17 = vpop.f32.mrb[47].mxu1 }
 0x66c   : > { %v3894_v20 = vpop.f32.mrb[162].mxu0 }
 0x66d   : > { %v3895_v21 = vadd.f32 %v3894_v20, %v3190_v37  ;;  %v3896_v54 = vpop.f32.mrb[163].mxu0  ;;  %v3205_v37 = vadd.f32 %v7183_v61, %v2674_v28  ;;  %v2676_v61 = vld [vmem:[%s7702_s16 + $0x2b0] sm:$0xff] }
 0x66e   : > { %v3210_v54 = vadd.f32 %v7189_v31, %v2675_v0  ;;  %v2677_v31 = vld [vmem:[%s7702_s16 + $0x2b8] sm:$0xff] }
 0x66f   : > { %v4209_v32 = vmax.f32 %v3895_v21, 0.0 }
 0x670   : > { %v3899_v26 = vpop.f32.mrb[164].mxu0 }
 0x671   : > { %v5225_v62 = vpack.c.bf16 %v4209_v32, %v4208_v10  ;;  %v3900_v63 = vadd.f32 %v3899_v26, %v3195_v51  ;;  %v3901_v59 = vpop.f32.mrb[165].mxu0 }
 0x673   : > { %5226 = vmatprep.subr.bf16.mxu1 %v5225_v62  ;;  %v4210_v7 = vmax.f32 %v3900_v63, 0.0  ;;  %v3215_v62 = vadd.f32 %v7196_v46, %v2676_v61  ;;  %v2678_v46 = vld [vmem:[%s7702_s16 + $0x2c0] sm:$0xff] }
 0x674   : > { %v3904_v45 = vpop.f32.mrb[166].mxu0  ;;  %5228 = vmatpush3.bf16.msra.mxu1 %v7280_v16  ;;  %v7410_v16 = vpop.f32.mrb[48].mxu1 }
 0x675   : > { %v3905_v30 = vadd.f32 %v3904_v45, %v3200_v60  ;;  %v3906_v50 = vpop.f32.mrb[167].mxu0  ;;  %v3371_v10 = vpop.f32.mrb[49].mxu1 }
 0x676   : > { %v7417_v63 = vpop.f32.mrb[50].mxu1 }
 0x677   : > { %v4211_v20 = vmax.f32 %v3905_v30, 0.0  ;;  %v3376_v59 = vpop.f32.mrb[51].mxu1 }
 0x678   : > { %v3909_v21 = vpop.f32.mrb[168].mxu0 }
 0x679   : > { %v5229_v51 = vpack.c.bf16 %v4211_v20, %v4210_v7  ;;  %v3910_v43 = vadd.f32 %v3909_v21, %v3205_v37  ;;  %v3911_v3 = vpop.f32.mrb[169].mxu0  ;;  %v3220_v37 = vadd.f32 %v7202_v15, %v2677_v31  ;;  %v3225_v21 = vadd.f32 %v7209_v39, %v2678_v46  ;;  %v2679_v15 = vld [vmem:[%s7702_s16 + $0x2c8] sm:$0xff]  ;;  %v2680_v39 = vld [vmem:[%s7702_s16 + $0x2d0] sm:$0xff] }
 0x67b   : > { %5230 = vmatprep.subr.bf16.mxu1 %v5229_v51  ;;  %v4212_v28 = vmax.f32 %v3910_v43, 0.0 }
 0x67c   : > { %v3914_v32 = vpop.f32.mrb[170].mxu0  ;;  %5232 = vmatpush3.bf16.msra.mxu1 %v7294_v18  ;;  %v7423_v18 = vpop.f32.mrb[52].mxu1 }
 0x67d   : > { %v3915_v26 = vadd.f32 %v3914_v32, %v3210_v54  ;;  %v3916_v60 = vpop.f32.mrb[171].mxu0  ;;  %v3381_v17 = vpop.f32.mrb[53].mxu1 }
 0x67e   : > { %v7430_v54 = vpop.f32.mrb[54].mxu1 }
 0x67f   : > { %v4213_v5 = vmax.f32 %v3915_v26, 0.0  ;;  %v3386_v43 = vpop.f32.mrb[55].mxu1  ;;  %v3230_v26 = vadd.f32 %v7215_v1, %v2679_v15  ;;  %v2681_v1 = vld [vmem:[%s7702_s16 + $0x2d8] sm:$0xff] }
 0x680   : > { %v3919_v45 = vpop.f32.mrb[172].mxu0 }
 0x681   : > { %v5233_v30 = vpack.c.bf16 %v4213_v5, %v4212_v28  ;;  %v3920_v50 = vadd.f32 %v3919_v45, %v3215_v62  ;;  %v3921_v0 = vpop.f32.mrb[173].mxu0  ;;  %v3235_v5 = vadd.f32 %v7222_v24, %v2680_v39  ;;  %v2682_v24 = vld [vmem:[%s7702_s16 + $0x2e0] sm:$0xff] }
 0x683   : > { %5234 = vmatprep.subr.bf16.mxu1 %v5233_v30  ;;  %v4214_v3 = vmax.f32 %v3920_v50, 0.0 }
 0x684   : > { %v3924_v7 = vpop.f32.mrb[174].mxu0  ;;  %5236 = vmatpush3.bf16.msra.mxu1 %v7308_v33  ;;  %v7436_v33 = vpop.f32.mrb[56].mxu1 }
 0x685   : > { %v3925_v20 = vadd.f32 %v3924_v7, %v3220_v37  ;;  %v3926_v51 = vpop.f32.mrb[175].mxu0  ;;  %v3391_v31 = vpop.f32.mrb[57].mxu1  ;;  %v3240_v7 = vadd.f32 %v7228_v29, %v2681_v1  ;;  %v2683_v29 = vld [vmem:[%s7702_s16 + $0x2e8] sm:$0xff] }
 0x686   : > { %v7443_v30 = vpop.f32.mrb[58].mxu1  ;;  %v3250_v31 = vadd.f32 %v7241_v27, %v2683_v29  ;;  %v2685_v27 = vld [vmem:[%s7702_s16 + $0x2f8] sm:$0xff] }
 0x687   : > { %v4215_v61 = vmax.f32 %v3925_v20, 0.0  ;;  %v3396_v37 = vpop.f32.mrb[59].mxu1 }
 0x688   : > { %v3929_v10 = vpop.f32.mrb[176].mxu0 }
 0x689   : > { %v5237_v32 = vpack.c.bf16 %v4215_v61, %v4214_v3  ;;  %v3930_v62 = vadd.f32 %v3929_v10, %v3225_v21  ;;  %v3931_v60 = vpop.f32.mrb[177].mxu0  ;;  %v3245_v3 = vadd.f32 %v7235_v2, %v2682_v24  ;;  %v2684_v2 = vld [vmem:[%s7702_s16 + $0x2f0] sm:$0xff]  ;;  %v3260_v24 = vadd.f32 %v7254_v6, %v2685_v27  ;;  %v2687_v6 = vld [vmem:[%s7702_s16 + $0x308] sm:$0xff] }
 0x68a   : > { %v3255_v37 = vadd.f32 %v7248_v36, %v2684_v2  ;;  %v2686_v36 = vld [vmem:[%s7702_s16 + $0x300] sm:$0xff] }
 0x68b   : > { %5238 = vmatprep.subr.bf16.mxu1 %v5237_v32  ;;  %v4216_v50 = vmax.f32 %v3930_v62, 0.0  ;;  %v3265_v29 = vadd.f32 %v7261_v19, %v2686_v36  ;;  %v7489_v2 = vld [vmem:[#allocation8 + $0x18] sm:$0xff] }
 0x68c   : > { %v3934_v59 = vpop.f32.mrb[178].mxu0  ;;  %5240 = vmatpush3.bf16.msra.mxu1 %v7322_v52  ;;  %v7449_v52 = vpop.f32.mrb[60].mxu1 }
 0x68d   : > { %v3935_v28 = vadd.f32 %v3934_v59, %v3230_v26  ;;  %v3936_v45 = vpop.f32.mrb[179].mxu0  ;;  %v3401_v51 = vpop.f32.mrb[61].mxu1 }
 0x68e   : > { %v7456_v10 = vpop.f32.mrb[62].mxu1 }
 0x68f   : > { %v4217_v0 = vmax.f32 %v3935_v28, 0.0  ;;  %v3406_v32 = vpop.f32.mrb[63].mxu1 }
 0x690   : > { %v3939_v46 = vpop.f32.mrb[180].mxu0 }
 0x691   : > { %v5241_v17 = vpack.c.bf16 %v4217_v0, %v4216_v50  ;;  %v3940_v20 = vadd.f32 %v3939_v46, %v3235_v5  ;;  %v3941_v21 = vpop.f32.mrb[181].mxu0 }
 0x693   : > { %5242 = vmatprep.subr.bf16.mxu1 %v5241_v17  ;;  %v4218_v26 = vmax.f32 %v3940_v20, 0.0 }
 0x694   : > { %v3944_v15 = vpop.f32.mrb[182].mxu0  ;;  %5244 = vmatpush3.bf16.msra.mxu1 %v7340_v58  ;;  %v7462_v58 = vpop.f32.mrb[64].mxu1 }
 0x695   : > { %v3945_v43 = vadd.f32 %v3944_v15, %v3240_v7  ;;  %v3946_v61 = vpop.f32.mrb[183].mxu0  ;;  %v3411_v5 = vpop.f32.mrb[65].mxu1 }
 0x696   : > { %v7469_v0 = vpop.f32.mrb[66].mxu1  ;;  %v4268_v5 = vcombine.high %v7489_v2, %v7489_v2 }
 0x697   : > { %v4219_v62 = vmax.f32 %v3945_v43, 0.0  ;;  %v3416_v46 = vpop.f32.mrb[67].mxu1 }
 0x698   : > { %v3949_v60 = vpop.f32.mrb[184].mxu0 }
 0x699   : > { %v5245_v39 = vpack.c.bf16 %v4219_v62, %v4218_v26  ;;  %v3950_v59 = vadd.f32 %v3949_v60, %v3245_v3  ;;  %v3951_v28 = vpop.f32.mrb[185].mxu0 }
 0x69b   : > { %5246 = vmatprep.subr.bf16.mxu1 %v5245_v39  ;;  %v4220_v17 = vmax.f32 %v3950_v59, 0.0 }
 0x69c   : > { %v3954_v45 = vpop.f32.mrb[186].mxu0  ;;  %5248 = vmatpush3.bf16.msra.mxu1 %v7354_v48  ;;  %v7475_v48 = vpop.f32.mrb[68].mxu1 }
 0x69d   : > { %v3955_v1 = vadd.f32 %v3954_v45, %v3250_v31  ;;  %v3956_v50 = vpop.f32.mrb[187].mxu0  ;;  %v3421_v43 = vpop.f32.mrb[69].mxu1  ;;  %v3270_v31 = vadd.f32 %v7267_v44, %v2687_v6  ;;  %v2689_v44 = vld [vmem:[%s7702_s16 + $0x318] sm:$0xff] }
 0x69e   : > { %v4859_v46 = vpop.f32.mrb[70].mxu1 }
 0x69f   : > { %v4221_v7 = vmax.f32 %v3955_v1, 0.0 }
 0x6a0   : > { %v3959_v20 = vpop.f32.mrb[188].mxu0 }
 0x6a1   : > { %v5249_v21 = vpack.c.bf16 %v4221_v7, %v4220_v17  ;;  %v3960_v51 = vadd.f32 %v3959_v20, %v3255_v37  ;;  %v3961_v15 = vpop.f32.mrb[189].mxu0  ;;  %v3280_v20 = vadd.f32 %v7283_v49, %v2689_v44  ;;  %v2694_v44 = vld [vmem:[%s7702_s16 + $0x340] sm:$0xff] }
 0x6a3   : > { %5250 = vmatprep.subr.bf16.mxu1 %v5249_v21  ;;  %v4222_v26 = vmax.f32 %v3960_v51, 0.0  ;;  %v2690_v51 = vld [vmem:[%s7702_s16 + $0x320] sm:$0xff] }
 0x6a4   : > { %v3964_v3 = vpop.f32.mrb[190].mxu0  ;;  %5252 = vmatpush3.bf16.msra.mxu1 %v7368_v23  ;;  %v2688_v23 = vld [vmem:[%s7702_s16 + $0x310] sm:$0xff] }
 0x6a5   : > { %v3965_v61 = vadd.f32 %v3964_v3, %v3260_v24  ;;  %v3966_v32 = vpop.f32.mrb[191].mxu0  ;;  %v3275_v1 = vadd.f32 %v7274_v4, %v2688_v23  ;;  %v2691_v3 = vld [vmem:[%s7702_s16 + $0x328] sm:$0xff] }
 0x6a6   : > { %v3290_v6 = vadd.f32 %v7297_v22, %v2691_v3 }
 0x6a7   : > { %v4223_v62 = vmax.f32 %v3965_v61, 0.0 }
 0x6a8   : > { %v3969_v60 = vpop.f32.mrb[192].mxu0 }
 0x6a9   : > { %v5253_v39 = vpack.c.bf16 %v4223_v62, %v4222_v26  ;;  %v3970_v59 = vadd.f32 %v3969_v60, %v3265_v29  ;;  %v3971_v28 = vpop.f32.mrb[193].mxu0  ;;  %v2692_v60 = vld [vmem:[%s7702_s16 + $0x330] sm:$0xff] }
 0x6aa   : > { %v2693_v28 = vld [vmem:[%s7702_s16 + $0x338] sm:$0xff] }
 0x6ab   : > { %5254 = vmatprep.subr.bf16.mxu1 %v5253_v39  ;;  %v4224_v50 = vmax.f32 %v3970_v59, 0.0  ;;  %v3300_v22 = vadd.f32 %v7311_v53, %v2693_v28  ;;  %v2699_v28 = vld [vmem:[%s7702_s16 + $0x368] sm:$0xff] }
 0x6ac   : > { %5256 = vmatpush3.bf16.msra.mxu1 %v7382_v47  ;;  %v3974_v19 = vpop.f32.mrb[194].mxu0  ;;  %v4860_v47 = vpop.f32.mrb[71].mxu1 }
 0x6ad   : > { %v3975_v45 = vadd.f32 %v3974_v19, %v3270_v31  ;;  %v3976_v37 = vpop.f32.mrb[195].mxu0  ;;  %v7502_v4 = vadd.f32 %v4860_v47, %v4859_v46  ;;  %v3295_v31 = vadd.f32 %v7303_v13, %v2692_v60 }
 0x6af   : > { %v4225_v27 = vmax.f32 %v3975_v45, 0.0  ;;  %4478 = vmatmul.mubr.f32.vlgmr.msra.gmra.mrb[74].mxu1 %v7336_v55  ;;  %v3285_v55 = vadd.f32 %v7289_v42, %v2690_v51 }
 0x6b0   : > { %v3979_v17 = vpop.f32.mrb[196].mxu0  ;;  %4547 = vmatprep.mubr.f32.mxu1 %v4268_v5 }
 0x6b1   : > { %v7499_v7 = vpack.c.bf16 %v4225_v27, %v4224_v50  ;;  %v3980_v21 = vadd.f32 %v3979_v17, %v3275_v1  ;;  %v3981_v24 = vpop.f32.mrb[197].mxu0  ;;  %v3305_v27 = vadd.f32 %v7317_v40, %v2694_v44  ;;  %v2695_v17 = vld [vmem:[%s7702_s16 + $0x348] sm:$0xff]  ;;  %v2700_v44 = vld [vmem:[%s7702_s16 + $0x370] sm:$0xff] }
 0x6b2   : > { %v3310_v53 = vadd.f32 %v7325_v56, %v2695_v17 }
 0x6b3   : > { %v4226_v61 = vmax.f32 %v3980_v21, 0.0 }
 0x6b4   : > { %v3984_v15 = vpop.f32.mrb[198].mxu0 }
 0x6b5   : > { %v3985_v36 = vadd.f32 %v3984_v15, %v3280_v20  ;;  %v3986_v43 = vpop.f32.mrb[199].mxu0 }
 0x6b7   : > { %v4227_v29 = vmax.f32 %v3985_v36, 0.0  ;;  %v2696_v36 = vld [vmem:[%s7702_s16 + $0x350] sm:$0xff] }
 0x6b8   : > { %v3989_v49 = vpop.f32.mrb[200].mxu0  ;;  %v3315_v43 = vadd.f32 %v7331_v41, %v2696_v36 }
 0x6b9   : > { %v7511_v32 = vpack.c.bf16 %v4227_v29, %v4226_v61  ;;  %v3990_v26 = vadd.f32 %v3989_v49, %v3285_v55  ;;  %v3991_v62 = vpop.f32.mrb[201].mxu0  ;;  %v2697_v61 = vld [vmem:[%s7702_s16 + $0x358] sm:$0xff] }
 0x6ba   : > { %v3320_v56 = vadd.f32 %v7343_v9, %v2697_v61  ;;  %v3330_v9 = vadd.f32 %v7357_v57, %v2699_v28 }
 0x6bb   : > { %v4228_v23 = vmax.f32 %v3990_v26, 0.0 }
 0x6bc   : > { %v3994_v39 = vpop.f32.mrb[202].mxu0 }
 0x6bd   : > { %v3995_v42 = vadd.f32 %v3994_v39, %v3290_v6  ;;  %v3996_v59 = vpop.f32.mrb[203].mxu0  ;;  %v2698_v39 = vld [vmem:[%s7702_s16 + $0x360] sm:$0xff] }
 0x6bf   : > { %v4229_v19 = vmax.f32 %v3995_v42, 0.0 }
 0x6c0   : > { %v3999_v5 = vpop.f32.mrb[204].mxu0 }
 0x6c1   : > { %v7521_v45 = vpack.c.bf16 %v4229_v19, %v4228_v23  ;;  %v4000_v1 = vadd.f32 %v3999_v5, %v3295_v31  ;;  %v4001_v37 = vpop.f32.mrb[205].mxu0  ;;  %v3325_v31 = vadd.f32 %v7349_v35, %v2698_v39 }
 0x6c3   : > { %v4230_v47 = vmax.f32 %v4000_v1, 0.0 }
 0x6c4   : > { %v4004_v50 = vpop.f32.mrb[206].mxu0 }
 0x6c5   : > { %v4005_v13 = vadd.f32 %v4004_v50, %v3300_v22  ;;  %v4006_v46 = vpop.f32.mrb[207].mxu0 }
 0x6c6   : > { %v2701_v46 = vld [vmem:[%s7702_s16 + $0x378] sm:$0xff] }
 0x6c7   : > { %v4231_v20 = vmax.f32 %v4005_v13, 0.0  ;;  %v3335_v13 = vadd.f32 %v7363_v11, %v2700_v44  ;;  %v3340_v57 = vadd.f32 %v7371_v38, %v2701_v46 }
 0x6c8   : > { %v4009_v21 = vpop.f32.mrb[208].mxu0 }
 0x6c9   : > { %v7531_v24 = vpack.c.bf16 %v4231_v20, %v4230_v47  ;;  %v4010_v51 = vadd.f32 %v4009_v21, %v3305_v27  ;;  %v4011_v15 = vpop.f32.mrb[209].mxu0 }
 0x6ca   : > { %v2702_v15 = vld [vmem:[%s7702_s16 + $0x380] sm:$0xff] }
 0x6cb   : > { %v4232_v29 = vmax.f32 %v4010_v51, 0.0 }
 0x6cc   : > { %v4014_v55 = vpop.f32.mrb[210].mxu0 }
 0x6cd   : > { %v4015_v40 = vadd.f32 %v4014_v55, %v3310_v53  ;;  %v4016_v3 = vpop.f32.mrb[211].mxu0  ;;  %v3345_v55 = vadd.f32 %v7377_v34, %v2702_v15 }
 0x6cf   : > { %v4233_v49 = vmax.f32 %v4015_v40, 0.0 }
 0x6d0   : > { %v4019_v6 = vpop.f32.mrb[212].mxu0 }
 0x6d1   : > { %v7541_v26 = vpack.c.bf16 %v4233_v49, %v4232_v29  ;;  %v4020_v62 = vadd.f32 %v4019_v6, %v3315_v43  ;;  %v4021_v60 = vpop.f32.mrb[213].mxu0  ;;  %v2703_v43 = vld [vmem:[%s7702_s16 + $0x388] sm:$0xff] }
 0x6d2   : > { %v3350_v38 = vadd.f32 %v7385_v8, %v2703_v43 }
 0x6d3   : > { %v4234_v23 = vmax.f32 %v4020_v62, 0.0  ;;  %v2704_v62 = vld [vmem:[%s7702_s16 + $0x390] sm:$0xff] }
 0x6d4   : > { %v4024_v42 = vpop.f32.mrb[214].mxu0  ;;  %v3355_v39 = vadd.f32 %v7391_v12, %v2704_v62 }
 0x6d5   : > { %v4025_v41 = vadd.f32 %v4024_v42, %v3320_v56  ;;  %v4026_v59 = vpop.f32.mrb[215].mxu0 }
 0x6d7   : > { %v4235_v19 = vmax.f32 %v4025_v41, 0.0  ;;  %v2705_v41 = vld [vmem:[%s7702_s16 + $0x398] sm:$0xff] }
 0x6d8   : > { %v4029_v5 = vpop.f32.mrb[216].mxu0  ;;  %v3360_v8 = vadd.f32 %v7397_v25, %v2705_v41 }
 0x6d9   : > { %v7551_v22 = vpack.c.bf16 %v4235_v19, %v4234_v23  ;;  %v4030_v1 = vadd.f32 %v4029_v5, %v3325_v31  ;;  %v4031_v37 = vpop.f32.mrb[217].mxu0 }
 0x6db   : > { %v4236_v17 = vmax.f32 %v4030_v1, 0.0 }
 0x6dc   : > { %v4034_v50 = vpop.f32.mrb[218].mxu0 }
 0x6dd   : > { %v4035_v35 = vadd.f32 %v4034_v50, %v3330_v9  ;;  %v4036_v27 = vpop.f32.mrb[219].mxu0  ;;  %v2706_v9 = vld [vmem:[%s7702_s16 + $0x3a0] sm:$0xff]  ;;  %v2707_v50 = vld [vmem:[%s7702_s16 + $0x3a8] sm:$0xff] }
 0x6de   : > { %v3365_v37 = vadd.f32 %v7404_v14, %v2706_v9  ;;  %v3370_v46 = vadd.f32 %v7410_v16, %v2707_v50 }
 0x6df   : > { %v4237_v47 = vmax.f32 %v4035_v35, 0.0 }
 0x6e0   : > { %v4039_v20 = vpop.f32.mrb[220].mxu0 }
 0x6e1   : > { %v7561_v21 = vpack.c.bf16 %v4237_v47, %v4236_v17  ;;  %v4040_v53 = vadd.f32 %v4039_v20, %v3335_v13  ;;  %v4041_v51 = vpop.f32.mrb[221].mxu0 }
 0x6e2   : > { %v2709_v51 = vld [vmem:[%s7702_s16 + $0x3b8] sm:$0xff] }
 0x6e3   : > { %v4238_v3 = vmax.f32 %v4040_v53, 0.0 }
 0x6e4   : > { %v4044_v36 = vpop.f32.mrb[222].mxu0 }
 0x6e5   : > { %v4045_v11 = vadd.f32 %v4044_v36, %v3340_v57  ;;  %v4046_v40 = vpop.f32.mrb[223].mxu0  ;;  %v4260_v36 = vld [vmem:[%s7703_s13] sm:$0xf] }
 0x6e6   : > { %v3380_v40 = vadd.f32 %v7423_v18, %v2709_v51  ;;  %v2711_v18 = vld [vmem:[%s7702_s16 + $0x3c8] sm:$0xff] }
 0x6e7   : > { %v4239_v61 = vmax.f32 %v4045_v11, 0.0 }
 0x6e8   : > { %v4049_v29 = vpop.f32.mrb[224].mxu0 }
 0x6e9   : > { %v7571_v49 = vpack.c.bf16 %v4239_v61, %v4238_v3  ;;  %v4050_v6 = vadd.f32 %v4049_v29, %v3345_v55  ;;  %v4051_v56 = vpop.f32.mrb[225].mxu0  ;;  %v4340_v3 = vadd.f32 %v7502_v4, %v4260_v36 }
 0x6eb   : > { %v4240_v31 = vmax.f32 %v4050_v6, 0.0 }
 0x6ec   : > { %v4054_v60 = vpop.f32.mrb[226].mxu0 }
 0x6ed   : > { %v4055_v34 = vadd.f32 %v4054_v60, %v3350_v38  ;;  %v4056_v42 = vpop.f32.mrb[227].mxu0 }
 0x6ef   : > { %v4241_v59 = vmax.f32 %v4055_v34, 0.0 }
 0x6f0   : > { %v4059_v28 = vpop.f32.mrb[228].mxu0 }
 0x6f1   : > { %v5257_v23 = vpack.c.bf16 %v4241_v59, %v4240_v31  ;;  %v4060_v19 = vadd.f32 %v4059_v28, %v3355_v39  ;;  %v4061_v5 = vpop.f32.mrb[229].mxu0  ;;  %v3390_v31 = vadd.f32 %v7436_v33, %v2711_v18 }
 0x6f2   : > { %v2713_v5 = vld [vmem:[%s7702_s16 + $0x3d8] sm:$0xff] }
 0x6f3   : > { %5258 = vmatprep.subr.bf16.mxu1 %v5257_v23  ;;  %v4242_v35 = vmax.f32 %v4060_v19, 0.0 }
 0x6f4   : > { %v4064_v1 = vpop.f32.mrb[230].mxu0  ;;  %5260 = vmatpush3.bf16.msra.mxu1 %v7499_v7  ;;  %v2708_v7 = vld [vmem:[%s7702_s16 + $0x3b0] sm:$0xff] }
 0x6f5   : > { %v4065_v12 = vadd.f32 %v4064_v1, %v3360_v8  ;;  %v4066_v44 = vpop.f32.mrb[231].mxu0  ;;  %v3375_v57 = vadd.f32 %v7417_v63, %v2708_v7  ;;  %v2710_v63 = vld [vmem:[%s7702_s16 + $0x3c0] sm:$0xff] }
 0x6f6   : > { %v3385_v62 = vadd.f32 %v7430_v54, %v2710_v63 }
 0x6f7   : > { %v4243_v25 = vmax.f32 %v4065_v12, 0.0 }
 0x6f8   : > { %v4069_v13 = vpop.f32.mrb[232].mxu0 }
 0x6f9   : > { %v5261_v27 = vpack.c.bf16 %v4243_v25, %v4242_v35  ;;  %v4070_v17 = vadd.f32 %v4069_v13, %v3365_v37  ;;  %v4071_v47 = vpop.f32.mrb[233].mxu0  ;;  %v3400_v37 = vadd.f32 %v7449_v52, %v2713_v5 }
 0x6fb   : > { %5262 = vmatprep.subr.bf16.mxu1 %v5261_v27  ;;  %v4244_v15 = vmax.f32 %v4070_v17, 0.0  ;;  %v2715_v27 = vld [vmem:[%s7702_s16 + $0x3e8] sm:$0xff] }
 0x6fc   : > { %v4074_v20 = vpop.f32.mrb[234].mxu0  ;;  %5264 = vmatpush3.bf16.msra.mxu1 %v7511_v32  ;;  %v3410_v7 = vadd.f32 %v7462_v58, %v2715_v27 }
 0x6fd   : > { %v4075_v14 = vadd.f32 %v4074_v20, %v3370_v46  ;;  %v4076_v53 = vpop.f32.mrb[235].mxu0 }
 0x6ff   : > { %v4245_v16 = vmax.f32 %v4075_v14, 0.0 }
 0x700   : > { %v4079_v11 = vpop.f32.mrb[236].mxu0 }
 0x701   : > { %v5265_v55 = vpack.c.bf16 %v4245_v16, %v4244_v15  ;;  %v4080_v43 = vadd.f32 %v4079_v11, %v3375_v57  ;;  %v4081_v32 = vpop.f32.mrb[237].mxu0  ;;  %v2717_v15 = vld [vmem:[%s7702_s16 + $0x3f8] sm:$0xff] }
 0x702   : > { %v4894_v61 = vpop.f32.mrb[72].mxu1 }
 0x703   : > { %5266 = vmatprep.subr.bf16.mxu1 %v5265_v55  ;;  %v4895_v29 = vpop.f32.mrb[73].mxu1  ;;  %v4246_v39 = vmax.f32 %v4080_v43, 0.0  ;;  %v3420_v55 = vadd.f32 %v7475_v48, %v2717_v15 }
 0x704   : > { %v4084_v38 = vpop.f32.mrb[238].mxu0  ;;  %5268 = vmatpush3.bf16.msra.mxu1 %v7521_v45  ;;  %v4896_v6 = vadd.f32 %v4895_v29, %v4894_v61  ;;  %v2712_v45 = vld [vmem:[%s7702_s16 + $0x3d0] sm:$0xff] }
 0x705   : > { %v4085_v56 = vadd.f32 %v4084_v38, %v3380_v40  ;;  %v4086_v60 = vpop.f32.mrb[239].mxu0  ;;  %v3395_v8 = vadd.f32 %v7443_v30, %v2712_v45 }
 0x706   : > { %v7612_v34 = vadd.f32 %v4896_v6, %v4340_v3 }
 0x707   : > { %v4247_v42 = vmax.f32 %v4085_v56, 0.0 }
 0x708   : > { %v4089_v4 = vpop.f32.mrb[240].mxu0 }
 0x709   : > { %v5269_v41 = vpack.c.bf16 %v4247_v42, %v4246_v39  ;;  %v4090_v59 = vadd.f32 %v4089_v4, %v3385_v62  ;;  %v4091_v28 = vpop.f32.mrb[241].mxu0 }
 0x70b   : > { %5270 = vmatprep.subr.bf16.mxu1 %v5269_v41  ;;  %v4248_v9 = vmax.f32 %v4090_v59, 0.0 }
 0x70c   : > { %v4094_v54 = vpop.f32.mrb[242].mxu0  ;;  %5272 = vmatpush3.bf16.msra.mxu1 %v7531_v24  ;;  %v2714_v24 = vld [vmem:[%s7702_s16 + $0x3e0] sm:$0xff] }
 0x70d   : > { %v4095_v23 = vadd.f32 %v4094_v54, %v3390_v31  ;;  %v4096_v19 = vpop.f32.mrb[243].mxu0  ;;  %v3405_v25 = vadd.f32 %v7456_v10, %v2714_v24 }
 0x70f   : > { %v4249_v33 = vmax.f32 %v4095_v23, 0.0 }
 0x710   : > { %v4099_v1 = vpop.f32.mrb[244].mxu0 }
 0x711   : > { %v5273_v12 = vpack.c.bf16 %v4249_v33, %v4248_v9  ;;  %v4100_v44 = vadd.f32 %v4099_v1, %v3395_v8  ;;  %v4101_v50 = vpop.f32.mrb[245].mxu0 }
 0x713   : > { %5274 = vmatprep.subr.bf16.mxu1 %v5273_v12  ;;  %v4250_v46 = vmax.f32 %v4100_v44, 0.0 }
 0x714   : > { %v4104_v35 = vpop.f32.mrb[246].mxu0  ;;  %5276 = vmatpush3.bf16.msra.mxu1 %v7541_v26  ;;  %v2716_v26 = vld [vmem:[%s7702_s16 + $0x3f0] sm:$0xff] }
 0x715   : > { %v4105_v30 = vadd.f32 %v4104_v35, %v3400_v37  ;;  %v4106_v13 = vpop.f32.mrb[247].mxu0  ;;  %v3415_v53 = vadd.f32 %v7469_v0, %v2716_v26 }
 0x717   : > { %v4251_v52 = vmax.f32 %v4105_v30, 0.0 }
 0x718   : > { %v4109_v17 = vpop.f32.mrb[248].mxu0 }
 0x719   : > { %v5277_v47 = vpack.c.bf16 %v4251_v52, %v4250_v46  ;;  %v4110_v20 = vadd.f32 %v4109_v17, %v3405_v25  ;;  %v4111_v14 = vpop.f32.mrb[249].mxu0 }
 0x71b   : > { %5278 = vmatprep.subr.bf16.mxu1 %v5277_v47  ;;  %v4252_v16 = vmax.f32 %v4110_v20, 0.0 }
 0x71c   : > { %v4114_v57 = vpop.f32.mrb[250].mxu0  ;;  %5280 = vmatpush3.bf16.msra.mxu1 %v7551_v22 }
 0x71d   : > { %v4115_v10 = vadd.f32 %v4114_v57, %v3410_v7  ;;  %v4116_v51 = vpop.f32.mrb[251].mxu0 }
 0x71f   : > { %v4253_v58 = vmax.f32 %v4115_v10, 0.0 }
 0x720   : > { %v4119_v36 = vpop.f32.mrb[252].mxu0 }
 0x721   : > { %v5281_v11 = vpack.c.bf16 %v4253_v58, %v4252_v16  ;;  %v4120_v40 = vadd.f32 %v4119_v36, %v3415_v53  ;;  %v4121_v43 = vpop.f32.mrb[253].mxu0 }
 0x723   : > { %5282 = vmatprep.subr.bf16.mxu1 %v5281_v11  ;;  %v4254_v63 = vmax.f32 %v4120_v40, 0.0 }
 0x724   : > { %v4124_v32 = vpop.f32.mrb[254].mxu0  ;;  %5284 = vmatpush3.bf16.msra.mxu1 %v7561_v21 }
 0x725   : > { %v4125_v22 = vadd.f32 %v4124_v32, %v3420_v55  ;;  %v4126_v0 = vpop.f32.mrb[255].mxu0 }
 0x727   : > { %v4255_v3 = vmax.f32 %v4125_v22, 0.0 }
 0x729   : > { %v5285_v61 = vpack.c.bf16 %v4255_v3, %v4254_v63 }
 0x72b   : > { %5286 = vmatprep.subr.bf16.mxu1 %v5285_v61 }
 0x72c   : > { %5288 = vmatpush3.bf16.msra.mxu1 %v7571_v49 }
 0x72f   : > { %4548 = vmatmul.mubr.f32.vlgmr.msra.gmra.mrb[76].mxu1 %v7489_v2 }
 0x782   : > { %v4929_v29 = vpop.f32.mrb[74].mxu1 }
 0x783   : > { %v4930_v38 = vpop.f32.mrb[75].mxu1 }
 0x784   : > { %v4931_v48 = vadd.f32 %v4930_v38, %v4929_v29 }
 0x786   : > { %v4480_v6 = vadd.f32 %v4931_v48, %v7612_v34 }
 0x802   : > { %v4964_v56 = vpop.f32.mrb[76].mxu1 }
 0x803   : > { %v4965_v62 = vpop.f32.mrb[77].mxu1 }
 0x804   : > { %v4966_v60 = vadd.f32 %v4965_v62, %v4964_v56 }
 0x806   : > { %v4550_v21 = vadd.f32 %v4966_v60, %v4480_v6 }
 0x808   : > { %4554 = vst.msk [vmem:[%s491_s8] sm:$0xf] %vm4553_vm4, %v4550_v21 }
 0x809 PF: > { %s27_s22 = sadd.s32 1, %s5893_s22   ;;  %s7705_s15 = smov %s6100_s17 }
 0x80a   : > { %p24_p9 = scmp.ge.s32.totalorder %s27_s22, 4   ;;  %s7706_s17 = smov %s5877_s18 }
 0x80b   : > { %s7707_s18 = smov %s5881_s19  ;;  %s7708_s19 = smov %s7705_s15 }
 0x80c   : > { %s7709_s20 = smov %s5889_s21  ;;  %s7710_s21 = smov %s7712_s3 }
 0x80d   :  { %26 = sbr.rel (!%p24_p9) target bundleno = 12 (0xc), region = 140 }
 0x814   :  { %4612 = vsyncpa [#allocation4], 1 }
 0x815   :  { %4614 = vsyncpa [#allocation4 + $0x1], 1 }
 0x816   :  { %4615 = vsyncpa [#allocation6], 1 }
 0x817   :  { %4616 = vsyncpa [#allocation9], 1 }

</bundles_post_ra>
